<compile_context>
chip_gen: v6e
topology: v6e:2x2x1
jax: 0.10.0
libtpu: 0.0.40
codegen_flags: <defaults>
</compile_context>

<pallas_src>
import jax
import jax.numpy as jnp
from jax.experimental import pallas as pl
from jax.experimental.pallas import tpu as pltpu

NUM_CLASSES = 10


def _round_up(n, m):
    return ((n + m - 1) // m) * m


def _batch_tile(n, cap=16):
    """Largest divisor of n that is <= min(cap, n // 2), so grid >= 2 (v7x)."""
    if n < 2:
        return 1
    cap = max(1, min(cap, n // 2))
    for c in range(cap, 0, -1):
        if n % c == 0:
            return c
    return 1


def _row_tiling(n):
    """(padded_rows, row_tile): row_tile multiple of 8, >=2 grid steps."""
    rt = min(256, _round_up(max(1, (n + 1) // 2), 8))
    n_pad = _round_up(max(n, 2 * rt), rt)
    return n_pad, rt


# ---------------------------------------------------------------------------
# Pallas kernels
# ---------------------------------------------------------------------------

def _conv1_kernel(xcols_ref, w_ref, b_ref, o_ref):
    """conv1 (3x3, pad=1) + bias + 2x2 maxpool + ReLU, one batch tile.

    xcols_ref: (Bt, 4, P, 27) bf16  phase im2col (P = 16*16, K un-padded)
    w_ref:     (27, 32)       bf16
    b_ref:     (1, 32)        f32
    o_ref:     (Bt, P, 32)    bf16  pooled output, spatial row-major (i, j)
    """
    bt, _, p, k = xcols_ref.shape
    cout = w_ref.shape[1]
    # One MXU dot over all 4 pooling phases and the whole batch tile.
    x2d = xcols_ref[...].reshape(bt * 4 * p, k)
    acc = jnp.dot(x2d, w_ref[...], preferred_element_type=jnp.float32)
    acc4 = acc.reshape(bt, 4, p, cout)
    # 2x2 max-pool == elementwise max over the 4 phase slabs (VPU).
    pooled = jnp.maximum(jnp.maximum(acc4[:, 0], acc4[:, 1]),
                         jnp.maximum(acc4[:, 2], acc4[:, 3]))
    # bias commutes with max; relu(maxpool(x)) == maxpool(relu(x)).
    o_ref[...] = jnp.maximum(pooled + b_ref[...], 0.0).astype(o_ref.dtype)


def _conv2_kernel(xc_ref, w_ref, b_ref, o_ref):
    """conv2 (3x3, pad=1) + bias + 2x2 maxpool + ReLU with IN-KERNEL im2col.

    xc_ref: (Bt, 2, Hc+2, Wh+1, 32) bf16  column-parity split, zero-padded
                                          conv1 output (Hc=16, Wh=8):
                                          xc[n,q,pr,u,:] = padded[n,pr,2u+q,:]
    w_ref:  (288, 64) bf16  rows ordered (dy, dx, cin)
    b_ref:  (1, 64)   f32
    o_ref:  (Bt, 64, 64) bf16   dim1 = i*8 + j (pooled coords), dim2 = cout
    """
    bt, _, hp2, wps, cin = xc_ref.shape
    cout = w_ref.shape[1]
    hc = hp2 - 2          # pre-pool height (16)
    hh = hc // 2          # pooled height (8)
    wh = wps - 1          # pooled width  (8)

    x = xc_ref[...]
    w = w_ref[...]

    # Two column phases (pre-pool column = 2j + b); per phase accumulate the
    # 9 tap matmuls (K=32 each) straight from VMEM -- no HBM im2col slab.
    phase_acc = []
    for b in range(2):
        acc = jnp.zeros((bt * hc * wh, cout), jnp.float32)
        for dy in range(3):
            for dx in range(3):
                q = (b + dx) % 2
                ox = (b + dx) // 2
                t = dy * 3 + dx
                tap = x[:, q, dy:dy + hc, ox:ox + wh, :]       # (Bt, hc, wh, cin)
                acc = acc + jnp.dot(tap.reshape(bt * hc * wh, cin),
                                    w[t * cin:(t + 1) * cin, :],
                                    preferred_element_type=jnp.float32)
        phase_acc.append(acc)

    # Column pool: max over the two column phases (same (row, j) indexing).
    zc = jnp.maximum(phase_acc[0], phase_acc[1])               # (Bt*hc*wh, cout)
    # Row pool: tile-aligned leading-dim split (rows -> (i, a)) then max.
    z5 = zc.reshape(bt, hh, 2, wh, cout)
    pooled = jnp.maximum(z5[:, :, 0], z5[:, :, 1])             # (Bt, hh, wh, cout)
    pooled = pooled.reshape(bt, hh * wh, cout)
    o_ref[...] = jnp.maximum(pooled + b_ref[...], 0.0).astype(o_ref.dtype)


def _mlp_kernel(x_ref, w1_ref, b1_ref, w2_ref, b2_ref, o_ref):
    """Fused fc1 + ReLU + fc2 for one row tile (bf16 MXU, f32 accumulate)."""
    h = jnp.dot(x_ref[...], w1_ref[...],
                preferred_element_type=jnp.float32) + b1_ref[...]
    h = jnp.maximum(h, 0.0).astype(jnp.bfloat16)
    o_ref[...] = (jnp.dot(h, w2_ref[...], preferred_element_type=jnp.float32)
                  + b2_ref[...]).astype(o_ref.dtype)


# ---------------------------------------------------------------------------
# XLA-side layout plumbing (tiny permutations only; all FLOPs in the kernels)
# ---------------------------------------------------------------------------

def _phase_im2col(x_nhwc):
    """(N,H,W,C) -> (N, 4, (H//2)*(W//2), 9*C) bf16, un-padded K (item 7)."""
    x_nhwc = x_nhwc.astype(jnp.bfloat16)
    N, H, W, C = x_nhwc.shape
    Hh, Wh = H // 2, W // 2
    xp = jnp.pad(x_nhwc, ((0, 0), (1, 1), (1, 1), (0, 0)))
    phases = []
    for a in range(2):
        for b in range(2):
            taps = []
            for dy in range(3):
                for dx in range(3):
                    sl = xp[:, a + dy:a + dy + H:2, b + dx:b + dx + W:2, :]
                    taps.append(sl.reshape(N, Hh * Wh, C))
            phases.append(jnp.concatenate(taps, axis=-1))       # (N, P, 9C)
    return jnp.stack(phases, axis=1)                            # (N, 4, P, 9C)


def _col_split_pad(y_nhwc):
    """(N,Hc,Wc,C) -> (N, 2, Hc+2, (Wc+2)//2, C): zero-pad + column-parity split."""
    N, Hc, Wc, C = y_nhwc.shape
    yp = jnp.pad(y_nhwc, ((0, 0), (1, 1), (1, 1), (0, 0)))      # (N, Hc+2, Wc+2, C)
    yc = yp.reshape(N, Hc + 2, (Wc + 2) // 2, 2, C)             # col = 2u + q
    return jnp.transpose(yc, (0, 3, 1, 2, 4))                   # (N, 2, Hc+2, W/2+1, C)


# ---------------------------------------------------------------------------
# pallas_call wrappers
# ---------------------------------------------------------------------------

def conv1_relu_pool(x_nhwc, w_mat, b_mat):
    """Conv2d(3,32,3,p=1) + ReLU + MaxPool(2,2); NHWC f32 in, NHWC bf16 out."""
    N, H, W, Cin = x_nhwc.shape
    K, Cout = w_mat.shape                                        # 27, 32
    Hh, Wh = H // 2, W // 2
    P = Hh * Wh
    xcols = _phase_im2col(x_nhwc)                                # (N,4,P,27) bf16
    bt = _batch_tile(N)
    out = pl.pallas_call(
        _conv1_kernel,
        out_shape=jax.ShapeDtypeStruct((N, P, Cout), jnp.bfloat16),
        grid_spec=pltpu.PrefetchScalarGridSpec(
            num_scalar_prefetch=0,
            grid=(N // bt,),
            in_specs=[
                pl.BlockSpec((bt, 4, P, K), lambda n: (n, 0, 0, 0)),
                pl.BlockSpec((K, Cout), lambda n: (0, 0)),
                pl.BlockSpec((1, Cout), lambda n: (0, 0)),
            ],
            out_specs=pl.BlockSpec((bt, P, Cout), lambda n: (n, 0, 0)),
        ),
        compiler_params=pltpu.CompilerParams(
            dimension_semantics=("parallel",)),
    )(xcols, w_mat, b_mat)
    return out.reshape(N, Hh, Wh, Cout)                          # (N,16,16,32)


def conv2_relu_pool(y_nhwc, w_mat, b_mat):
    """Conv2d(32,64,3,p=1) + ReLU + MaxPool(2,2) with in-kernel im2col."""
    N, Hc, Wc, Cin = y_nhwc.shape                                # (N,16,16,32)
    KK, Cout = w_mat.shape                                       # 288, 64
    Hh, Wh = Hc // 2, Wc // 2                                    # 8, 8
    yc = _col_split_pad(y_nhwc)                                  # (N,2,18,9,32) bf16
    bt = _batch_tile(N)
    out = pl.pallas_call(
        _conv2_kernel,
        out_shape=jax.ShapeDtypeStruct((N, Hh * Wh, Cout), jnp.bfloat16),
        grid_spec=pltpu.PrefetchScalarGridSpec(
            num_scalar_prefetch=0,
            grid=(N // bt,),
            in_specs=[
                pl.BlockSpec((bt, 2, Hc + 2, Wh + 1, Cin),
                             lambda n: (n, 0, 0, 0, 0)),
                pl.BlockSpec((KK, Cout), lambda n: (0, 0)),
                pl.BlockSpec((1, Cout), lambda n: (0, 0)),
            ],
            out_specs=pl.BlockSpec((bt, Hh * Wh, Cout), lambda n: (n, 0, 0)),
        ),
        compiler_params=pltpu.CompilerParams(
            dimension_semantics=("parallel",)),
    )(yc, w_mat, b_mat)
    return out                                                   # (N, 64, 64)


def mlp(x, w1_t, b1_mat, w2_t, b2_mat):
    """Fused fc1+ReLU+fc2; rows padded to >=2 sublane-aligned tiles (item 10)."""
    N, D = x.shape
    H1 = w1_t.shape[1]
    Dout = w2_t.shape[1]
    n_pad, rt = _row_tiling(N)
    if n_pad != N:
        x = jnp.pad(x, ((0, n_pad - N), (0, 0)))
    out = pl.pallas_call(
        _mlp_kernel,
        out_shape=jax.ShapeDtypeStruct((n_pad, Dout), jnp.float32),
        grid_spec=pltpu.PrefetchScalarGridSpec(
            num_scalar_prefetch=0,
            grid=(n_pad // rt,),
            in_specs=[
                pl.BlockSpec((rt, D), lambda i: (i, 0)),
                pl.BlockSpec((D, H1), lambda i: (0, 0)),
                pl.BlockSpec((1, H1), lambda i: (0, 0)),
                pl.BlockSpec((H1, Dout), lambda i: (0, 0)),
                pl.BlockSpec((1, Dout), lambda i: (0, 0)),
            ],
            out_specs=pl.BlockSpec((rt, Dout), lambda i: (i, 0)),
        ),
        compiler_params=pltpu.CompilerParams(
            dimension_semantics=("parallel",)),
    )(x, w1_t, b1_mat, w2_t, b2_mat)
    return out[:N]


# ---------------------------------------------------------------------------
# Parameters (PyTorch layout), one-time weight prep, and the forward pass
# ---------------------------------------------------------------------------

def init_params(key):
    ks = jax.random.split(key, 8)

    def u(k, shape, fan_in):
        bound = 1.0 / float(fan_in) ** 0.5
        return jax.random.uniform(k, shape, jnp.float32, -bound, bound)

    return {
        "conv1_w": u(ks[0], (32, 3, 3, 3), 3 * 9),          # (Cout, Cin, kh, kw)
        "conv1_b": u(ks[1], (32,), 3 * 9),
        "conv2_w": u(ks[2], (64, 32, 3, 3), 32 * 9),
        "conv2_b": u(ks[3], (64,), 32 * 9),
        "fc1_w": u(ks[4], (128, 64 * 8 * 8), 64 * 8 * 8),   # torch Linear (out, in)
        "fc1_b": u(ks[5], (128,), 64 * 8 * 8),
        "fc2_w": u(ks[6], (10, 128), 128),
        "fc2_b": u(ks[7], (10,), 128),
    }


def prepare_params(params):
    """One-time (outside jit) torch-layout -> kernel-layout conversion."""
    def conv_mat(w, b):
        cout, cin, kh, kw = w.shape
        k = kh * kw * cin
        # (Cout,Cin,kh,kw) -> (kh,kw,Cin,Cout) -> (9*Cin, Cout); rows = (dy,dx,cin)
        wm = jnp.transpose(w, (2, 3, 1, 0)).reshape(k, cout).astype(jnp.bfloat16)
        return wm, b.reshape(1, cout).astype(jnp.float32)

    c1w, c1b = conv_mat(params["conv1_w"], params["conv1_b"])   # (27,32)
    c2w, c2b = conv_mat(params["conv2_w"], params["conv2_b"])   # (288,64)

    # fc1 columns: permute from NCHW flatten (c,h,w) to NHWC flatten (h,w,c)
    # so no runtime transpose is needed between conv2 and fc1.
    f1 = params["fc1_w"].reshape(128, 64, 8, 8)                 # (out, c, h, w)
    f1 = jnp.transpose(f1, (0, 2, 3, 1)).reshape(128, 64 * 8 * 8)

    # fc2 padded to 128 output columns (lane-dense store); sliced outside.
    w2p = jnp.pad(params["fc2_w"].T, ((0, 0), (0, 128 - NUM_CLASSES)))
    b2p = jnp.pad(params["fc2_b"].reshape(1, NUM_CLASSES),
                  ((0, 0), (0, 128 - NUM_CLASSES)))
    return {
        "conv1_w": c1w, "conv1_b": c1b,
        "conv2_w": c2w, "conv2_b": c2b,
        "fc1_w": f1.T.astype(jnp.bfloat16),                     # (4096, 128)
        "fc1_b": params["fc1_b"].reshape(1, 128).astype(jnp.float32),
        "fc2_w": w2p.astype(jnp.bfloat16),                      # (128, 128)
        "fc2_b": b2p.astype(jnp.float32),
    }


@jax.jit
def simple_cnn_forward(prep, x_nchw):
    x = jnp.transpose(x_nchw, (0, 2, 3, 1))                     # NCHW -> NHWC
    y1 = conv1_relu_pool(x, prep["conv1_w"], prep["conv1_b"])   # (N,16,16,32) bf16
    y2 = conv2_relu_pool(y1, prep["conv2_w"], prep["conv2_b"])  # (N,64,64) bf16
    n = y2.shape[0]
    feats = y2.reshape(n, 64 * 64)          # (h,w,c) flatten; fc1 cols pre-permuted
    logits_p = mlp(feats, prep["fc1_w"], prep["fc1_b"],
                   prep["fc2_w"], prep["fc2_b"])                # (N,128) f32
    return logits_p[:, :NUM_CLASSES]                            # (N,10) f32


if __name__ == "__main__":
    key = jax.random.PRNGKey(0)
    pkey, xkey = jax.random.split(key)
    params = init_params(pkey)
    prep = prepare_params(params)
    # 32x32 spatial is required by the module (fc1 expects 64*8*8 after 2 pools).
    x = jax.random.normal(xkey, (2, 3, 32, 32), jnp.float32)    # NCHW like PyTorch
    logits = simple_cnn_forward(prep, x)
    jax.block_until_ready(logits)
    assert logits.shape == (2, NUM_CLASSES) and logits.dtype == jnp.float32
    print("KERNEL_OK")
</pallas_src>

<mosaic_0001>
module attributes {stable_mosaic.version = 11 : i64} {
  func.func @_conv1_kernel(%arg0: i32, %arg1: memref<1x4x256x27xbf16, #tpu.memory_space<vmem>>, %arg2: memref<27x32xbf16, #tpu.memory_space<vmem>>, %arg3: memref<1x32xf32, #tpu.memory_space<vmem>>, %arg4: memref<1x256x32xbf16, #tpu.memory_space<vmem>>) attributes {dimension_semantics = [#tpu.dimension_semantics<parallel>], iteration_bounds = array<i64: 2>, scalar_prefetch = 0 : i64, scratch_operands = 0 : i64, tpu.core_type = #tpu.core_type<tc>, window_params = [{transform_indices = @transform_0, window_bounds = array<i64: 1, 4, 256, 27>}, {pipeline_mode = #tpu.pipeline_mode<synchronous>, transform_indices = @transform_1, window_bounds = array<i64: 27, 32>}, {pipeline_mode = #tpu.pipeline_mode<synchronous>, transform_indices = @transform_2, window_bounds = array<i64: 1, 32>}, {transform_indices = @transform_3, window_bounds = array<i64: 1, 256, 32>}]} {
    %c0 = arith.constant 0 : index
    %c0_0 = arith.constant 0 : index
    %c0_1 = arith.constant 0 : index
    %c0_2 = arith.constant 0 : index
    %0 = vector.load %arg1[%c0, %c0_0, %c0_1, %c0_2] : memref<1x4x256x27xbf16, #tpu.memory_space<vmem>>, vector<1x4x256x27xbf16>
    %1 = vector.shape_cast %0 : vector<1x4x256x27xbf16> to vector<1024x27xbf16>
    %c0_3 = arith.constant 0 : index
    %c0_4 = arith.constant 0 : index
    %2 = vector.load %arg2[%c0_3, %c0_4] : memref<27x32xbf16, #tpu.memory_space<vmem>>, vector<27x32xbf16>
    %cst = arith.constant dense<0.000000e+00> : vector<1024x32xf32>
    %3 = tpu.matmul %1, %2, %cst {dimension_numbers = #tpu.dot_dimension_numbers<[1], [0], [0], [1], [0, 0, 1, 1], [], []>} : vector<1024x27xbf16>, vector<27x32xbf16>, vector<1024x32xf32> -> vector<1024x32xf32>
    %4 = vector.shape_cast %3 : vector<1024x32xf32> to vector<1x4x256x32xf32>
    %5 = vector.extract_strided_slice %4 {offsets = [0, 0, 0, 0], sizes = [1, 1, 256, 32], strides = [1, 1, 1, 1]} : vector<1x4x256x32xf32> to vector<1x1x256x32xf32>
    %6 = vector.shape_cast %5 : vector<1x1x256x32xf32> to vector<1x256x32xf32>
    %7 = vector.extract_strided_slice %4 {offsets = [0, 1, 0, 0], sizes = [1, 1, 256, 32], strides = [1, 1, 1, 1]} : vector<1x4x256x32xf32> to vector<1x1x256x32xf32>
    %8 = vector.shape_cast %7 : vector<1x1x256x32xf32> to vector<1x256x32xf32>
    %9 = arith.maximumf %6, %8 : vector<1x256x32xf32>
    %10 = vector.extract_strided_slice %4 {offsets = [0, 2, 0, 0], sizes = [1, 1, 256, 32], strides = [1, 1, 1, 1]} : vector<1x4x256x32xf32> to vector<1x1x256x32xf32>
    %11 = vector.shape_cast %10 : vector<1x1x256x32xf32> to vector<1x256x32xf32>
    %12 = vector.extract_strided_slice %4 {offsets = [0, 3, 0, 0], sizes = [1, 1, 256, 32], strides = [1, 1, 1, 1]} : vector<1x4x256x32xf32> to vector<1x1x256x32xf32>
    %13 = vector.shape_cast %12 : vector<1x1x256x32xf32> to vector<1x256x32xf32>
    %14 = arith.maximumf %11, %13 : vector<1x256x32xf32>
    %15 = arith.maximumf %9, %14 : vector<1x256x32xf32>
    %c0_5 = arith.constant 0 : index
    %c0_6 = arith.constant 0 : index
    %16 = vector.load %arg3[%c0_5, %c0_6] : memref<1x32xf32, #tpu.memory_space<vmem>>, vector<1x32xf32>
    %17 = vector.shape_cast %16 : vector<1x32xf32> to vector<1x1x32xf32>
    %18 = vector.broadcast %17 : vector<1x1x32xf32> to vector<1x256x32xf32>
    %19 = arith.addf %15, %18 : vector<1x256x32xf32>
    %cst_7 = arith.constant 0.000000e+00 : f32
    %20 = vector.broadcast %cst_7 : f32 to vector<1x256x32xf32>
    %21 = arith.maximumf %19, %20 : vector<1x256x32xf32>
    %22 = arith.truncf %21 : vector<1x256x32xf32> to vector<1x256x32xbf16>
    %c0_8 = arith.constant 0 : index
    %c0_9 = arith.constant 0 : index
    %c0_10 = arith.constant 0 : index
    %23 = vector.load %arg4[%c0_8, %c0_9, %c0_10] : memref<1x256x32xbf16, #tpu.memory_space<vmem>>, vector<1x256x32xbf16>
    tpu.vector_store %arg4[%c0_8, %c0_9, %c0_10], %22 {strides = array<i32>} : memref<1x256x32xbf16, #tpu.memory_space<vmem>>, vector<1x256x32xbf16>,
    return
  }
  func.func @transform_0(%arg0: i32) -> (i32, i32, i32, i32) {
    %c0_i32 = arith.constant 0 : i32
    %c0_i32_0 = arith.constant 0 : i32
    %c0_i32_1 = arith.constant 0 : i32
    %c0_i32_2 = arith.constant 0 : i32
    return %arg0, %c0_i32, %c0_i32_0, %c0_i32_1 : i32, i32, i32, i32
  }
  func.func @transform_1(%arg0: i32) -> (i32, i32) {
    %c0_i32 = arith.constant 0 : i32
    %c0_i32_0 = arith.constant 0 : i32
    %c0_i32_1 = arith.constant 0 : i32
    return %c0_i32, %c0_i32_0 : i32, i32
  }
  func.func @transform_2(%arg0: i32) -> (i32, i32) {
    %c0_i32 = arith.constant 0 : i32
    %c0_i32_0 = arith.constant 0 : i32
    %c0_i32_1 = arith.constant 0 : i32
    return %c0_i32, %c0_i32_0 : i32, i32
  }
  func.func @transform_3(%arg0: i32) -> (i32, i32, i32) {
    %c0_i32 = arith.constant 0 : i32
    %c0_i32_0 = arith.constant 0 : i32
    %c0_i32_1 = arith.constant 0 : i32
    return %arg0, %c0_i32, %c0_i32_0 : i32, i32, i32
  }
}

module attributes {stable_mosaic.version = 11 : i64} {
  func.func @_conv2_kernel(%arg0: i32, %arg1: memref<1x2x18x9x32xbf16, #tpu.memory_space<vmem>>, %arg2: memref<288x64xbf16, #tpu.memory_space<vmem>>, %arg3: memref<1x64xf32, #tpu.memory_space<vmem>>, %arg4: memref<1x64x64xbf16, #tpu.memory_space<vmem>>) attributes {dimension_semantics = [#tpu.dimension_semantics<parallel>], iteration_bounds = array<i64: 2>, scalar_prefetch = 0 : i64, scratch_operands = 0 : i64, tpu.core_type = #tpu.core_type<tc>, window_params = [{transform_indices = @transform_0, window_bounds = array<i64: 1, 2, 18, 9, 32>}, {pipeline_mode = #tpu.pipeline_mode<synchronous>, transform_indices = @transform_1, window_bounds = array<i64: 288, 64>}, {pipeline_mode = #tpu.pipeline_mode<synchronous>, transform_indices = @transform_2, window_bounds = array<i64: 1, 64>}, {transform_indices = @transform_3, window_bounds = array<i64: 1, 64, 64>}]} {
    %c0 = arith.constant 0 : index
    %c0_0 = arith.constant 0 : index
    %c0_1 = arith.constant 0 : index
    %c0_2 = arith.constant 0 : index
    %c0_3 = arith.constant 0 : index
    %0 = vector.load %arg1[%c0, %c0_0, %c0_1, %c0_2, %c0_3] : memref<1x2x18x9x32xbf16, #tpu.memory_space<vmem>>, vector<1x2x18x9x32xbf16>
    %c0_4 = arith.constant 0 : index
    %c0_5 = arith.constant 0 : index
    %1 = vector.load %arg2[%c0_4, %c0_5] : memref<288x64xbf16, #tpu.memory_space<vmem>>, vector<288x64xbf16>
    %cst = arith.constant 0.000000e+00 : f32
    %2 = vector.broadcast %cst : f32 to vector<128x64xf32>
    %3 = vector.extract_strided_slice %0 {offsets = [0, 0, 0, 0, 0], sizes = [1, 1, 16, 8, 32], strides = [1, 1, 1, 1, 1]} : vector<1x2x18x9x32xbf16> to vector<1x1x16x8x32xbf16>
    %4 = vector.shape_cast %3 : vector<1x1x16x8x32xbf16> to vector<1x16x8x32xbf16>
    %5 = vector.shape_cast %4 : vector<1x16x8x32xbf16> to vector<128x32xbf16>
    %6 = vector.extract_strided_slice %1 {offsets = [0, 0], sizes = [32, 64], strides = [1, 1]} : vector<288x64xbf16> to vector<32x64xbf16>
    %cst_6 = arith.constant dense<0.000000e+00> : vector<128x64xf32>
    %7 = tpu.matmul %5, %6, %cst_6 {dimension_numbers = #tpu.dot_dimension_numbers<[1], [0], [0], [1], [0, 0, 1, 1], [], []>} : vector<128x32xbf16>, vector<32x64xbf16>, vector<128x64xf32> -> vector<128x64xf32>
    %8 = arith.addf %2, %7 : vector<128x64xf32>
    %9 = vector.extract_strided_slice %0 {offsets = [0, 1, 0, 0, 0], sizes = [1, 1, 16, 8, 32], strides = [1, 1, 1, 1, 1]} : vector<1x2x18x9x32xbf16> to vector<1x1x16x8x32xbf16>
    %10 = vector.shape_cast %9 : vector<1x1x16x8x32xbf16> to vector<1x16x8x32xbf16>
    %11 = vector.shape_cast %10 : vector<1x16x8x32xbf16> to vector<128x32xbf16>
    %12 = vector.extract_strided_slice %1 {offsets = [32, 0], sizes = [32, 64], strides = [1, 1]} : vector<288x64xbf16> to vector<32x64xbf16>
    %cst_7 = arith.constant dense<0.000000e+00> : vector<128x64xf32>
    %13 = tpu.matmul %11, %12, %cst_7 {dimension_numbers = #tpu.dot_dimension_numbers<[1], [0], [0], [1], [0, 0, 1, 1], [], []>} : vector<128x32xbf16>, vector<32x64xbf16>, vector<128x64xf32> -> vector<128x64xf32>
    %14 = arith.addf %8, %13 : vector<128x64xf32>
    %15 = vector.extract_strided_slice %0 {offsets = [0, 0, 0, 1, 0], sizes = [1, 1, 16, 8, 32], strides = [1, 1, 1, 1, 1]} : vector<1x2x18x9x32xbf16> to vector<1x1x16x8x32xbf16>
    %16 = vector.shape_cast %15 : vector<1x1x16x8x32xbf16> to vector<1x16x8x32xbf16>
    %17 = vector.shape_cast %16 : vector<1x16x8x32xbf16> to vector<128x32xbf16>
    %18 = vector.extract_strided_slice %1 {offsets = [64, 0], sizes = [32, 64], strides = [1, 1]} : vector<288x64xbf16> to vector<32x64xbf16>
    %cst_8 = arith.constant dense<0.000000e+00> : vector<128x64xf32>
    %19 = tpu.matmul %17, %18, %cst_8 {dimension_numbers = #tpu.dot_dimension_numbers<[1], [0], [0], [1], [0, 0, 1, 1], [], []>} : vector<128x32xbf16>, vector<32x64xbf16>, vector<128x64xf32> -> vector<128x64xf32>
    %20 = arith.addf %14, %19 : vector<128x64xf32>
    %21 = vector.extract_strided_slice %0 {offsets = [0, 0, 1, 0, 0], sizes = [1, 1, 16, 8, 32], strides = [1, 1, 1, 1, 1]} : vector<1x2x18x9x32xbf16> to vector<1x1x16x8x32xbf16>
    %22 = vector.shape_cast %21 : vector<1x1x16x8x32xbf16> to vector<1x16x8x32xbf16>
    %23 = vector.shape_cast %22 : vector<1x16x8x32xbf16> to vector<128x32xbf16>
    %24 = vector.extract_strided_slice %1 {offsets = [96, 0], sizes = [32, 64], strides = [1, 1]} : vector<288x64xbf16> to vector<32x64xbf16>
    %cst_9 = arith.constant dense<0.000000e+00> : vector<128x64xf32>
    %25 = tpu.matmul %23, %24, %cst_9 {dimension_numbers = #tpu.dot_dimension_numbers<[1], [0], [0], [1], [0, 0, 1, 1], [], []>} : vector<128x32xbf16>, vector<32x64xbf16>, vector<128x64xf32> -> vector<128x64xf32>
    %26 = arith.addf %20, %25 : vector<128x64xf32>
    %27 = vector.extract_strided_slice %0 {offsets = [0, 1, 1, 0, 0], sizes = [1, 1, 16, 8, 32], strides = [1, 1, 1, 1, 1]} : vector<1x2x18x9x32xbf16> to vector<1x1x16x8x32xbf16>
    %28 = vector.shape_cast %27 : vector<1x1x16x8x32xbf16> to vector<1x16x8x32xbf16>
    %29 = vector.shape_cast %28 : vector<1x16x8x32xbf16> to vector<128x32xbf16>
    %30 = vector.extract_strided_slice %1 {offsets = [128, 0], sizes = [32, 64], strides = [1, 1]} : vector<288x64xbf16> to vector<32x64xbf16>
    %cst_10 = arith.constant dense<0.000000e+00> : vector<128x64xf32>
    %31 = tpu.matmul %29, %30, %cst_10 {dimension_numbers = #tpu.dot_dimension_numbers<[1], [0], [0], [1], [0, 0, 1, 1], [], []>} : vector<128x32xbf16>, vector<32x64xbf16>, vector<128x64xf32> -> vector<128x64xf32>
    %32 = arith.addf %26, %31 : vector<128x64xf32>
    %33 = vector.extract_strided_slice %0 {offsets = [0, 0, 1, 1, 0], sizes = [1, 1, 16, 8, 32], strides = [1, 1, 1, 1, 1]} : vector<1x2x18x9x32xbf16> to vector<1x1x16x8x32xbf16>
    %34 = vector.shape_cast %33 : vector<1x1x16x8x32xbf16> to vector<1x16x8x32xbf16>
    %35 = vector.shape_cast %34 : vector<1x16x8x32xbf16> to vector<128x32xbf16>
    %36 = vector.extract_strided_slice %1 {offsets = [160, 0], sizes = [32, 64], strides = [1, 1]} : vector<288x64xbf16> to vector<32x64xbf16>
    %cst_11 = arith.constant dense<0.000000e+00> : vector<128x64xf32>
    %37 = tpu.matmul %35, %36, %cst_11 {dimension_numbers = #tpu.dot_dimension_numbers<[1], [0], [0], [1], [0, 0, 1, 1], [], []>} : vector<128x32xbf16>, vector<32x64xbf16>, vector<128x64xf32> -> vector<128x64xf32>
    %38 = arith.addf %32, %37 : vector<128x64xf32>
    %39 = vector.extract_strided_slice %0 {offsets = [0, 0, 2, 0, 0], sizes = [1, 1, 16, 8, 32], strides = [1, 1, 1, 1, 1]} : vector<1x2x18x9x32xbf16> to vector<1x1x16x8x32xbf16>
    %40 = vector.shape_cast %39 : vector<1x1x16x8x32xbf16> to vector<1x16x8x32xbf16>
    %41 = vector.shape_cast %40 : vector<1x16x8x32xbf16> to vector<128x32xbf16>
    %42 = vector.extract_strided_slice %1 {offsets = [192, 0], sizes = [32, 64], strides = [1, 1]} : vector<288x64xbf16> to vector<32x64xbf16>
    %cst_12 = arith.constant dense<0.000000e+00> : vector<128x64xf32>
    %43 = tpu.matmul %41, %42, %cst_12 {dimension_numbers = #tpu.dot_dimension_numbers<[1], [0], [0], [1], [0, 0, 1, 1], [], []>} : vector<128x32xbf16>, vector<32x64xbf16>, vector<128x64xf32> -> vector<128x64xf32>
    %44 = arith.addf %38, %43 : vector<128x64xf32>
    %45 = vector.extract_strided_slice %0 {offsets = [0, 1, 2, 0, 0], sizes = [1, 1, 16, 8, 32], strides = [1, 1, 1, 1, 1]} : vector<1x2x18x9x32xbf16> to vector<1x1x16x8x32xbf16>
    %46 = vector.shape_cast %45 : vector<1x1x16x8x32xbf16> to vector<1x16x8x32xbf16>
    %47 = vector.shape_cast %46 : vector<1x16x8x32xbf16> to vector<128x32xbf16>
    %48 = vector.extract_strided_slice %1 {offsets = [224, 0], sizes = [32, 64], strides = [1, 1]} : vector<288x64xbf16> to vector<32x64xbf16>
    %cst_13 = arith.constant dense<0.000000e+00> : vector<128x64xf32>
    %49 = tpu.matmul %47, %48, %cst_13 {dimension_numbers = #tpu.dot_dimension_numbers<[1], [0], [0], [1], [0, 0, 1, 1], [], []>} : vector<128x32xbf16>, vector<32x64xbf16>, vector<128x64xf32> -> vector<128x64xf32>
    %50 = arith.addf %44, %49 : vector<128x64xf32>
    %51 = vector.extract_strided_slice %0 {offsets = [0, 0, 2, 1, 0], sizes = [1, 1, 16, 8, 32], strides = [1, 1, 1, 1, 1]} : vector<1x2x18x9x32xbf16> to vector<1x1x16x8x32xbf16>
    %52 = vector.shape_cast %51 : vector<1x1x16x8x32xbf16> to vector<1x16x8x32xbf16>
    %53 = vector.shape_cast %52 : vector<1x16x8x32xbf16> to vector<128x32xbf16>
    %54 = vector.extract_strided_slice %1 {offsets = [256, 0], sizes = [32, 64], strides = [1, 1]} : vector<288x64xbf16> to vector<32x64xbf16>
    %cst_14 = arith.constant dense<0.000000e+00> : vector<128x64xf32>
    %55 = tpu.matmul %53, %54, %cst_14 {dimension_numbers = #tpu.dot_dimension_numbers<[1], [0], [0], [1], [0, 0, 1, 1], [], []>} : vector<128x32xbf16>, vector<32x64xbf16>, vector<128x64xf32> -> vector<128x64xf32>
    %56 = arith.addf %50, %55 : vector<128x64xf32>
    %cst_15 = arith.constant 0.000000e+00 : f32
    %57 = vector.broadcast %cst_15 : f32 to vector<128x64xf32>
    %58 = vector.extract_strided_slice %0 {offsets = [0, 1, 0, 0, 0], sizes = [1, 1, 16, 8, 32], strides = [1, 1, 1, 1, 1]} : vector<1x2x18x9x32xbf16> to vector<1x1x16x8x32xbf16>
    %59 = vector.shape_cast %58 : vector<1x1x16x8x32xbf16> to vector<1x16x8x32xbf16>
    %60 = vector.shape_cast %59 : vector<1x16x8x32xbf16> to vector<128x32xbf16>
    %61 = vector.extract_strided_slice %1 {offsets = [0, 0], sizes = [32, 64], strides = [1, 1]} : vector<288x64xbf16> to vector<32x64xbf16>
    %cst_16 = arith.constant dense<0.000000e+00> : vector<128x64xf32>
    %62 = tpu.matmul %60, %61, %cst_16 {dimension_numbers = #tpu.dot_dimension_numbers<[1], [0], [0], [1], [0, 0, 1, 1], [], []>} : vector<128x32xbf16>, vector<32x64xbf16>, vector<128x64xf32> -> vector<128x64xf32>
    %63 = arith.addf %57, %62 : vector<128x64xf32>
    %64 = vector.extract_strided_slice %0 {offsets = [0, 0, 0, 1, 0], sizes = [1, 1, 16, 8, 32], strides = [1, 1, 1, 1, 1]} : vector<1x2x18x9x32xbf16> to vector<1x1x16x8x32xbf16>
    %65 = vector.shape_cast %64 : vector<1x1x16x8x32xbf16> to vector<1x16x8x32xbf16>
    %66 = vector.shape_cast %65 : vector<1x16x8x32xbf16> to vector<128x32xbf16>
    %67 = vector.extract_strided_slice %1 {offsets = [32, 0], sizes = [32, 64], strides = [1, 1]} : vector<288x64xbf16> to vector<32x64xbf16>
    %cst_17 = arith.constant dense<0.000000e+00> : vector<128x64xf32>
    %68 = tpu.matmul %66, %67, %cst_17 {dimension_numbers = #tpu.dot_dimension_numbers<[1], [0], [0], [1], [0, 0, 1, 1], [], []>} : vector<128x32xbf16>, vector<32x64xbf16>, vector<128x64xf32> -> vector<128x64xf32>
    %69 = arith.addf %63, %68 : vector<128x64xf32>
    %70 = vector.extract_strided_slice %0 {offsets = [0, 1, 0, 1, 0], sizes = [1, 1, 16, 8, 32], strides = [1, 1, 1, 1, 1]} : vector<1x2x18x9x32xbf16> to vector<1x1x16x8x32xbf16>
    %71 = vector.shape_cast %70 : vector<1x1x16x8x32xbf16> to vector<1x16x8x32xbf16>
    %72 = vector.shape_cast %71 : vector<1x16x8x32xbf16> to vector<128x32xbf16>
    %73 = vector.extract_strided_slice %1 {offsets = [64, 0], sizes = [32, 64], strides = [1, 1]} : vector<288x64xbf16> to vector<32x64xbf16>
    %cst_18 = arith.constant dense<0.000000e+00> : vector<128x64xf32>
    %74 = tpu.matmul %72, %73, %cst_18 {dimension_numbers = #tpu.dot_dimension_numbers<[1], [0], [0], [1], [0, 0, 1, 1], [], []>} : vector<128x32xbf16>, vector<32x64xbf16>, vector<128x64xf32> -> vector<128x64xf32>
    %75 = arith.addf %69, %74 : vector<128x64xf32>
    %76 = vector.extract_strided_slice %0 {offsets = [0, 1, 1, 0, 0], sizes = [1, 1, 16, 8, 32], strides = [1, 1, 1, 1, 1]} : vector<1x2x18x9x32xbf16> to vector<1x1x16x8x32xbf16>
    %77 = vector.shape_cast %76 : vector<1x1x16x8x32xbf16> to vector<1x16x8x32xbf16>
    %78 = vector.shape_cast %77 : vector<1x16x8x32xbf16> to vector<128x32xbf16>
    %79 = vector.extract_strided_slice %1 {offsets = [96, 0], sizes = [32, 64], strides = [1, 1]} : vector<288x64xbf16> to vector<32x64xbf16>
    %cst_19 = arith.constant dense<0.000000e+00> : vector<128x64xf32>
    %80 = tpu.matmul %78, %79, %cst_19 {dimension_numbers = #tpu.dot_dimension_numbers<[1], [0], [0], [1], [0, 0, 1, 1], [], []>} : vector<128x32xbf16>, vector<32x64xbf16>, vector<128x64xf32> -> vector<128x64xf32>
    %81 = arith.addf %75, %80 : vector<128x64xf32>
    %82 = vector.extract_strided_slice %0 {offsets = [0, 0, 1, 1, 0], sizes = [1, 1, 16, 8, 32], strides = [1, 1, 1, 1, 1]} : vector<1x2x18x9x32xbf16> to vector<1x1x16x8x32xbf16>
    %83 = vector.shape_cast %82 : vector<1x1x16x8x32xbf16> to vector<1x16x8x32xbf16>
    %84 = vector.shape_cast %83 : vector<1x16x8x32xbf16> to vector<128x32xbf16>
    %85 = vector.extract_strided_slice %1 {offsets = [128, 0], sizes = [32, 64], strides = [1, 1]} : vector<288x64xbf16> to vector<32x64xbf16>
    %cst_20 = arith.constant dense<0.000000e+00> : vector<128x64xf32>
    %86 = tpu.matmul %84, %85, %cst_20 {dimension_numbers = #tpu.dot_dimension_numbers<[1], [0], [0], [1], [0, 0, 1, 1], [], []>} : vector<128x32xbf16>, vector<32x64xbf16>, vector<128x64xf32> -> vector<128x64xf32>
    %87 = arith.addf %81, %86 : vector<128x64xf32>
    %88 = vector.extract_strided_slice %0 {offsets = [0, 1, 1, 1, 0], sizes = [1, 1, 16, 8, 32], strides = [1, 1, 1, 1, 1]} : vector<1x2x18x9x32xbf16> to vector<1x1x16x8x32xbf16>
    %89 = vector.shape_cast %88 : vector<1x1x16x8x32xbf16> to vector<1x16x8x32xbf16>
    %90 = vector.shape_cast %89 : vector<1x16x8x32xbf16> to vector<128x32xbf16>
    %91 = vector.extract_strided_slice %1 {offsets = [160, 0], sizes = [32, 64], strides = [1, 1]} : vector<288x64xbf16> to vector<32x64xbf16>
    %cst_21 = arith.constant dense<0.000000e+00> : vector<128x64xf32>
    %92 = tpu.matmul %90, %91, %cst_21 {dimension_numbers = #tpu.dot_dimension_numbers<[1], [0], [0], [1], [0, 0, 1, 1], [], []>} : vector<128x32xbf16>, vector<32x64xbf16>, vector<128x64xf32> -> vector<128x64xf32>
    %93 = arith.addf %87, %92 : vector<128x64xf32>
    %94 = vector.extract_strided_slice %0 {offsets = [0, 1, 2, 0, 0], sizes = [1, 1, 16, 8, 32], strides = [1, 1, 1, 1, 1]} : vector<1x2x18x9x32xbf16> to vector<1x1x16x8x32xbf16>
    %95 = vector.shape_cast %94 : vector<1x1x16x8x32xbf16> to vector<1x16x8x32xbf16>
    %96 = vector.shape_cast %95 : vector<1x16x8x32xbf16> to vector<128x32xbf16>
    %97 = vector.extract_strided_slice %1 {offsets = [192, 0], sizes = [32, 64], strides = [1, 1]} : vector<288x64xbf16> to vector<32x64xbf16>
    %cst_22 = arith.constant dense<0.000000e+00> : vector<128x64xf32>
    %98 = tpu.matmul %96, %97, %cst_22 {dimension_numbers = #tpu.dot_dimension_numbers<[1], [0], [0], [1], [0, 0, 1, 1], [], []>} : vector<128x32xbf16>, vector<32x64xbf16>, vector<128x64xf32> -> vector<128x64xf32>
    %99 = arith.addf %93, %98 : vector<128x64xf32>
    %100 = vector.extract_strided_slice %0 {offsets = [0, 0, 2, 1, 0], sizes = [1, 1, 16, 8, 32], strides = [1, 1, 1, 1, 1]} : vector<1x2x18x9x32xbf16> to vector<1x1x16x8x32xbf16>
    %101 = vector.shape_cast %100 : vector<1x1x16x8x32xbf16> to vector<1x16x8x32xbf16>
    %102 = vector.shape_cast %101 : vector<1x16x8x32xbf16> to vector<128x32xbf16>
    %103 = vector.extract_strided_slice %1 {offsets = [224, 0], sizes = [32, 64], strides = [1, 1]} : vector<288x64xbf16> to vector<32x64xbf16>
    %cst_23 = arith.constant dense<0.000000e+00> : vector<128x64xf32>
    %104 = tpu.matmul %102, %103, %cst_23 {dimension_numbers = #tpu.dot_dimension_numbers<[1], [0], [0], [1], [0, 0, 1, 1], [], []>} : vector<128x32xbf16>, vector<32x64xbf16>, vector<128x64xf32> -> vector<128x64xf32>
    %105 = arith.addf %99, %104 : vector<128x64xf32>
    %106 = vector.extract_strided_slice %0 {offsets = [0, 1, 2, 1, 0], sizes = [1, 1, 16, 8, 32], strides = [1, 1, 1, 1, 1]} : vector<1x2x18x9x32xbf16> to vector<1x1x16x8x32xbf16>
    %107 = vector.shape_cast %106 : vector<1x1x16x8x32xbf16> to vector<1x16x8x32xbf16>
    %108 = vector.shape_cast %107 : vector<1x16x8x32xbf16> to vector<128x32xbf16>
    %109 = vector.extract_strided_slice %1 {offsets = [256, 0], sizes = [32, 64], strides = [1, 1]} : vector<288x64xbf16> to vector<32x64xbf16>
    %cst_24 = arith.constant dense<0.000000e+00> : vector<128x64xf32>
    %110 = tpu.matmul %108, %109, %cst_24 {dimension_numbers = #tpu.dot_dimension_numbers<[1], [0], [0], [1], [0, 0, 1, 1], [], []>} : vector<128x32xbf16>, vector<32x64xbf16>, vector<128x64xf32> -> vector<128x64xf32>
    %111 = arith.addf %105, %110 : vector<128x64xf32>
    %112 = arith.maximumf %56, %111 : vector<128x64xf32>
    %113 = vector.shape_cast %112 : vector<128x64xf32> to vector<1x8x2x8x64xf32>
    %114 = vector.extract_strided_slice %113 {offsets = [0, 0, 0, 0, 0], sizes = [1, 8, 1, 8, 64], strides = [1, 1, 1, 1, 1]} : vector<1x8x2x8x64xf32> to vector<1x8x1x8x64xf32>
    %115 = vector.shape_cast %114 : vector<1x8x1x8x64xf32> to vector<1x8x8x64xf32>
    %116 = vector.extract_strided_slice %113 {offsets = [0, 0, 1, 0, 0], sizes = [1, 8, 1, 8, 64], strides = [1, 1, 1, 1, 1]} : vector<1x8x2x8x64xf32> to vector<1x8x1x8x64xf32>
    %117 = vector.shape_cast %116 : vector<1x8x1x8x64xf32> to vector<1x8x8x64xf32>
    %118 = arith.maximumf %115, %117 : vector<1x8x8x64xf32>
    %119 = vector.shape_cast %118 : vector<1x8x8x64xf32> to vector<1x64x64xf32>
    %c0_25 = arith.constant 0 : index
    %c0_26 = arith.constant 0 : index
    %120 = vector.load %arg3[%c0_25, %c0_26] : memref<1x64xf32, #tpu.memory_space<vmem>>, vector<1x64xf32>
    %121 = vector.shape_cast %120 : vector<1x64xf32> to vector<1x1x64xf32>
    %122 = vector.broadcast %121 : vector<1x1x64xf32> to vector<1x64x64xf32>
    %123 = arith.addf %119, %122 : vector<1x64x64xf32>
    %cst_27 = arith.constant 0.000000e+00 : f32
    %124 = vector.broadcast %cst_27 : f32 to vector<1x64x64xf32>
    %125 = arith.maximumf %123, %124 : vector<1x64x64xf32>
    %126 = arith.truncf %125 : vector<1x64x64xf32> to vector<1x64x64xbf16>
    %c0_28 = arith.constant 0 : index
    %c0_29 = arith.constant 0 : index
    %c0_30 = arith.constant 0 : index
    %127 = vector.load %arg4[%c0_28, %c0_29, %c0_30] : memref<1x64x64xbf16, #tpu.memory_space<vmem>>, vector<1x64x64xbf16>
    tpu.vector_store %arg4[%c0_28, %c0_29, %c0_30], %126 {strides = array<i32>} : memref<1x64x64xbf16, #tpu.memory_space<vmem>>, vector<1x64x64xbf16>,
    return
  }
  func.func @transform_0(%arg0: i32) -> (i32, i32, i32, i32, i32) {
    %c0_i32 = arith.constant 0 : i32
    %c0_i32_0 = arith.constant 0 : i32
    %c0_i32_1 = arith.constant 0 : i32
    %c0_i32_2 = arith.constant 0 : i32
    %c0_i32_3 = arith.constant 0 : i32
    return %arg0, %c0_i32, %c0_i32_0, %c0_i32_1, %c0_i32_2 : i32, i32, i32, i32, i32
  }
  func.func @transform_1(%arg0: i32) -> (i32, i32) {
    %c0_i32 = arith.constant 0 : i32
    %c0_i32_0 = arith.constant 0 : i32
    %c0_i32_1 = arith.constant 0 : i32
    return %c0_i32, %c0_i32_0 : i32, i32
  }
  func.func @transform_2(%arg0: i32) -> (i32, i32) {
    %c0_i32 = arith.constant 0 : i32
    %c0_i32_0 = arith.constant 0 : i32
    %c0_i32_1 = arith.constant 0 : i32
    return %c0_i32, %c0_i32_0 : i32, i32
  }
  func.func @transform_3(%arg0: i32) -> (i32, i32, i32) {
    %c0_i32 = arith.constant 0 : i32
    %c0_i32_0 = arith.constant 0 : i32
    %c0_i32_1 = arith.constant 0 : i32
    return %arg0, %c0_i32, %c0_i32_0 : i32, i32, i32
  }
}

module attributes {stable_mosaic.version = 11 : i64} {
  func.func @_mlp_kernel(%arg0: i32, %arg1: memref<8x4096xbf16, #tpu.memory_space<vmem>>, %arg2: memref<4096x128xbf16, #tpu.memory_space<vmem>>, %arg3: memref<1x128xf32, #tpu.memory_space<vmem>>, %arg4: memref<128x128xbf16, #tpu.memory_space<vmem>>, %arg5: memref<1x128xf32, #tpu.memory_space<vmem>>, %arg6: memref<8x128xf32, #tpu.memory_space<vmem>>) attributes {dimension_semantics = [#tpu.dimension_semantics<parallel>], iteration_bounds = array<i64: 2>, scalar_prefetch = 0 : i64, scratch_operands = 0 : i64, tpu.core_type = #tpu.core_type<tc>, window_params = [{transform_indices = @transform_0, window_bounds = array<i64: 8, 4096>}, {pipeline_mode = #tpu.pipeline_mode<synchronous>, transform_indices = @transform_1, window_bounds = array<i64: 4096, 128>}, {pipeline_mode = #tpu.pipeline_mode<synchronous>, transform_indices = @transform_2, window_bounds = array<i64: 1, 128>}, {pipeline_mode = #tpu.pipeline_mode<synchronous>, transform_indices = @transform_3, window_bounds = array<i64: 128, 128>}, {pipeline_mode = #tpu.pipeline_mode<synchronous>, transform_indices = @transform_4, window_bounds = array<i64: 1, 128>}, {transform_indices = @transform_5, window_bounds = array<i64: 8, 128>}]} {
    %c0 = arith.constant 0 : index
    %c0_0 = arith.constant 0 : index
    %0 = vector.load %arg1[%c0, %c0_0] : memref<8x4096xbf16, #tpu.memory_space<vmem>>, vector<8x4096xbf16>
    %c0_1 = arith.constant 0 : index
    %c0_2 = arith.constant 0 : index
    %1 = vector.load %arg2[%c0_1, %c0_2] : memref<4096x128xbf16, #tpu.memory_space<vmem>>, vector<4096x128xbf16>
    %cst = arith.constant dense<0.000000e+00> : vector<8x128xf32>
    %2 = tpu.matmul %0, %1, %cst {dimension_numbers = #tpu.dot_dimension_numbers<[1], [0], [0], [1], [0, 0, 1, 1], [], []>} : vector<8x4096xbf16>, vector<4096x128xbf16>, vector<8x128xf32> -> vector<8x128xf32>
    %c0_3 = arith.constant 0 : index
    %c0_4 = arith.constant 0 : index
    %3 = vector.load %arg3[%c0_3, %c0_4] : memref<1x128xf32, #tpu.memory_space<vmem>>, vector<1x128xf32>
    %4 = vector.broadcast %3 : vector<1x128xf32> to vector<8x128xf32>
    %5 = arith.addf %2, %4 : vector<8x128xf32>
    %cst_5 = arith.constant 0.000000e+00 : f32
    %6 = vector.broadcast %cst_5 : f32 to vector<8x128xf32>
    %7 = arith.maximumf %5, %6 : vector<8x128xf32>
    %8 = arith.truncf %7 : vector<8x128xf32> to vector<8x128xbf16>
    %c0_6 = arith.constant 0 : index
    %c0_7 = arith.constant 0 : index
    %9 = vector.load %arg4[%c0_6, %c0_7] : memref<128x128xbf16, #tpu.memory_space<vmem>>, vector<128x128xbf16>
    %cst_8 = arith.constant dense<0.000000e+00> : vector<8x128xf32>
    %10 = tpu.matmul %8, %9, %cst_8 {dimension_numbers = #tpu.dot_dimension_numbers<[1], [0], [0], [1], [0, 0, 1, 1], [], []>} : vector<8x128xbf16>, vector<128x128xbf16>, vector<8x128xf32> -> vector<8x128xf32>
    %c0_9 = arith.constant 0 : index
    %c0_10 = arith.constant 0 : index
    %11 = vector.load %arg5[%c0_9, %c0_10] : memref<1x128xf32, #tpu.memory_space<vmem>>, vector<1x128xf32>
    %12 = vector.broadcast %11 : vector<1x128xf32> to vector<8x128xf32>
    %13 = arith.addf %10, %12 : vector<8x128xf32>
    %c0_11 = arith.constant 0 : index
    %c0_12 = arith.constant 0 : index
    %14 = vector.load %arg6[%c0_11, %c0_12] : memref<8x128xf32, #tpu.memory_space<vmem>>, vector<8x128xf32>
    tpu.vector_store %arg6[%c0_11, %c0_12], %13 {strides = array<i32>} : memref<8x128xf32, #tpu.memory_space<vmem>>, vector<8x128xf32>,
    return
  }
  func.func @transform_0(%arg0: i32) -> (i32, i32) {
    %c0_i32 = arith.constant 0 : i32
    %c0_i32_0 = arith.constant 0 : i32
    return %arg0, %c0_i32 : i32, i32
  }
  func.func @transform_1(%arg0: i32) -> (i32, i32) {
    %c0_i32 = arith.constant 0 : i32
    %c0_i32_0 = arith.constant 0 : i32
    %c0_i32_1 = arith.constant 0 : i32
    return %c0_i32, %c0_i32_0 : i32, i32
  }
  func.func @transform_2(%arg0: i32) -> (i32, i32) {
    %c0_i32 = arith.constant 0 : i32
    %c0_i32_0 = arith.constant 0 : i32
    %c0_i32_1 = arith.constant 0 : i32
    return %c0_i32, %c0_i32_0 : i32, i32
  }
  func.func @transform_3(%arg0: i32) -> (i32, i32) {
    %c0_i32 = arith.constant 0 : i32
    %c0_i32_0 = arith.constant 0 : i32
    %c0_i32_1 = arith.constant 0 : i32
    return %c0_i32, %c0_i32_0 : i32, i32
  }
  func.func @transform_4(%arg0: i32) -> (i32, i32) {
    %c0_i32 = arith.constant 0 : i32
    %c0_i32_0 = arith.constant 0 : i32
    %c0_i32_1 = arith.constant 0 : i32
    return %c0_i32, %c0_i32_0 : i32, i32
  }
  func.func @transform_5(%arg0: i32) -> (i32, i32) {
    %c0_i32 = arith.constant 0 : i32
    %c0_i32_0 = arith.constant 0 : i32
    return %arg0, %c0_i32 : i32, i32
  }
}

</mosaic_0001>

<bundles_post_ra>
// kernel: simple_cnn_forward.3
= control target key start
LH: loop header
LB: loop body
LE: loop exit
PB: predicated region body
PF: predicated region fallthrough
CT: control target
= control target key end

     0   :  { %s2277_s12 = smov 0   ;;  %s2729_s0 = inlined_call_operand.vmem [shape: bf16[2,4,256,27], index: 0, kind: input, shape index: {}]   ;;  %s2730_s1 = inlined_call_operand.vmem [shape: bf16[27,32], index: 1, kind: input, shape index: {}]   ;;  %s2731_s2 = inlined_call_operand.vmem [shape: f32[1,32], index: 2, kind: input, shape index: {}]   ;;  %s2732_s3 = inlined_call_operand.vmem [shape: bf16[2,256,32], index: 3, kind: output, shape index: {}]  }
   0x1 LB: > { %s1763_s13 = sadd.s32 4294967295, %s2254_s12   ;;  %p1767_p0 = scmp.ge.s32.totalorder %s2254_s12, 1  ;;  %s2254_s12 = sphi %s2277_s12, %s13_s12  }
   0x2   : > { %p137_p1 = scmp.lt.s32.totalorder %s2254_s12, 3 }
   0x4   : > { %p138_p2 = pnand %p1767_p0, %p137_p1 }
   0x6   : > { %141 = sbr.rel (%p138_p2) target bundleno = 354 (0x162), region = 32 }
   0xb   : > { %v2182_v0 = vld [vmem:[%s2730_s1 + $0x8] sm:$0x3f]   ;;  %vm828_vm0 = vcmask 1044480   ;;  %vm829_vm1 = vcmask 1045504   ;;  %v2256_v1 = vmov 65535   ;;  %p161_p3 = scmp.lt.s32.totalorder %s1763_s13, 1 }
   0xc   : > { %v830_v2 = vsel %vm828_vm0, 4294967295, %v2256_v1  ;;  %v2183_v5 = vld [vmem:[%s2730_s1] sm:$0xff]   ;;  %vm635_vm2 = vcmask 220160   ;;  %vm1675_vm3 = vcmask 257024  }
   0xd   : > { %v831_v3 = vsel %vm829_vm1, %v830_v2, 0  ;;  %s2766_s13 = smov (!%p161_p3, %s1763_s13), 1 }
   0xe   : > { %v833_v4 = vand.u32 %v2182_v0, %v831_v3  ;;  %s1937_s18 = sshll.u32 %s2766_s13, 9  ;;  %s1938_s24 = sshll.u32 %s2766_s13, 7 }
   0xf   : > { %s2297_s21 = scalar_lea.vmem %s2729_s0, %s1937_s18  ;;  %s2573_s27 = scalar_lea.vmem %s2732_s3, %s1938_s24 }
  0x10   : > { %2037 = vmatprep.subr.bf16.mxu0 %v833_v4  ;;  %2169 = vmatprep.subr.bf16.mxu1 %v833_v4  ;;  %v2184_v6 = vld [vmem:[%s2297_s21] sm:$0xff]   ;;  %v2186_v8 = vld [vmem:[%s2297_s21 + $0x8] sm:$0xff]   ;;  %v2188_v10 = vld [vmem:[%s2297_s21 + $0x10] sm:$0xff]  }
  0x11   : > { %2038 = vmatpush3.bf16.msra.mxu0 %v833_v4  ;;  %2171 = vmatpush3.bf16.msra.mxu1 %v833_v4  ;;  %v2185_v7 = vld [vmem:[%s2297_s21 + $0x100] sm:$0xff]   ;;  %v2187_v9 = vld [vmem:[%s2297_s21 + $0x108] sm:$0xff]   ;;  %v2189_v11 = vld [vmem:[%s2297_s21 + $0x110] sm:$0xff]  }
  0x12   : > { %2039 = vmatprep.subr.bf16.mxu0 %v2183_v5  ;;  %2170 = vmatprep.subr.bf16.mxu1 %v2183_v5  ;;  %v2190_v12 = vld [vmem:[%s2297_s21 + $0x18] sm:$0xff]   ;;  %v2192_v14 = vld [vmem:[%s2297_s21 + $0x20] sm:$0xff]   ;;  %v2194_v16 = vld [vmem:[%s2297_s21 + $0x28] sm:$0xff]  }
  0x13   : > { %2041 = vmatprep.mubr.msk.bf16.mxu0 %vm635_vm2, %v2184_v6  ;;  %2105 = vmatprep.mubr.msk.bf16.mxu1 %vm635_vm2, %v2185_v7  ;;  %v2191_v13 = vld [vmem:[%s2297_s21 + $0x118] sm:$0xff]   ;;  %v2193_v15 = vld [vmem:[%s2297_s21 + $0x120] sm:$0xff]   ;;  %v2195_v17 = vld [vmem:[%s2297_s21 + $0x128] sm:$0xff]  }
  0x14   : > { %v2196_v18 = vld [vmem:[%s2297_s21 + $0x30] sm:$0xff]   ;;  %v2198_v20 = vld [vmem:[%s2297_s21 + $0x38] sm:$0xff]   ;;  %v2200_v22 = vld [vmem:[%s2297_s21 + $0x40] sm:$0xff]  }
  0x15   : > { %2040 = vmatpush3.bf16.msra.mxu0 %v2183_v5  ;;  %2172 = vmatpush3.bf16.msra.mxu1 %v2183_v5  ;;  %v2197_v19 = vld [vmem:[%s2297_s21 + $0x130] sm:$0xff]   ;;  %v2199_v21 = vld [vmem:[%s2297_s21 + $0x138] sm:$0xff]   ;;  %v2201_v23 = vld [vmem:[%s2297_s21 + $0x140] sm:$0xff]  }
  0x16   : > { %v2202_v24 = vld [vmem:[%s2297_s21 + $0x48] sm:$0xff]   ;;  %v2204_v26 = vld [vmem:[%s2297_s21 + $0x50] sm:$0xff]   ;;  %v2206_v28 = vld [vmem:[%s2297_s21 + $0x58] sm:$0xff]  }
  0x17   : > { %v2203_v25 = vld [vmem:[%s2297_s21 + $0x148] sm:$0xff]   ;;  %v2205_v27 = vld [vmem:[%s2297_s21 + $0x150] sm:$0xff]   ;;  %v2207_v29 = vld [vmem:[%s2297_s21 + $0x158] sm:$0xff]  }
  0x18   : > { %2042 = vmatmul.mubr.msk.bf16.vlgmr.msra.gmra.mxu0 %vm635_vm2, %v2186_v8  ;;  %2106 = vmatmul.mubr.msk.bf16.vlgmr.msra.gmra.mxu1 %vm635_vm2, %v2187_v9  ;;  %v2208_v30 = vld [vmem:[%s2297_s21 + $0x60] sm:$0xff]   ;;  %v2210_v32 = vld [vmem:[%s2297_s21 + $0x68] sm:$0xff]   ;;  %v2212_v34 = vld [vmem:[%s2297_s21 + $0x70] sm:$0xff]  }
  0x19   : > { %2045 = vmatprep.mubr.msk.bf16.mxu0 %vm635_vm2, %v2188_v10  ;;  %2109 = vmatprep.mubr.msk.bf16.mxu1 %vm635_vm2, %v2189_v11  ;;  %v2209_v31 = vld [vmem:[%s2297_s21 + $0x160] sm:$0xff]   ;;  %v2211_v33 = vld [vmem:[%s2297_s21 + $0x168] sm:$0xff]   ;;  %v2213_v35 = vld [vmem:[%s2297_s21 + $0x170] sm:$0xff]  }
  0x1a   : > { %v2214_v36 = vld [vmem:[%s2297_s21 + $0x78] sm:$0xff]   ;;  %v2216_v38 = vld [vmem:[%s2297_s21 + $0x80] sm:$0xff]   ;;  %v2218_v40 = vld [vmem:[%s2297_s21 + $0x88] sm:$0xff]  }
  0x1b   : > { %v2215_v37 = vld [vmem:[%s2297_s21 + $0x178] sm:$0xff]   ;;  %v2217_v39 = vld [vmem:[%s2297_s21 + $0x180] sm:$0xff]   ;;  %v2219_v41 = vld [vmem:[%s2297_s21 + $0x188] sm:$0xff]  }
  0x1c   : > { %v2220_v42 = vld [vmem:[%s2297_s21 + $0x90] sm:$0xff]   ;;  %v2222_v44 = vld [vmem:[%s2297_s21 + $0x98] sm:$0xff]   ;;  %v2224_v46 = vld [vmem:[%s2297_s21 + $0xa0] sm:$0xff]  }
  0x1d   : > { %v2221_v43 = vld [vmem:[%s2297_s21 + $0x190] sm:$0xff]   ;;  %v2223_v45 = vld [vmem:[%s2297_s21 + $0x198] sm:$0xff]   ;;  %v2225_v47 = vld [vmem:[%s2297_s21 + $0x1a0] sm:$0xff]  }
  0x1e   : > { %v2226_v48 = vld [vmem:[%s2297_s21 + $0xa8] sm:$0xff]   ;;  %v2228_v50 = vld [vmem:[%s2297_s21 + $0xb0] sm:$0xff]   ;;  %v2230_v52 = vld [vmem:[%s2297_s21 + $0xb8] sm:$0xff]  }
  0x1f   : > { %v2227_v49 = vld [vmem:[%s2297_s21 + $0x1a8] sm:$0xff]   ;;  %v2229_v51 = vld [vmem:[%s2297_s21 + $0x1b0] sm:$0xff]   ;;  %v2231_v53 = vld [vmem:[%s2297_s21 + $0x1b8] sm:$0xff]  }
  0x20   : > { %2046 = vmatmul.mubr.msk.bf16.gmra.mxu0 %vm635_vm2, %v2190_v12  ;;  %2110 = vmatmul.mubr.msk.bf16.gmra.mxu1 %vm635_vm2, %v2191_v13  ;;  %v2232_v54 = vld [vmem:[%s2297_s21 + $0xc0] sm:$0xff]   ;;  %v2234_v56 = vld [vmem:[%s2297_s21 + $0xc8] sm:$0xff]   ;;  %v2236_v58 = vld [vmem:[%s2297_s21 + $0xd0] sm:$0xff]  }
  0x21   : > { %2049 = vmatprep.mubr.msk.bf16.mxu0 %vm635_vm2, %v2192_v14  ;;  %2113 = vmatprep.mubr.msk.bf16.mxu1 %vm635_vm2, %v2193_v15  ;;  %v2233_v55 = vld [vmem:[%s2297_s21 + $0x1c0] sm:$0xff]   ;;  %v2235_v57 = vld [vmem:[%s2297_s21 + $0x1c8] sm:$0xff]   ;;  %v2237_v59 = vld [vmem:[%s2297_s21 + $0x1d0] sm:$0xff]  }
  0x22   : > { %v2238_v60 = vld [vmem:[%s2297_s21 + $0xd8] sm:$0xff]   ;;  %v2240_v62 = vld [vmem:[%s2297_s21 + $0xe0] sm:$0xff]   ;;  %v2242_v0 = vld [vmem:[%s2297_s21 + $0xe8] sm:$0xff]  }
  0x23   : > { %v2239_v61 = vld [vmem:[%s2297_s21 + $0x1d8] sm:$0xff]   ;;  %v2241_v63 = vld [vmem:[%s2297_s21 + $0x1e0] sm:$0xff]   ;;  %v2243_v1 = vld [vmem:[%s2297_s21 + $0x1e8] sm:$0xff]  }
  0x24   : > { %v2244_v2 = vld [vmem:[%s2297_s21 + $0xf0] sm:$0xff]   ;;  %v2246_v4 = vld [vmem:[%s2297_s21 + $0xf8] sm:$0xff]  }
  0x25   : > { %v2245_v3 = vld [vmem:[%s2297_s21 + $0x1f0] sm:$0xff]   ;;  %v2247_v5 = vld [vmem:[%s2297_s21 + $0x1f8] sm:$0xff]  }
  0x28   : > { %2050 = vmatmul.mubr.msk.bf16.gmra.mxu0 %vm635_vm2, %v2194_v16  ;;  %2114 = vmatmul.mubr.msk.bf16.gmra.mxu1 %vm635_vm2, %v2195_v17 }
  0x29   : > { %2053 = vmatprep.mubr.msk.bf16.mxu0 %vm635_vm2, %v2196_v18  ;;  %2117 = vmatprep.mubr.msk.bf16.mxu1 %vm635_vm2, %v2197_v19 }
  0x30   : > { %2054 = vmatmul.mubr.msk.bf16.gmra.mxu0 %vm635_vm2, %v2198_v20  ;;  %2118 = vmatmul.mubr.msk.bf16.gmra.mxu1 %vm635_vm2, %v2199_v21 }
  0x31   : > { %2057 = vmatprep.mubr.msk.bf16.mxu0 %vm635_vm2, %v2200_v22  ;;  %2121 = vmatprep.mubr.msk.bf16.mxu1 %vm635_vm2, %v2201_v23 }
  0x38   : > { %2058 = vmatmul.mubr.msk.bf16.gmra.mxu0 %vm635_vm2, %v2202_v24  ;;  %2122 = vmatmul.mubr.msk.bf16.gmra.mxu1 %vm635_vm2, %v2203_v25 }
  0x39   : > { %2061 = vmatprep.mubr.msk.bf16.mxu0 %vm635_vm2, %v2204_v26  ;;  %2125 = vmatprep.mubr.msk.bf16.mxu1 %vm635_vm2, %v2205_v27 }
  0x40   : > { %2062 = vmatmul.mubr.msk.bf16.gmra.mxu0 %vm635_vm2, %v2206_v28  ;;  %2126 = vmatmul.mubr.msk.bf16.gmra.mxu1 %vm635_vm2, %v2207_v29 }
  0x41   : > { %2065 = vmatprep.mubr.msk.bf16.mxu0 %vm635_vm2, %v2208_v30  ;;  %2129 = vmatprep.mubr.msk.bf16.mxu1 %vm635_vm2, %v2209_v31 }
  0x48   : > { %2066 = vmatmul.mubr.msk.bf16.gmra.mxu0 %vm635_vm2, %v2210_v32  ;;  %2130 = vmatmul.mubr.msk.bf16.gmra.mxu1 %vm635_vm2, %v2211_v33 }
  0x49   : > { %2069 = vmatprep.mubr.msk.bf16.mxu0 %vm635_vm2, %v2212_v34  ;;  %2133 = vmatprep.mubr.msk.bf16.mxu1 %vm635_vm2, %v2213_v35 }
  0x50   : > { %2070 = vmatmul.mubr.msk.bf16.gmra.mxu0 %vm635_vm2, %v2214_v36  ;;  %2134 = vmatmul.mubr.msk.bf16.gmra.mxu1 %vm635_vm2, %v2215_v37 }
  0x51   : > { %2073 = vmatprep.mubr.msk.bf16.mxu0 %vm635_vm2, %v2216_v38  ;;  %2137 = vmatprep.mubr.msk.bf16.mxu1 %vm635_vm2, %v2217_v39 }
  0x58   : > { %2074 = vmatmul.mubr.msk.bf16.gmra.mxu0 %vm635_vm2, %v2218_v40  ;;  %2138 = vmatmul.mubr.msk.bf16.gmra.mxu1 %vm635_vm2, %v2219_v41 }
  0x59   : > { %2077 = vmatprep.mubr.msk.bf16.mxu0 %vm635_vm2, %v2220_v42  ;;  %2141 = vmatprep.mubr.msk.bf16.mxu1 %vm635_vm2, %v2221_v43 }
  0x60   : > { %2078 = vmatmul.mubr.msk.bf16.gmra.mxu0 %vm635_vm2, %v2222_v44  ;;  %2142 = vmatmul.mubr.msk.bf16.gmra.mxu1 %vm635_vm2, %v2223_v45 }
  0x61   : > { %2081 = vmatprep.mubr.msk.bf16.mxu0 %vm635_vm2, %v2224_v46  ;;  %2145 = vmatprep.mubr.msk.bf16.mxu1 %vm635_vm2, %v2225_v47 }
  0x68   : > { %2082 = vmatmul.mubr.msk.bf16.gmra.mxu0 %vm635_vm2, %v2226_v48  ;;  %2146 = vmatmul.mubr.msk.bf16.gmra.mxu1 %vm635_vm2, %v2227_v49 }
  0x69   : > { %2085 = vmatprep.mubr.msk.bf16.mxu0 %vm635_vm2, %v2228_v50  ;;  %2149 = vmatprep.mubr.msk.bf16.mxu1 %vm635_vm2, %v2229_v51 }
  0x70   : > { %2086 = vmatmul.mubr.msk.bf16.gmra.mxu0 %vm635_vm2, %v2230_v52  ;;  %2150 = vmatmul.mubr.msk.bf16.gmra.mxu1 %vm635_vm2, %v2231_v53 }
  0x71   : > { %2089 = vmatprep.mubr.msk.bf16.mxu0 %vm635_vm2, %v2232_v54  ;;  %2153 = vmatprep.mubr.msk.bf16.mxu1 %vm635_vm2, %v2233_v55 }
  0x78   : > { %2090 = vmatmul.mubr.msk.bf16.gmra.mxu0 %vm635_vm2, %v2234_v56  ;;  %2154 = vmatmul.mubr.msk.bf16.gmra.mxu1 %vm635_vm2, %v2235_v57 }
  0x79   : > { %2093 = vmatprep.mubr.msk.bf16.mxu0 %vm635_vm2, %v2236_v58  ;;  %2157 = vmatprep.mubr.msk.bf16.mxu1 %vm635_vm2, %v2237_v59 }
  0x80   : > { %2094 = vmatmul.mubr.msk.bf16.gmra.mxu0 %vm635_vm2, %v2238_v60  ;;  %2158 = vmatmul.mubr.msk.bf16.gmra.mxu1 %vm635_vm2, %v2239_v61 }
  0x81   : > { %2097 = vmatprep.mubr.msk.bf16.mxu0 %vm635_vm2, %v2240_v62  ;;  %2161 = vmatprep.mubr.msk.bf16.mxu1 %vm635_vm2, %v2241_v63 }
  0x88   : > { %2098 = vmatmul.mubr.msk.bf16.gmra.mxu0 %vm635_vm2, %v2242_v0  ;;  %2162 = vmatmul.mubr.msk.bf16.gmra.mxu1 %vm635_vm2, %v2243_v1 }
  0x89   : > { %2101 = vmatprep.mubr.msk.bf16.mxu0 %vm635_vm2, %v2244_v2  ;;  %2165 = vmatprep.mubr.msk.bf16.mxu1 %vm635_vm2, %v2245_v3 }
  0x90   : > { %2102 = vmatmul.mubr.msk.bf16.gmra.mxu0 %vm635_vm2, %v2246_v4  ;;  %2166 = vmatmul.mubr.msk.bf16.gmra.mxu1 %vm635_vm2, %v2247_v5 }
  0xd8   : > { %v2427_v6 = vpop.f32.mrf.mxu0  ;;  %v2429_v7 = vpop.f32.mrf.mxu1 }
  0xda   : > { %v2431_v8 = vpop.f32.mrf.mxu0  ;;  %v2433_v9 = vpop.f32.mrf.mxu1 }
  0xdc   : > { %v2435_v10 = vpop.f32.mrf.mxu0  ;;  %v2437_v11 = vpop.f32.mrf.mxu1 }
  0xde   : > { %v2439_v12 = vpop.f32.mrf.mxu0  ;;  %v2441_v13 = vpop.f32.mrf.mxu1 }
  0xe0   : > { %v2443_v14 = vpop.f32.mrf.mxu0  ;;  %v2445_v15 = vpop.f32.mrf.mxu1 }
  0xe2   : > { %v2447_v16 = vpop.f32.mrf.mxu0  ;;  %v2449_v17 = vpop.f32.mrf.mxu1 }
  0xe4   : > { %v2451_v18 = vpop.f32.mrf.mxu0  ;;  %v2453_v19 = vpop.f32.mrf.mxu1 }
  0xe6   : > { %v2455_v20 = vpop.f32.mrf.mxu0  ;;  %v2457_v21 = vpop.f32.mrf.mxu1 }
  0xe8   : > { %v2459_v22 = vpop.f32.mrf.mxu0  ;;  %v2461_v23 = vpop.f32.mrf.mxu1 }
  0xea   : > { %v2463_v24 = vpop.f32.mrf.mxu0  ;;  %v2465_v25 = vpop.f32.mrf.mxu1 }
  0xec   : > { %v2467_v26 = vpop.f32.mrf.mxu0  ;;  %v2469_v27 = vpop.f32.mrf.mxu1 }
  0xee   : > { %v2471_v28 = vpop.f32.mrf.mxu0  ;;  %v2473_v29 = vpop.f32.mrf.mxu1 }
  0xf0   : > { %v2475_v30 = vpop.f32.mrf.mxu0  ;;  %v2477_v31 = vpop.f32.mrf.mxu1 }
  0xf2   : > { %v2479_v32 = vpop.f32.mrf.mxu0  ;;  %v2481_v33 = vpop.f32.mrf.mxu1 }
  0xf4   : > { %v2483_v34 = vpop.f32.mrf.mxu0  ;;  %v2485_v35 = vpop.f32.mrf.mxu1 }
  0xf6   : > { %v2487_v36 = vpop.f32.mrf.mxu0  ;;  %v2489_v37 = vpop.f32.mrf.mxu1 }
  0xf8   : > { %v2491_v38 = vpop.f32.mrf.mxu0  ;;  %v2493_v39 = vpop.f32.mrf.mxu1 }
  0xfa   : > { %v2495_v40 = vpop.f32.mrf.mxu0  ;;  %v2497_v41 = vpop.f32.mrf.mxu1 }
  0xfc   : > { %v2499_v42 = vpop.f32.mrf.mxu0  ;;  %v2501_v43 = vpop.f32.mrf.mxu1 }
  0xfe   : > { %v2503_v44 = vpop.f32.mrf.mxu0  ;;  %v2505_v45 = vpop.f32.mrf.mxu1 }
 0x100   : > { %v2507_v46 = vpop.f32.mrf.mxu0  ;;  %v2509_v47 = vpop.f32.mrf.mxu1 }
 0x102   : > { %v2511_v48 = vpop.f32.mrf.mxu0  ;;  %v2513_v49 = vpop.f32.mrf.mxu1 }
 0x104   : > { %v2515_v50 = vpop.f32.mrf.mxu0  ;;  %v2517_v51 = vpop.f32.mrf.mxu1 }
 0x106   : > { %v2519_v52 = vpop.f32.mrf.mxu0  ;;  %v2521_v53 = vpop.f32.mrf.mxu1 }
 0x108   : > { %v2523_v54 = vpop.f32.mrf.mxu0  ;;  %v2525_v55 = vpop.f32.mrf.mxu1 }
 0x109   : > { %2733 = vst [vmem:[#allocation2_spill] sm:$0xff] %v2523_v54  ;;  %2734 = vst [vmem:[#allocation3_spill] sm:$0xff] %v2525_v55 }
 0x10a   : > { %v2527_v56 = vpop.f32.mrf.mxu0  ;;  %v2529_v57 = vpop.f32.mrf.mxu1 }
 0x10b   : > { %2735 = vst [vmem:[#allocation4_spill] sm:$0xff] %v2527_v56  ;;  %2736 = vst [vmem:[#allocation5_spill] sm:$0xff] %v2529_v57 }
 0x10c   : > { %v2531_v58 = vpop.f32.mrf.mxu0  ;;  %v2533_v59 = vpop.f32.mrf.mxu1 }
 0x10d   : > { %2737 = vst [vmem:[#allocation6_spill] sm:$0xff] %v2531_v58  ;;  %2738 = vst [vmem:[#allocation7_spill] sm:$0xff] %v2533_v59 }
 0x10e   : > { %v2535_v60 = vpop.f32.mrf.mxu0  ;;  %v2537_v61 = vpop.f32.mrf.mxu1 }
 0x10f   : > { %2739 = vst [vmem:[#allocation8_spill] sm:$0xff] %v2535_v60  ;;  %2740 = vst [vmem:[#allocation9_spill] sm:$0xff] %v2537_v61 }
 0x110   : > { %v2539_v62 = vpop.f32.mrf.mxu0  ;;  %v2541_v63 = vpop.f32.mrf.mxu1 }
 0x111   : > { %2741 = vst [vmem:[#allocation10_spill] sm:$0xff] %v2539_v62  ;;  %2742 = vst [vmem:[#allocation11_spill] sm:$0xff] %v2541_v63 }
 0x112   : > { %v2543_v0 = vpop.f32.mrf.mxu0  ;;  %v2545_v1 = vpop.f32.mrf.mxu1 }
 0x113   : > { %2743 = vst [vmem:[#allocation12_spill] sm:$0xff] %v2543_v0  ;;  %2744 = vst [vmem:[#allocation13_spill] sm:$0xff] %v2545_v1  ;;  %v2560_v0 = vld [vmem:[%s2731_s2] ss:$0 sm:$0xff] }
 0x114   : > { %v2547_v2 = vpop.f32.mrf.mxu0  ;;  %v2549_v3 = vpop.f32.mrf.mxu1 }
 0x115   : > { %2745 = vst [vmem:[#allocation14_spill] sm:$0xff] %v2547_v2  ;;  %2746 = vst [vmem:[#allocation15_spill] sm:$0xff] %v2549_v3 }
 0x116   : > { %v2551_v4 = vpop.f32.mrf.mxu0  ;;  %v2553_v5 = vpop.f32.mrf.mxu1 }
 0x117   : > { %2747 = vst [vmem:[#allocation16_spill] sm:$0xff] %v2551_v4  ;;  %2748 = vst [vmem:[#allocation17_spill] sm:$0xff] %v2553_v5 }
 0x118   : > { %v2075_v60 = vpop.f32.mrf.mxu0  ;;  %v2139_v59 = vpop.f32.mrf.mxu1 }
 0x119   : > { %v1382_v61 = vmax.f32 %v2427_v6, %v2075_v60  ;;  %v1414_v62 = vmax.f32 %v2429_v7, %v2139_v59 }
 0x11a   : > { %v997_v1 = vpop.f32.mrf.mxu0  ;;  %v1253_v2 = vpop.f32.mrf.mxu1 }
 0x11b   : > { %v1446_v63 = vmax.f32 %v1382_v61, %v1414_v62  ;;  %v1380_v3 = vmax.f32 %v2431_v8, %v997_v1  ;;  %v1412_v4 = vmax.f32 %v2433_v9, %v1253_v2 }
 0x11c   : > { %v2076_v58 = vpop.f32.mrf.mxu0  ;;  %v2140_v5 = vpop.f32.mrf.mxu1 }
 0x11d   : > { %v1485_v57 = vadd.f32 %v2560_v0, %v1446_v63  ;;  %v1444_v6 = vmax.f32 %v1380_v3, %v1412_v4  ;;  %v1383_v7 = vmax.f32 %v2435_v10, %v2076_v58  ;;  %v1415_v59 = vmax.f32 %v2437_v11, %v2140_v5 }
 0x11e   : > { %v1000_v60 = vpop.f32.mrf.mxu0  ;;  %v1256_v56 = vpop.f32.mrf.mxu1 }
 0x11f   : > { %v1517_v55 = vmax.f32 %v1485_v57, 0.0  ;;  %v1483_v54 = vadd.f32 %v2560_v0, %v1444_v6  ;;  %v1447_v61 = vmax.f32 %v1383_v7, %v1415_v59  ;;  %v1381_v8 = vmax.f32 %v2439_v12, %v1000_v60 }
 0x120   : > { %v1413_v9 = vmax.f32 %v2441_v13, %v1256_v56  ;;  %v2079_v10 = vpop.f32.mrf.mxu0  ;;  %v2143_v58 = vpop.f32.mrf.mxu1 }
 0x121   : > { %v1941_v11 = vpack.c.bf16 %v1517_v55, %v1517_v55  ;;  %v1515_v62 = vmax.f32 %v1483_v54, 0.0  ;;  %v1486_v57 = vadd.f32 %v2560_v0, %v1447_v61  ;;  %v1386_v63 = vmax.f32 %v2443_v14, %v2079_v10 }
 0x122   : > { %v1445_v1 = vmax.f32 %v1381_v8, %v1413_v9  ;;  %v1418_v12 = vmax.f32 %v2445_v15, %v2143_v58  ;;  %v1013_v2 = vpop.f32.mrf.mxu0  ;;  %v1269_v3 = vpop.f32.mrf.mxu1 }
 0x123   : > { %1678 = vst.msk [vmem:[%s2573_s27 + $0x8] sm:$0xf] %vm1675_vm3, %v1941_v11  ;;  %v1939_v4 = vpack.c.bf16 %v1515_v62, %v1515_v62  ;;  %v1518_v5 = vmax.f32 %v1486_v57, 0.0  ;;  %v1384_v13 = vmax.f32 %v2447_v16, %v1013_v2  ;;  %v1416_v55 = vmax.f32 %v2449_v17, %v1269_v3 }
 0x124   : > { %v1484_v54 = vadd.f32 %v2560_v0, %v1445_v1  ;;  %v1450_v56 = vmax.f32 %v1386_v63, %v1418_v12  ;;  %v2080_v6 = vpop.f32.mrf.mxu0  ;;  %v2144_v7 = vpop.f32.mrf.mxu1 }
 0x125   : > { %1676 = vst.msk [vmem:[%s2573_s27] sm:$0xf] %vm1675_vm3, %v1939_v4  ;;  %v1942_v14 = vpack.c.bf16 %v1518_v5, %v1518_v5  ;;  %v1448_v15 = vmax.f32 %v1384_v13, %v1416_v55  ;;  %v1387_v59 = vmax.f32 %v2451_v18, %v2080_v6  ;;  %v1419_v60 = vmax.f32 %v2453_v19, %v2144_v7 }
 0x126   : > { %v1516_v61 = vmax.f32 %v1484_v54, 0.0  ;;  %v1489_v8 = vadd.f32 %v2560_v0, %v1450_v56  ;;  %v1016_v16 = vpop.f32.mrf.mxu0  ;;  %v1272_v9 = vpop.f32.mrf.mxu1 }
 0x127   : > { %1679 = vst.msk [vmem:[%s2573_s27 + $0xc] sm:$0xf] %vm1675_vm3, %v1942_v14  ;;  %v1487_v17 = vadd.f32 %v2560_v0, %v1448_v15  ;;  %v1451_v10 = vmax.f32 %v1387_v59, %v1419_v60  ;;  %v1385_v58 = vmax.f32 %v2455_v20, %v1016_v16  ;;  %v1417_v11 = vmax.f32 %v2457_v21, %v1272_v9 }
 0x128   : > { %v1940_v62 = vpack.c.bf16 %v1516_v61, %v1516_v61  ;;  %v1521_v57 = vmax.f32 %v1489_v8, 0.0  ;;  %v2083_v18 = vpop.f32.mrf.mxu0  ;;  %v2147_v19 = vpop.f32.mrf.mxu1 }
 0x129   : > { %v1519_v63 = vmax.f32 %v1487_v17, 0.0  ;;  %v1490_v1 = vadd.f32 %v2560_v0, %v1451_v10  ;;  %v1449_v12 = vmax.f32 %v1385_v58, %v1417_v11  ;;  %v1390_v2 = vmax.f32 %v2459_v22, %v2083_v18 }
 0x12a   : > { %1677 = vst.msk [vmem:[%s2573_s27 + $0x4] sm:$0xf] %vm1675_vm3, %v1940_v62  ;;  %v1945_v3 = vpack.c.bf16 %v1521_v57, %v1521_v57  ;;  %v1422_v4 = vmax.f32 %v2461_v23, %v2147_v19  ;;  %v1029_v20 = vpop.f32.mrf.mxu0  ;;  %v1285_v5 = vpop.f32.mrf.mxu1 }
 0x12b   : > { %v1943_v21 = vpack.c.bf16 %v1519_v63, %v1519_v63  ;;  %v1522_v13 = vmax.f32 %v1490_v1, 0.0  ;;  %v1488_v55 = vadd.f32 %v2560_v0, %v1449_v12  ;;  %v1388_v54 = vmax.f32 %v2463_v24, %v1029_v20 }
 0x12c   : > { %1682 = vst.msk [vmem:[%s2573_s27 + $0x18] sm:$0xf] %vm1675_vm3, %v1945_v3  ;;  %v1454_v56 = vmax.f32 %v1390_v2, %v1422_v4  ;;  %v1420_v6 = vmax.f32 %v2465_v25, %v1285_v5  ;;  %v2084_v22 = vpop.f32.mrf.mxu0  ;;  %v2148_v7 = vpop.f32.mrf.mxu1 }
 0x12d   : > { %1680 = vst.msk [vmem:[%s2573_s27 + $0x10] sm:$0xf] %vm1675_vm3, %v1943_v21  ;;  %v1946_v14 = vpack.c.bf16 %v1522_v13, %v1522_v13  ;;  %v1520_v23 = vmax.f32 %v1488_v55, 0.0  ;;  %v1391_v15 = vmax.f32 %v2467_v26, %v2084_v22  ;;  %v1423_v59 = vmax.f32 %v2469_v27, %v2148_v7 }
 0x12e   : > { %v1493_v60 = vadd.f32 %v2560_v0, %v1454_v56  ;;  %v1452_v61 = vmax.f32 %v1388_v54, %v1420_v6  ;;  %v1032_v24 = vpop.f32.mrf.mxu0  ;;  %v1288_v8 = vpop.f32.mrf.mxu1 }
 0x12f   : > { %1683 = vst.msk [vmem:[%s2573_s27 + $0x1c] sm:$0xf] %vm1675_vm3, %v1946_v14  ;;  %v1944_v16 = vpack.c.bf16 %v1520_v23, %v1520_v23  ;;  %v1455_v25 = vmax.f32 %v1391_v15, %v1423_v59  ;;  %v1389_v9 = vmax.f32 %v2471_v28, %v1032_v24  ;;  %v1421_v17 = vmax.f32 %v2473_v29, %v1288_v8 }
 0x130   : > { %v1525_v10 = vmax.f32 %v1493_v60, 0.0  ;;  %v1491_v58 = vadd.f32 %v2560_v0, %v1452_v61  ;;  %v2087_v26 = vpop.f32.mrf.mxu0  ;;  %v2151_v11 = vpop.f32.mrf.mxu1 }
 0x131   : > { %1681 = vst.msk [vmem:[%s2573_s27 + $0x14] sm:$0xf] %vm1675_vm3, %v1944_v16  ;;  %v1494_v27 = vadd.f32 %v2560_v0, %v1455_v25  ;;  %v1453_v62 = vmax.f32 %v1389_v9, %v1421_v17  ;;  %v1394_v57 = vmax.f32 %v2475_v30, %v2087_v26  ;;  %v1426_v18 = vmax.f32 %v2477_v31, %v2151_v11 }
 0x132   : > { %v1949_v19 = vpack.c.bf16 %v1525_v10, %v1525_v10  ;;  %v1523_v63 = vmax.f32 %v1491_v58, 0.0  ;;  %v1045_v28 = vpop.f32.mrf.mxu0  ;;  %v1301_v29 = vpop.f32.mrf.mxu1 }
 0x133   : > { %v1526_v1 = vmax.f32 %v1494_v27, 0.0  ;;  %v1492_v12 = vadd.f32 %v2560_v0, %v1453_v62  ;;  %v1458_v2 = vmax.f32 %v1394_v57, %v1426_v18  ;;  %v1392_v3 = vmax.f32 %v2479_v32, %v1045_v28 }
 0x134   : > { %1686 = vst.msk [vmem:[%s2573_s27 + $0x28] sm:$0xf] %vm1675_vm3, %v1949_v19  ;;  %v1947_v4 = vpack.c.bf16 %v1523_v63, %v1523_v63  ;;  %v1424_v20 = vmax.f32 %v2481_v33, %v1301_v29  ;;  %v2088_v30 = vpop.f32.mrf.mxu0  ;;  %v2152_v5 = vpop.f32.mrf.mxu1 }
 0x135   : > { %v1950_v31 = vpack.c.bf16 %v1526_v1, %v1526_v1  ;;  %v1524_v21 = vmax.f32 %v1492_v12, 0.0  ;;  %v1497_v13 = vadd.f32 %v2560_v0, %v1458_v2  ;;  %v1395_v55 = vmax.f32 %v2483_v34, %v2088_v30 }
 0x136   : > { %1684 = vst.msk [vmem:[%s2573_s27 + $0x20] sm:$0xf] %vm1675_vm3, %v1947_v4  ;;  %v1456_v54 = vmax.f32 %v1392_v3, %v1424_v20  ;;  %v1427_v56 = vmax.f32 %v2485_v35, %v2152_v5  ;;  %v1048_v32 = vpop.f32.mrf.mxu0  ;;  %v1304_v6 = vpop.f32.mrf.mxu1 }
 0x137   : > { %1687 = vst.msk [vmem:[%s2573_s27 + $0x2c] sm:$0xf] %vm1675_vm3, %v1950_v31  ;;  %v1948_v22 = vpack.c.bf16 %v1524_v21, %v1524_v21  ;;  %v1529_v33 = vmax.f32 %v1497_v13, 0.0  ;;  %v1393_v7 = vmax.f32 %v2487_v36, %v1048_v32  ;;  %v1425_v14 = vmax.f32 %v2489_v37, %v1304_v6 }
 0x138   : > { %v1495_v23 = vadd.f32 %v2560_v0, %v1456_v54  ;;  %v1459_v15 = vmax.f32 %v1395_v55, %v1427_v56  ;;  %v2091_v34 = vpop.f32.mrf.mxu0  ;;  %v2155_v59 = vpop.f32.mrf.mxu1 }
 0x139   : > { %1685 = vst.msk [vmem:[%s2573_s27 + $0x24] sm:$0xf] %vm1675_vm3, %v1948_v22  ;;  %v1953_v60 = vpack.c.bf16 %v1529_v33, %v1529_v33  ;;  %v1457_v35 = vmax.f32 %v1393_v7, %v1425_v14  ;;  %v1398_v61 = vmax.f32 %v2491_v38, %v2091_v34  ;;  %v1430_v24 = vmax.f32 %v2493_v39, %v2155_v59 }
 0x13a   : > { %v1527_v8 = vmax.f32 %v1495_v23, 0.0  ;;  %v1498_v16 = vadd.f32 %v2560_v0, %v1459_v15  ;;  %v1061_v36 = vpop.f32.mrf.mxu0  ;;  %v1317_v25 = vpop.f32.mrf.mxu1 }
 0x13b   : > { %1690 = vst.msk [vmem:[%s2573_s27 + $0x38] sm:$0xf] %vm1675_vm3, %v1953_v60  ;;  %v1496_v37 = vadd.f32 %v2560_v0, %v1457_v35  ;;  %v1462_v9 = vmax.f32 %v1398_v61, %v1430_v24  ;;  %v1396_v17 = vmax.f32 %v2495_v40, %v1061_v36  ;;  %v1428_v10 = vmax.f32 %v2497_v41, %v1317_v25  ;;  %v2749_v36 = vld [vmem:[#allocation2_spill] sm:$0xff] }
 0x13c   : > { %v1951_v58 = vpack.c.bf16 %v1527_v8, %v1527_v8  ;;  %v1530_v26 = vmax.f32 %v1498_v16, 0.0  ;;  %v2092_v38 = vpop.f32.mrf.mxu0  ;;  %v2156_v39 = vpop.f32.mrf.mxu1 }
 0x13d   : > { %v1528_v11 = vmax.f32 %v1496_v37, 0.0  ;;  %v1501_v27 = vadd.f32 %v2560_v0, %v1462_v9  ;;  %v1460_v62 = vmax.f32 %v1396_v17, %v1428_v10  ;;  %v1399_v57 = vmax.f32 %v2499_v42, %v2092_v38  ;;  %v2750_v9 = vld [vmem:[#allocation3_spill] sm:$0xff] }
 0x13e   : > { %1688 = vst.msk [vmem:[%s2573_s27 + $0x30] sm:$0xf] %vm1675_vm3, %v1951_v58  ;;  %v1954_v18 = vpack.c.bf16 %v1530_v26, %v1530_v26  ;;  %v1431_v19 = vmax.f32 %v2501_v43, %v2156_v39  ;;  %v1064_v40 = vpop.f32.mrf.mxu0  ;;  %v1320_v63 = vpop.f32.mrf.mxu1  ;;  %v2751_v26 = vld [vmem:[#allocation4_spill] sm:$0xff]  ;;  %v2752_v39 = vld [vmem:[#allocation5_spill] sm:$0xff] }
 0x13f   : > { %v1952_v41 = vpack.c.bf16 %v1528_v11, %v1528_v11  ;;  %v1533_v28 = vmax.f32 %v1501_v27, 0.0  ;;  %v1499_v29 = vadd.f32 %v2560_v0, %v1460_v62  ;;  %v1397_v1 = vmax.f32 %v2503_v44, %v1064_v40 }
 0x140   : > { %1691 = vst.msk [vmem:[%s2573_s27 + $0x3c] sm:$0xf] %vm1675_vm3, %v1954_v18  ;;  %v1463_v12 = vmax.f32 %v1399_v57, %v1431_v19  ;;  %v1429_v2 = vmax.f32 %v2505_v45, %v1320_v63  ;;  %v2095_v42 = vpop.f32.mrf.mxu0  ;;  %v2159_v3 = vpop.f32.mrf.mxu1  ;;  %v2753_v63 = vld [vmem:[#allocation6_spill] sm:$0xff] }
 0x141   : > { %1689 = vst.msk [vmem:[%s2573_s27 + $0x34] sm:$0xf] %vm1675_vm3, %v1952_v41  ;;  %v1957_v4 = vpack.c.bf16 %v1533_v28, %v1533_v28  ;;  %v1531_v43 = vmax.f32 %v1499_v29, 0.0  ;;  %v1402_v20 = vmax.f32 %v2507_v46, %v2095_v42  ;;  %v1434_v30 = vmax.f32 %v2509_v47, %v2159_v3  ;;  %v2754_v28 = vld [vmem:[#allocation7_spill] sm:$0xff] }
 0x142   : > { %v1502_v5 = vadd.f32 %v2560_v0, %v1463_v12  ;;  %v1461_v31 = vmax.f32 %v1397_v1, %v1429_v2  ;;  %v1077_v44 = vpop.f32.mrf.mxu0  ;;  %v1333_v21 = vpop.f32.mrf.mxu1 }
 0x143   : > { %1694 = vst.msk [vmem:[%s2573_s27 + $0x48] sm:$0xf] %vm1675_vm3, %v1957_v4  ;;  %v1955_v13 = vpack.c.bf16 %v1531_v43, %v1531_v43  ;;  %v1466_v45 = vmax.f32 %v1402_v20, %v1434_v30  ;;  %v1400_v55 = vmax.f32 %v2511_v48, %v1077_v44  ;;  %v1432_v54 = vmax.f32 %v2513_v49, %v1333_v21  ;;  %v2755_v43 = vld [vmem:[#allocation8_spill] sm:$0xff]  ;;  %v2756_v30 = vld [vmem:[#allocation9_spill] sm:$0xff] }
 0x144   : > { %v1534_v56 = vmax.f32 %v1502_v5, 0.0  ;;  %v1500_v32 = vadd.f32 %v2560_v0, %v1461_v31  ;;  %v2096_v46 = vpop.f32.mrf.mxu0  ;;  %v2160_v6 = vpop.f32.mrf.mxu1 }
 0x145   : > { %1692 = vst.msk [vmem:[%s2573_s27 + $0x40] sm:$0xf] %vm1675_vm3, %v1955_v13  ;;  %v1505_v47 = vadd.f32 %v2560_v0, %v1466_v45  ;;  %v1464_v22 = vmax.f32 %v1400_v55, %v1432_v54  ;;  %v1403_v33 = vmax.f32 %v2515_v50, %v2096_v46  ;;  %v1435_v7 = vmax.f32 %v2517_v51, %v2160_v6  ;;  %v2758_v6 = vld [vmem:[#allocation11_spill] sm:$0xff] }
 0x146   : > { %v1958_v14 = vpack.c.bf16 %v1534_v56, %v1534_v56  ;;  %v1532_v23 = vmax.f32 %v1500_v32, 0.0  ;;  %v1080_v48 = vpop.f32.mrf.mxu0  ;;  %v1336_v49 = vpop.f32.mrf.mxu1  ;;  %v2757_v56 = vld [vmem:[#allocation10_spill] sm:$0xff] }
 0x147   : > { %v1537_v15 = vmax.f32 %v1505_v47, 0.0  ;;  %v1503_v34 = vadd.f32 %v2560_v0, %v1464_v22  ;;  %v1467_v59 = vmax.f32 %v1403_v33, %v1435_v7  ;;  %v1401_v60 = vmax.f32 %v2519_v52, %v1080_v48  ;;  %v2759_v48 = vld [vmem:[#allocation12_spill] sm:$0xff] }
 0x148   : > { %1695 = vst.msk [vmem:[%s2573_s27 + $0x4c] sm:$0xf] %vm1675_vm3, %v1958_v14  ;;  %v1956_v35 = vpack.c.bf16 %v1532_v23, %v1532_v23  ;;  %v1433_v61 = vmax.f32 %v2521_v53, %v1336_v49  ;;  %v2099_v50 = vpop.f32.mrf.mxu0  ;;  %v2163_v24 = vpop.f32.mrf.mxu1 }
 0x149   : > { %v1961_v51 = vpack.c.bf16 %v1537_v15, %v1537_v15  ;;  %v1535_v8 = vmax.f32 %v1503_v34, 0.0  ;;  %v1506_v16 = vadd.f32 %v2560_v0, %v1467_v59  ;;  %v1406_v25 = vmax.f32 %v2749_v36, %v2099_v50  ;;  %v2760_v34 = vld [vmem:[#allocation13_spill] sm:$0xff] }
 0x14a   : > { %1693 = vst.msk [vmem:[%s2573_s27 + $0x44] sm:$0xf] %vm1675_vm3, %v1956_v35  ;;  %v1465_v37 = vmax.f32 %v1401_v60, %v1433_v61  ;;  %v1438_v17 = vmax.f32 %v2750_v9, %v2163_v24  ;;  %v1093_v52 = vpop.f32.mrf.mxu0  ;;  %v1349_v10 = vpop.f32.mrf.mxu1  ;;  %v2761_v24 = vld [vmem:[#allocation14_spill] sm:$0xff] }
 0x14b   : > { %1698 = vst.msk [vmem:[%s2573_s27 + $0x58] sm:$0xf] %vm1675_vm3, %v1961_v51  ;;  %v1959_v58 = vpack.c.bf16 %v1535_v8, %v1535_v8  ;;  %v1538_v53 = vmax.f32 %v1506_v16, 0.0  ;;  %v1404_v38 = vmax.f32 %v2751_v26, %v1093_v52  ;;  %v1436_v11 = vmax.f32 %v2752_v39, %v1349_v10  ;;  %v2762_v8 = vld [vmem:[#allocation15_spill] sm:$0xff]  ;;  %v2763_v10 = vld [vmem:[#allocation16_spill] sm:$0xff] }
 0x14c   : > { %v1504_v27 = vadd.f32 %v2560_v0, %v1465_v37  ;;  %v1470_v62 = vmax.f32 %v1406_v25, %v1438_v17  ;;  %v2100_v57 = vpop.f32.mrf.mxu0  ;;  %v2164_v18 = vpop.f32.mrf.mxu1 }
 0x14d   : > { %1696 = vst.msk [vmem:[%s2573_s27 + $0x50] sm:$0xf] %vm1675_vm3, %v1959_v58  ;;  %v1962_v19 = vpack.c.bf16 %v1538_v53, %v1538_v53  ;;  %v1468_v40 = vmax.f32 %v1404_v38, %v1436_v11  ;;  %v1407_v41 = vmax.f32 %v2753_v63, %v2100_v57  ;;  %v1439_v29 = vmax.f32 %v2754_v28, %v2164_v18  ;;  %v2764_v53 = vld [vmem:[#allocation17_spill] sm:$0xff] }
 0x14e   : > { %v1536_v1 = vmax.f32 %v1504_v27, 0.0  ;;  %v1509_v12 = vadd.f32 %v2560_v0, %v1470_v62  ;;  %v1096_v2 = vpop.f32.mrf.mxu0  ;;  %v1352_v42 = vpop.f32.mrf.mxu1 }
 0x14f   : > { %1699 = vst.msk [vmem:[%s2573_s27 + $0x5c] sm:$0xf] %vm1675_vm3, %v1962_v19  ;;  %v1507_v3 = vadd.f32 %v2560_v0, %v1468_v40  ;;  %v1471_v4 = vmax.f32 %v1407_v41, %v1439_v29  ;;  %v1405_v20 = vmax.f32 %v2755_v43, %v1096_v2  ;;  %v1437_v5 = vmax.f32 %v2756_v30, %v1352_v42 }
 0x150   : > { %v1960_v31 = vpack.c.bf16 %v1536_v1, %v1536_v1  ;;  %v1541_v44 = vmax.f32 %v1509_v12, 0.0  ;;  %v2103_v21 = vpop.f32.mrf.mxu0  ;;  %v2167_v13 = vpop.f32.mrf.mxu1 }
 0x151   : > { %v1539_v45 = vmax.f32 %v1507_v3, 0.0  ;;  %v1510_v55 = vadd.f32 %v2560_v0, %v1471_v4  ;;  %v1469_v54 = vmax.f32 %v1405_v20, %v1437_v5  ;;  %v1410_v32 = vmax.f32 %v2757_v56, %v2103_v21 }
 0x152   : > { %1697 = vst.msk [vmem:[%s2573_s27 + $0x54] sm:$0xf] %vm1675_vm3, %v1960_v31  ;;  %v1965_v46 = vpack.c.bf16 %v1541_v44, %v1541_v44  ;;  %v1442_v47 = vmax.f32 %v2758_v6, %v2167_v13  ;;  %v1109_v22 = vpop.f32.mrf.mxu0  ;;  %v1365_v33 = vpop.f32.mrf.mxu1 }
 0x153   : > { %v1963_v7 = vpack.c.bf16 %v1539_v45, %v1539_v45  ;;  %v1542_v14 = vmax.f32 %v1510_v55, 0.0  ;;  %v1508_v23 = vadd.f32 %v2560_v0, %v1469_v54  ;;  %v1408_v49 = vmax.f32 %v2759_v48, %v1109_v22 }
 0x154   : > { %1702 = vst.msk [vmem:[%s2573_s27 + $0x68] sm:$0xf] %vm1675_vm3, %v1965_v46  ;;  %v1474_v15 = vmax.f32 %v1410_v32, %v1442_v47  ;;  %v1440_v59 = vmax.f32 %v2760_v34, %v1365_v33  ;;  %v2104_v60 = vpop.f32.mrf.mxu0  ;;  %v2168_v35 = vpop.f32.mrf.mxu1 }
 0x155   : > { %1700 = vst.msk [vmem:[%s2573_s27 + $0x60] sm:$0xf] %vm1675_vm3, %v1963_v7  ;;  %v1966_v61 = vpack.c.bf16 %v1542_v14, %v1542_v14  ;;  %v1540_v50 = vmax.f32 %v1508_v23, 0.0  ;;  %v1411_v51 = vmax.f32 %v2761_v24, %v2104_v60  ;;  %v1443_v16 = vmax.f32 %v2762_v8, %v2168_v35 }
 0x156   : > { %v1513_v36 = vadd.f32 %v2560_v0, %v1474_v15  ;;  %v1472_v25 = vmax.f32 %v1408_v49, %v1440_v59  ;;  %v1112_v37 = vpop.f32.mrf.mxu0  ;;  %v1368_v9 = vpop.f32.mrf.mxu1 }
 0x157   : > { %1703 = vst.msk [vmem:[%s2573_s27 + $0x6c] sm:$0xf] %vm1675_vm3, %v1966_v61  ;;  %v1964_v17 = vpack.c.bf16 %v1540_v50, %v1540_v50  ;;  %v1475_v52 = vmax.f32 %v1411_v51, %v1443_v16  ;;  %v1409_v58 = vmax.f32 %v2763_v10, %v1112_v37  ;;  %v1441_v26 = vmax.f32 %v2764_v53, %v1368_v9 }
 0x158   : > { %v1545_v38 = vmax.f32 %v1513_v36, 0.0  ;;  %v1511_v39 = vadd.f32 %v2560_v0, %v1472_v25 }
 0x159   : > { %1701 = vst.msk [vmem:[%s2573_s27 + $0x64] sm:$0xf] %vm1675_vm3, %v1964_v17  ;;  %v1514_v11 = vadd.f32 %v2560_v0, %v1475_v52  ;;  %v1473_v27 = vmax.f32 %v1409_v58, %v1441_v26 }
 0x15a   : > { %v1969_v62 = vpack.c.bf16 %v1545_v38, %v1545_v38  ;;  %v1543_v57 = vmax.f32 %v1511_v39, 0.0 }
 0x15b   : > { %v1546_v18 = vmax.f32 %v1514_v11, 0.0  ;;  %v1512_v19 = vadd.f32 %v2560_v0, %v1473_v27 }
 0x15c   : > { %1706 = vst.msk [vmem:[%s2573_s27 + $0x78] sm:$0xf] %vm1675_vm3, %v1969_v62  ;;  %v1967_v40 = vpack.c.bf16 %v1543_v57, %v1543_v57 }
 0x15d   : > { %v1970_v63 = vpack.c.bf16 %v1546_v18, %v1546_v18  ;;  %v1544_v41 = vmax.f32 %v1512_v19, 0.0 }
 0x15e   : > { %1704 = vst.msk [vmem:[%s2573_s27 + $0x70] sm:$0xf] %vm1675_vm3, %v1967_v40 }
 0x15f   : > { %1707 = vst.msk [vmem:[%s2573_s27 + $0x7c] sm:$0xf] %vm1675_vm3, %v1970_v63  ;;  %v1968_v28 = vpack.c.bf16 %v1544_v41, %v1544_v41 }
 0x161   : > { %1705 = vst.msk [vmem:[%s2573_s27 + $0x74] sm:$0xf] %vm1675_vm3, %v1968_v28 }
 0x162 PF: > { %s13_s12 = sadd.s32 1, %s2254_s12  }
 0x163   : > { %p10_p4 = scmp.ge.s32.totalorder %s13_s12, 4  }
 0x165   :  { %12 = sbr.rel (!%p10_p4) target bundleno = 1 (0x1), region = 62 }

// kernel: simple_cnn_forward.4
= control target key start
LH: loop header
LB: loop body
LE: loop exit
PB: predicated region body
PF: predicated region fallthrough
CT: control target
= control target key end

     0   :  { %s4286_s12 = smov 0   ;;  %s5846_s0 = inlined_call_operand.vmem [shape: bf16[2,2,18,9,32], index: 0, kind: input, shape index: {}]   ;;  %s5847_s1 = inlined_call_operand.vmem [shape: bf16[288,64], index: 1, kind: input, shape index: {}]   ;;  %s5848_s2 = inlined_call_operand.vmem [shape: f32[1,64], index: 2, kind: input, shape index: {}]   ;;  %s5849_s3 = inlined_call_operand.vmem [shape: bf16[2,64,64], index: 3, kind: output, shape index: {}]  }
   0x1 LB: > { %s3389_s13 = sadd.s32 4294967295, %s4264_s12   ;;  %p3393_p0 = scmp.ge.s32.totalorder %s4264_s12, 1  ;;  %s4264_s12 = sphi %s4286_s12, %s13_s12  }
   0x2   : > { %p137_p1 = scmp.lt.s32.totalorder %s4264_s12, 3 }
   0x4   : > { %p138_p2 = pnand %p3393_p0, %p137_p1 }
   0x6   : > { %141 = sbr.rel (%p138_p2) target bundleno = 520 (0x208), region = 32 }
   0xb   : > { %v4297_v0 = vld [vmem:[%s5847_s1 + $0x18] sm:$0xff]   ;;  %p161_p3 = scmp.lt.s32.totalorder %s3389_s13, 1  ;;  %v4197_v1 = vld [vmem:[%s5847_s1 + $0x8] sm:$0xff]   ;;  %v4198_v2 = vld [vmem:[%s5847_s1 + $0x10] sm:$0xff]   ;;  %vm332_vm0 = vcmask 261120   ;;  %vm3325_vm4 = vcmask 519168  }
   0xc   : > { %3827 = vmatprep.subr.bf16.mxu0 %v4297_v0  ;;  %3847 = vmatprep.subr.bf16.mxu1 %v4197_v1  ;;  %v4199_v3 = vld [vmem:[%s5847_s1] sm:$0xff]   ;;  %v4204_v4 = vld [vmem:[%s5847_s1 + $0x28] sm:$0xff]   ;;  %v4319_v5 = vld [vmem:[%s5847_s1 + $0x38] sm:$0xff]   ;;  %vm627_vm1 = vsmask.f32 3328 }
   0xd   : > { %s6092_s13 = smov (!%p161_p3, %s3389_s13), 1  ;;  %3828 = vmatpush3.bf16.msra.mxu0 %v4297_v0  ;;  %3848 = vmatpush3.bf16.msra.mxu1 %v4197_v1  ;;  %v4216_v32 = vld [vmem:[%s5847_s1 + $0x20] sm:$0xff]   ;;  %v4217_v51 = vld [vmem:[%s5847_s1 + $0x30] sm:$0xff]   ;;  %v4397_v57 = vld [vmem:[%s5847_s1 + $0x48] sm:$0xff]   ;;  %vm628_vm2 = vsmask.f32 7440 }
   0xe   : > { %3829 = vmatprep.subr.bf16.mxu0 %v4198_v2  ;;  %s4187_s22 = smul.u32 288, %s6092_s13  ;;  %3849 = vmatprep.subr.bf16.mxu1 %v4199_v3  ;;  %vm4599_vm3 = vmor %vm627_vm1, %vm628_vm2  ;;  %s3638_s26 = sshll.u32 %s6092_s13, 5 }
   0xf   : > { %s5796_s28 = scalar_lea.vmem %s5849_s3, %s3638_s26 }
  0x10   : > { %s4324_s29 = scalar_lea.vmem %s5846_s0, %s4187_s22 }
  0x11   : > { %3830 = vmatpush3.bf16.msra.mxu0 %v4198_v2  ;;  %v208_v6 = vld [vmem:[%s4324_s29 + $0x90] sm:$0xf]  ;;  %v4328_v7 = vld [vmem:[%s4324_s29 + $0x98] sm:$0xf]  ;;  %v172_v8 = vld [vmem:[%s4324_s29] sm:$0xf]  ;;  %3850 = vmatpush3.bf16.msra.mxu1 %v4199_v3 }
  0x12   : > { %v4332_v9 = vcombine.low %v208_v6, %v4328_v7  ;;  %v2118_v10 = vshrl.u32 %v208_v6, 16  ;;  %v2121_v11 = vshll.u32 %v208_v6, 16  ;;  %v2132_v12 = vshrl.u32 %v4328_v7, 16  ;;  %v4336_v13 = vld [vmem:[%s4324_s29 + $0x8] sm:$0xf]  ;;  %3867 = vmatprep.subr.bf16.mxu0 %v4204_v4  ;;  %3887 = vmatprep.subr.bf16.mxu1 %v4319_v5  ;;  %v4421_v6 = vld [vmem:[%s5847_s1 + $0x58] sm:$0xff]  }
  0x13   : > { %v2135_v14 = vshll.u32 %v4328_v7, 16  ;;  %v3415_v15 = vcombine.low %v172_v8, %v4336_v13  ;;  %v631_v16 = vshrl.u32 %v172_v8, 16  ;;  %v634_v17 = vshll.u32 %v172_v8, 16  ;;  %v4341_v18 = vld [vmem:[%s4324_s29 + $0xa0] sm:$0xf] }
  0x14   : > { %5894 = vst [vmem:[#allocation2_spill] sm:$0xff] %v4332_v9  ;;  %3831 = vmatprep.mubr.msk.bf16.mxu0 %vm332_vm0, %v4332_v9  ;;  %v2120_v19 = vrot.slane %v2118_v10, 4  ;;  %v2123_v20 = vrot.slane %v2121_v11, 5  ;;  %v2134_v21 = vrot.slane %v2132_v12, 4  ;;  %v645_v22 = vshrl.u32 %v4336_v13, 16 }
  0x15   : > { %v4348_v23 = vld [vmem:[%s4324_s29 + $0xa8] sm:$0xf]  ;;  %v2137_v24 = vrot.slane %v2135_v14, 5  ;;  %3851 = vmatprep.mubr.msk.bf16.mxu1 %vm332_vm0, %v3415_v15  ;;  %v633_v25 = vrot.slane %v631_v16, 4  ;;  %v636_v26 = vrot.slane %v634_v17, 5  ;;  %v648_v27 = vshll.u32 %v4336_v13, 16 }
  0x16   : > { %v2124_v28 = vor.u32 %v2123_v20, %v2120_v19  ;;  %v647_v29 = vrot.slane %v645_v22, 4  ;;  %v4354_v30 = vcombine.low %v4341_v18, %v4348_v23  ;;  %v2146_v31 = vshrl.u32 %v4341_v18, 16  ;;  %v4362_v36 = vld [vmem:[%s4324_s29 + $0x10] sm:$0xf]  ;;  %v4365_v37 = vld [vmem:[%s4324_s29 + $0x18] sm:$0xf] }
  0x17   : > { %v2138_v33 = vor.u32 %v2137_v24, %v2134_v21  ;;  %v650_v34 = vrot.slane %v648_v27, 5  ;;  %v2149_v35 = vshll.u32 %v4341_v18, 16  ;;  %v2160_v39 = vshrl.u32 %v4348_v23, 16  ;;  %v4374_v45 = vld [vmem:[%s4324_s29 + $0xb0] sm:$0xf] }
  0x18   : > { %5895 = vst [vmem:[#allocation3_spill] sm:$0xff] %v4354_v30  ;;  %3832 = vmatmul.mubr.msk.bf16.vlgmr.msra.gmra.mxu0 %vm332_vm0, %v4354_v30  ;;  %v2148_v38 = vrot.slane %v2146_v31, 4  ;;  %v2163_v40 = vshll.u32 %v4348_v23, 16  ;;  %v4371_v41 = vrot.slane %v2124_v28, 4  ;;  %v637_v42 = vor.u32 %v636_v26, %v633_v25  ;;  %v4377_v46 = vld [vmem:[%s4324_s29 + $0xb8] sm:$0xf] }
  0x19   : > { %v651_v43 = vor.u32 %v650_v34, %v647_v29  ;;  %v2151_v44 = vrot.slane %v2149_v35, 5  ;;  %3868 = vmatpush3.bf16.msra.mxu0 %v4204_v4  ;;  %v2162_v47 = vrot.slane %v2160_v39, 4  ;;  %v4381_v49 = vcombine.low %v4362_v36, %v4365_v37  ;;  %v4392_v56 = vld [vmem:[%s4324_s29 + $0x20] sm:$0xf]  ;;  %v4407_v62 = vld [vmem:[%s4324_s29 + $0x28] sm:$0xf] }
  0x1a   : > { %v2165_v48 = vrot.slane %v2163_v40, 5  ;;  %v659_v50 = vshrl.u32 %v4362_v36, 16  ;;  %3869 = vmatprep.subr.bf16.mxu0 %v4216_v32  ;;  %v4387_v52 = vrot.slane %v2138_v33, 4  ;;  %v662_v54 = vshll.u32 %v4362_v36, 16  ;;  %v4410_v63 = vld [vmem:[%s4324_s29 + $0xc0] sm:$0xf] }
  0x1b   : > { %5896 = vst [vmem:[#allocation4_spill] sm:$0xff] %v4381_v49  ;;  %v2152_v53 = vor.u32 %v2151_v44, %v2148_v38  ;;  %v673_v55 = vshrl.u32 %v4365_v37, 16  ;;  %3852 = vmatmul.mubr.msk.bf16.vlgmr.msra.gmra.mxu1 %vm332_vm0, %v4381_v49  ;;  %v676_v60 = vshll.u32 %v4365_v37, 16  ;;  %v4404_v61 = vcombine.low %v4374_v45, %v4377_v46  ;;  %v4416_v4 = vld [vmem:[%s4324_s29 + $0xc8] sm:$0xf] }
  0x1c   : > { %v2166_v58 = vor.u32 %v2165_v48, %v2162_v47  ;;  %v661_v59 = vrot.slane %v659_v50, 4  ;;  %v4412_v1 = vrot.slane %v637_v42, 4  ;;  %v664_v2 = vrot.slane %v662_v54, 5  ;;  %3888 = vmatpush3.bf16.msra.mxu1 %v4319_v5  ;;  %v4428_v11 = vld [vmem:[%s4324_s29 + $0x30] sm:$0xf] }
  0x1d   : > { %5897 = vst [vmem:[#allocation5_spill] sm:$0xff] %v4404_v61  ;;  %v675_v3 = vrot.slane %v673_v55, 4  ;;  %3870 = vmatpush3.bf16.msra.mxu0 %v4216_v32  ;;  %v4423_v8 = vrot.slane %v651_v43, 4  ;;  %v678_v10 = vrot.slane %v676_v60, 5  ;;  %3835 = vmatprep.mubr.msk.bf16.mxu0 %vm332_vm0, %v4404_v61  ;;  %v4431_v12 = vld [vmem:[%s4324_s29 + $0x38] sm:$0xf]  ;;  %v4439_v16 = vcombine.low %v4392_v56, %v4407_v62 }
  0x1e   : > { %3889 = vmatprep.subr.bf16.mxu1 %v4217_v51  ;;  %v4433_v5 = vrot.slane %v2152_v53, 4  ;;  %v4435_v14 = vrot.slane %v2166_v58, 4  ;;  %v665_v15 = vor.u32 %v664_v2, %v661_v59  ;;  %v4442_v17 = vld [vmem:[%s4324_s29 + $0xd0] sm:$0xf]  ;;  %v4445_v19 = vld [vmem:[%s4324_s29 + $0xd8] sm:$0xf]  ;;  %3907 = vmatprep.subr.bf16.mxu0 %v4397_v57  ;;  %v4461_v29 = vcombine.low %v4410_v63, %v4416_v4 }
  0x1f   : > { %5898 = vst [vmem:[#allocation6_spill] sm:$0xff] %v4439_v16  ;;  %v679_v20 = vor.u32 %v678_v10, %v675_v3  ;;  %v4452_v25 = vld [vmem:[%s4324_s29 + $0x40] sm:$0xf]  ;;  %3855 = vmatprep.mubr.msk.bf16.mxu1 %vm332_vm0, %v4439_v16  ;;  %v4464_v31 = vld [vmem:[%s4324_s29 + $0x48] sm:$0xf]  ;;  %v4486_v44 = vcombine.low %v4428_v11, %v4431_v12  ;;  %v4595_v35 = vcombine.low %v4348_v23, %v4374_v45  ;;  %v4256_v55 = vld [vmem:[%s5847_s1 + $0x30] sm:$0xff]  }
  0x20   : > { %5899 = vst [vmem:[#allocation7_spill] sm:$0xff] %v4461_v29  ;;  %3890 = vmatpush3.bf16.msra.mxu1 %v4217_v51  ;;  %v4466_v32 = vrot.slane %v665_v15, 4  ;;  %v4473_v38 = vld [vmem:[%s4324_s29 + $0xe0] sm:$0xf]  ;;  %v4476_v39 = vld [vmem:[%s4324_s29 + $0xe8] sm:$0xf]  ;;  %3836 = vmatmul.mubr.msk.bf16.gmra.mxu0 %vm332_vm0, %v4461_v29  ;;  %v4493_v51 = vcombine.low %v4442_v17, %v4445_v19  ;;  %v4505_v59 = vcombine.low %v4452_v25, %v4464_v31 }
  0x21   : > { %v4468_v33 = vrot.slane %v679_v20, 4  ;;  %3927 = vmatprep.subr.bf16.mxu1 %v4421_v6  ;;  %5900 = vst [vmem:[#allocation8_spill] sm:$0xff] %v4486_v44  ;;  %v4496_v53 = vld [vmem:[%s4324_s29 + $0x50] sm:$0xf]  ;;  %v4508_v60 = vld [vmem:[%s4324_s29 + $0x58] sm:$0xf]  ;;  %v4526_v47 = vcombine.low %v4473_v38, %v4476_v39  ;;  %v3451_v23 = vcombine.low %v4336_v13, %v4362_v36 }
  0x22   : > { %5901 = vst [vmem:[#allocation9_spill] sm:$0xff] %v4493_v51  ;;  %5902 = vst [vmem:[#allocation10_spill] sm:$0xff] %v4505_v59  ;;  %3839 = vmatprep.mubr.msk.bf16.mxu0 %vm332_vm0, %v4493_v51  ;;  %v4515_v10 = vld [vmem:[%s4324_s29 + $0xf0] sm:$0xf]  ;;  %v4518_v15 = vld [vmem:[%s4324_s29 + $0xf8] sm:$0xf]  ;;  %v4542_v22 = vcombine.low %v4496_v53, %v4508_v60 }
  0x23   : > { %3856 = vmatmul.mubr.msk.bf16.gmra.mxu1 %vm332_vm0, %v4486_v44  ;;  %5903 = vst [vmem:[#allocation11_spill] sm:$0xff] %v4526_v47  ;;  %v4529_v43 = vld [vmem:[%s4324_s29 + $0x60] sm:$0xf]  ;;  %v4532_v2 = vld [vmem:[%s4324_s29 + $0x68] sm:$0xf]  ;;  %v4546_v21 = vcombine.low %v4515_v10, %v4518_v15  ;;  %5908 = vst [vmem:[#allocation16_spill] sm:$0xff] %v4595_v35 }
  0x24   : > { %3859 = vmatprep.mubr.msk.bf16.mxu1 %vm332_vm0, %v4505_v59  ;;  %5904 = vst [vmem:[#allocation12_spill] sm:$0xff] %v4542_v22  ;;  %v4553_v26 = vcombine.low %v4529_v43, %v4532_v2  ;;  %v4556_v24 = vld [vmem:[%s4324_s29 + $0x100] sm:$0xf]  ;;  %v4563_v42 = vld [vmem:[%s4324_s29 + $0x108] sm:$0xf]  ;;  %v5912_v36 = vshrl.u32 %v4392_v56, 16 }
  0x25   : > { %5905 = vst [vmem:[#allocation13_spill] sm:$0xff] %v4546_v21  ;;  %v4566_v3 = vld [vmem:[%s4324_s29 + $0x70] sm:$0xf]  ;;  %v173_v20 = vld [vmem:[%s4324_s29 + $0x4] sm:$0x1]  ;;  %v4589_v50 = vcombine.low %v4556_v24, %v4563_v42  ;;  %v5919_v59 = vshll.u32 %v4428_v11, 16 }
  0x26   : > { %5906 = vst [vmem:[#allocation14_spill] sm:$0xff] %v4553_v26  ;;  %v4578_v58 = vld [vmem:[%s4324_s29 + $0x78] sm:$0xf]  ;;  %v175_v34 = vld [vmem:[%s4324_s29 + $0xc] sm:$0x1]  ;;  %v640_v40 = vshll.u32 %v173_v20, 16 }
  0x27   : > { %5907 = vst [vmem:[#allocation15_spill] sm:$0xff] %v4589_v50  ;;  %v654_v28 = vshll.u32 %v175_v34, 16  ;;  %v177_v48 = vld [vmem:[%s4324_s29 + $0x14] sm:$0x1]  ;;  %v179_v27 = vld [vmem:[%s4324_s29 + $0x1c] sm:$0x1]  ;;  %v4605_v20 = vcombine.low %v4566_v3, %v4578_v58 }
  0x28   : > { %3840 = vmatmul.mubr.msk.bf16.gmra.mxu0 %vm332_vm0, %v4526_v47  ;;  %v668_v9 = vshll.u32 %v177_v48, 16  ;;  %v642_v34 = vrot.slane %v640_v40, 5  ;;  %v181_v54 = vld [vmem:[%s4324_s29 + $0x24] sm:$0x1]  ;;  %v183_v13 = vld [vmem:[%s4324_s29 + $0x2c] sm:$0x1] }
  0x29   : > { %3843 = vmatprep.mubr.msk.bf16.mxu0 %vm332_vm0, %v4546_v21  ;;  %v682_v21 = vshll.u32 %v179_v27, 16  ;;  %5911 = vst [vmem:[#allocation17_spill] sm:$0xff] %v4605_v20 }
  0x2a   : > { %v670_v47 = vrot.slane %v668_v9, 5  ;;  %v643_v27 = vsel %vm4599_vm3, %v4412_v1, %v642_v34 }
  0x2b   : > { %3860 = vmatmul.mubr.msk.bf16.gmra.mxu1 %vm332_vm0, %v4542_v22  ;;  %v684_v51 = vrot.slane %v682_v21, 5  ;;  %v689_v21 = vrot.slane %v5912_v36, 4  ;;  %v5916_v36 = vshrl.u32 %v4407_v62, 16 }
  0x2c   : > { %3863 = vmatprep.mubr.msk.bf16.mxu1 %vm332_vm0, %v4553_v26  ;;  %v656_v26 = vrot.slane %v654_v28, 5  ;;  %v5913_v28 = vshll.u32 %v4392_v56, 16  ;;  %v4635_v22 = vsel %vm4599_vm3, %v4466_v32, %v670_v47  ;;  %v5917_v47 = vshll.u32 %v4407_v62, 16 }
  0x2d   : > { %v4640_v1 = vsel %vm4599_vm3, %v4468_v33, %v684_v51  ;;  %v703_v32 = vrot.slane %v5916_v36, 4  ;;  %v710_v51 = vshll.u32 %v183_v13, 16 }
  0x2e   : > { %v4622_v9 = vsel %vm4599_vm3, %v4423_v8, %v656_v26  ;;  %v692_v40 = vrot.slane %v5913_v28, 5  ;;  %v696_v8 = vshll.u32 %v181_v54, 16  ;;  %v185_v26 = vld [vmem:[%s4324_s29 + $0x34] sm:$0x1]  ;;  %v4647_v34 = vcombine.low %v4635_v22, %v4640_v1 }
  0x2f   : > { %v4630_v48 = vcombine.low %v643_v27, %v4622_v9  ;;  %v706_v28 = vrot.slane %v5917_v47, 5  ;;  %v5918_v54 = vshrl.u32 %v4428_v11, 16  ;;  %v724_v61 = vshll.u32 %v185_v26, 16  ;;  %v4675_v26 = vld [vmem:[%s5847_s1 + $0x40] sm:$0xff]  }
  0x30   : > { %3844 = vmatmul.mubr.msk.bf16.gmra.mxu0 %vm332_vm0, %v4589_v50  ;;  %5915 = vst [vmem:[#allocation19_spill] sm:$0xff] %v4647_v34  ;;  %v693_v27 = vor.u32 %v692_v40, %v689_v21  ;;  %v187_v50 = vld [vmem:[%s4324_s29 + $0x3c] sm:$0x1]  ;;  %v698_v33 = vrot.slane %v696_v8, 5  ;;  %v720_v21 = vrot.slane %v5919_v59, 5  ;;  %v5920_v47 = vshrl.u32 %v4431_v12, 16 }
  0x31   : > { %5914 = vst [vmem:[#allocation18_spill] sm:$0xff] %v4630_v48  ;;  %3871 = vmatprep.mubr.msk.bf16.mxu0 %vm332_vm0, %v4630_v48  ;;  %v189_v40 = vld [vmem:[%s4324_s29 + $0x44] sm:$0x1]  ;;  %v707_v36 = vor.u32 %v706_v28, %v703_v32  ;;  %v712_v16 = vrot.slane %v710_v51, 5  ;;  %v738_v13 = vshll.u32 %v187_v50, 16  ;;  %v726_v30 = vrot.slane %v724_v61, 5 }
  0x32   : > { %v694_v29 = vrot.slane %v693_v27, 4  ;;  %v731_v44 = vrot.slane %v5920_v47, 4  ;;  %v5922_v27 = vshrl.u32 %v4452_v25, 16  ;;  %5923 = vst [vmem:[#allocation20_spill] sm:$0xff] %v4675_v26  ;;  %v191_v50 = vld [vmem:[%s4324_s29 + $0x4c] sm:$0x1] }
  0x33   : > { %3864 = vmatmul.mubr.msk.bf16.gmra.mxu1 %vm332_vm0, %v4605_v20  ;;  %v717_v20 = vrot.slane %v5918_v54, 4  ;;  %v708_v59 = vrot.slane %v707_v36, 4  ;;  %v740_v51 = vrot.slane %v738_v13, 5  ;;  %v752_v36 = vshll.u32 %v189_v40, 16  ;;  %v193_v47 = vld [vmem:[%s4324_s29 + $0x54] sm:$0x1] }
  0x34   : > { %3891 = vmatprep.mubr.msk.bf16.mxu1 %vm332_vm0, %v3451_v23  ;;  %v5921_v23 = vshll.u32 %v4431_v12, 16  ;;  %v4668_v54 = vsel %vm4599_vm3, %v694_v29, %v698_v33  ;;  %v745_v32 = vrot.slane %v5922_v27, 4  ;;  %v5924_v29 = vshll.u32 %v4452_v25, 16  ;;  %v195_v27 = vld [vmem:[%s4324_s29 + $0x5c] sm:$0x1] }
  0x35   : > { %v721_v48 = vor.u32 %v720_v21, %v717_v20  ;;  %v4684_v61 = vsel %vm4599_vm3, %v708_v59, %v712_v16  ;;  %v5927_v13 = vshll.u32 %v4464_v31, 16  ;;  %v766_v21 = vshll.u32 %v191_v50, 16 }
  0x36   : > { %v734_v8 = vrot.slane %v5921_v23, 5  ;;  %v748_v33 = vrot.slane %v5924_v29, 5  ;;  %v4694_v23 = vld [vmem:[%s5847_s1 + $0x50] sm:$0xff]   ;;  %v4699_v16 = vcombine.low %v4668_v54, %v4684_v61  ;;  %v5928_v29 = vcombine.low %v4365_v37, %v4392_v56 }
  0x37   : > { %v722_v20 = vrot.slane %v721_v48, 4  ;;  %v5925_v48 = vshrl.u32 %v4464_v31, 16  ;;  %5926 = vst [vmem:[#allocation21_spill] sm:$0xff] %v4694_v23  ;;  %v762_v59 = vrot.slane %v5927_v13, 5  ;;  %v5932_v50 = vcombine.low %v4407_v62, %v4428_v11 }
  0x38   : > { %v735_v28 = vor.u32 %v734_v8, %v731_v44  ;;  %3872 = vmatmul.mubr.msk.bf16.vlgmr.msra.gmra.mxu0 %vm332_vm0, %v4647_v34  ;;  %v5929_v34 = vshrl.u32 %v4496_v53, 16  ;;  %v5934_v13 = vshll.u32 %v4508_v60, 16 }
  0x39   : > { %v759_v44 = vrot.slane %v5925_v48, 4  ;;  %3908 = vmatpush3.bf16.msra.mxu0 %v4397_v57  ;;  %v4703_v8 = vsel %vm4599_vm3, %v722_v20, %v726_v30  ;;  %v749_v48 = vor.u32 %v748_v33, %v745_v32  ;;  %v754_v57 = vrot.slane %v752_v36, 5  ;;  %v197_v30 = vld [vmem:[%s4324_s29 + $0x64] sm:$0x1]  ;;  %v4719_v20 = vld [vmem:[%s5847_s1 + $0x68] sm:$0xff]   ;;  %3875 = vmatprep.mubr.msk.bf16.mxu0 %vm332_vm0, %v4699_v16 }
  0x3a   : > { %v736_v40 = vrot.slane %v735_v28, 4  ;;  %v773_v49 = vrot.slane %v5929_v34, 4  ;;  %3909 = vmatprep.subr.bf16.mxu0 %v4675_v26  ;;  %5930 = vst [vmem:[#allocation22_spill] sm:$0xff] %v4719_v20  ;;  %v5931_v34 = vshll.u32 %v4496_v53, 16  ;;  %v780_v28 = vshll.u32 %v193_v47, 16 }
  0x3b   : > { %3892 = vmatmul.mubr.msk.bf16.vlgmr.msra.gmra.mxu1 %vm332_vm0, %v5928_v29  ;;  %v763_v56 = vor.u32 %v762_v59, %v759_v44  ;;  %v750_v33 = vrot.slane %v749_v48, 4  ;;  %v768_v36 = vrot.slane %v766_v21, 5  ;;  %v4744_v44 = vld [vmem:[%s5847_s1 + $0x78] sm:$0xff]   ;;  %v790_v59 = vrot.slane %v5934_v13, 5  ;;  %v199_v29 = vld [vmem:[%s4324_s29 + $0x6c] sm:$0x1] }
  0x3c   : > { %3928 = vmatpush3.bf16.msra.mxu1 %v4421_v6  ;;  %v4726_v37 = vsel %vm4599_vm3, %v736_v40, %v740_v51  ;;  %v776_v32 = vrot.slane %v5931_v34, 5  ;;  %3895 = vmatprep.mubr.msk.bf16.mxu1 %vm332_vm0, %v5932_v50  ;;  %v5933_v51 = vshrl.u32 %v4508_v60, 16  ;;  %v782_v11 = vrot.slane %v780_v28, 5 }
  0x3d   : > { %v4736_v6 = vcombine.low %v4703_v8, %v4726_v37  ;;  %3929 = vmatprep.subr.bf16.mxu1 %v4694_v23  ;;  %v764_v47 = vrot.slane %v763_v56, 4  ;;  %3910 = vmatpush3.bf16.msra.mxu0 %v4675_v26  ;;  %v4752_v21 = vsel %vm4599_vm3, %v750_v33, %v754_v57  ;;  %v794_v48 = vshll.u32 %v195_v27, 16  ;;  %v201_v26 = vld [vmem:[%s4324_s29 + $0x74] sm:$0x1] }
  0x3e   : > { %v787_v40 = vrot.slane %v5933_v51, 4  ;;  %v777_v62 = vor.u32 %v776_v32, %v773_v49  ;;  %v5935_v34 = vshrl.u32 %v4529_v43, 16  ;;  %v5936_v56 = vshll.u32 %v4529_v43, 16  ;;  %3947 = vmatprep.subr.bf16.mxu0 %v4719_v20 }
  0x3f   : > { %v4761_v32 = vsel %vm4599_vm3, %v764_v47, %v768_v36  ;;  %v808_v57 = vshll.u32 %v197_v30, 16  ;;  %v796_v33 = vrot.slane %v794_v48, 5  ;;  %v203_v36 = vld [vmem:[%s4324_s29 + $0x7c] sm:$0x1]  ;;  %v5940_v48 = vcombine.low %v4431_v12, %v4452_v25 }
  0x40   : > { %v801_v50 = vrot.slane %v5935_v34, 4  ;;  %v804_v49 = vrot.slane %v5936_v56, 5  ;;  %v778_v28 = vrot.slane %v777_v62, 4  ;;  %v791_v51 = vor.u32 %v790_v59, %v787_v40  ;;  %3930 = vmatpush3.bf16.msra.mxu1 %v4694_v23  ;;  %3876 = vmatmul.mubr.msk.bf16.gmra.mxu0 %vm332_vm0, %v4736_v6 }
  0x41   : > { %v4768_v27 = vcombine.low %v4752_v21, %v4761_v32  ;;  %v5938_v34 = vshrl.u32 %v4532_v2, 16  ;;  %3967 = vmatprep.subr.bf16.mxu1 %v4744_v44  ;;  %v810_v47 = vrot.slane %v808_v57, 5  ;;  %v5939_v62 = vshll.u32 %v4532_v2, 16 }
  0x42   : > { %v805_v13 = vor.u32 %v804_v49, %v801_v50  ;;  %v4777_v40 = vsel %vm4599_vm3, %v778_v28, %v782_v11  ;;  %v792_v30 = vrot.slane %v791_v51, 4  ;;  %v822_v49 = vshll.u32 %v199_v29, 16 }
  0x43   : > { %5937 = vst [vmem:[#allocation23_spill] sm:$0xff] %v4768_v27  ;;  %v815_v56 = vrot.slane %v5938_v34, 4  ;;  %v818_v59 = vrot.slane %v5939_v62, 5  ;;  %3896 = vmatmul.mubr.msk.bf16.gmra.mxu1 %vm332_vm0, %v5940_v48  ;;  %3879 = vmatprep.mubr.msk.bf16.mxu0 %vm332_vm0, %v4768_v27  ;;  %v5941_v34 = vshrl.u32 %v4566_v3, 16  ;;  %v5942_v11 = vshll.u32 %v4566_v3, 16 }
  0x44   : > { %v806_v50 = vrot.slane %v805_v13, 4  ;;  %v5943_v51 = vcombine.low %v4464_v31, %v4496_v53  ;;  %v797_v12 = vsel %vm4599_vm3, %v792_v30, %v796_v33  ;;  %v836_v57 = vshll.u32 %v201_v26, 16 }
  0x45   : > { %v829_v23 = vrot.slane %v5941_v34, 4  ;;  %v832_v28 = vrot.slane %v5942_v11, 5  ;;  %v819_v25 = vor.u32 %v818_v59, %v815_v56  ;;  %v5944_v62 = vshrl.u32 %v4578_v58, 16 }
  0x46   : > { %3899 = vmatprep.mubr.msk.bf16.mxu1 %vm332_vm0, %v5943_v51  ;;  %v4800_v29 = vcombine.low %v4777_v40, %v797_v12  ;;  %v811_v48 = vsel %vm4599_vm3, %v806_v50, %v810_v47  ;;  %v824_v34 = vrot.slane %v822_v49, 5  ;;  %v838_v53 = vrot.slane %v836_v57, 5  ;;  %v4815_v49 = vld [vmem:[%s4324_s29 + $0x80] sm:$0xf]  ;;  %v215_v57 = vld [vmem:[%s4324_s29 + $0xac] sm:$0x1] }
  0x47   : > { %v843_v13 = vrot.slane %v5944_v62, 4  ;;  %v833_v11 = vor.u32 %v832_v28, %v829_v23  ;;  %v820_v31 = vrot.slane %v819_v25, 4  ;;  %v5945_v51 = vshll.u32 %v4578_v58, 16 }
  0x48   : > { %v850_v33 = vshll.u32 %v203_v36, 16  ;;  %v3456_v30 = vcombine.low %v4508_v60, %v4529_v43  ;;  %v3457_v23 = vcombine.low %v4532_v2, %v4566_v3  ;;  %3880 = vmatmul.mubr.msk.bf16.gmra.mxu0 %vm332_vm0, %v4800_v29  ;;  %v1346_v43 = vshrl.u32 %v4815_v49, 16 }
  0x49   : > { %v846_v27 = vrot.slane %v5945_v51, 5  ;;  %v834_v59 = vrot.slane %v833_v11, 4  ;;  %v825_v62 = vsel %vm4599_vm3, %v820_v31, %v824_v34  ;;  %v1349_v60 = vshll.u32 %v4815_v49, 16  ;;  %v205_v31 = vld [vmem:[%s4324_s29 + $0x84] sm:$0x1] }
  0x4a   : > { %v852_v50 = vrot.slane %v850_v33, 5  ;;  %v4820_v28 = vcombine.low %v811_v48, %v825_v62  ;;  %v4836_v11 = vcombine.low %v4328_v7, %v4341_v18  ;;  %v3458_v33 = vcombine.low %v4578_v58, %v4815_v49 }
  0x4b   : > { %v847_v47 = vor.u32 %v846_v27, %v843_v13  ;;  %v839_v3 = vsel %vm4599_vm3, %v834_v59, %v838_v53  ;;  %3900 = vmatmul.mubr.msk.bf16.gmra.mxu1 %vm332_vm0, %v3456_v30  ;;  %v4841_v53 = vcombine.low %v4640_v1, %v4668_v54  ;;  %v4850_v30 = vcombine.low %v4377_v46, %v4410_v63 }
  0x4c   : > { %3883 = vmatprep.mubr.msk.bf16.mxu0 %vm332_vm0, %v4820_v28  ;;  %5946 = vst [vmem:[#allocation24_spill] sm:$0xff] %v4836_v11  ;;  %3903 = vmatprep.mubr.msk.bf16.mxu1 %vm332_vm0, %v3457_v23  ;;  %v4856_v18 = vcombine.low %v4622_v9, %v4635_v22  ;;  %v1348_v1 = vrot.slane %v1346_v43, 4  ;;  %v1351_v54 = vrot.slane %v1349_v60, 5  ;;  %v4860_v59 = vcombine.low %v4684_v61, %v4703_v8  ;;  %v209_v22 = vld [vmem:[%s4324_s29 + $0x94] sm:$0x1] }
  0x4d   : > { %v848_v27 = vrot.slane %v847_v47, 4  ;;  %5947 = vst [vmem:[#allocation25_spill] sm:$0xff] %v4841_v53  ;;  %5948 = vst [vmem:[#allocation26_spill] sm:$0xff] %v4850_v30  ;;  %v4864_v58 = vcombine.low %v4416_v4, %v4442_v17  ;;  %v4868_v23 = vcombine.low %v4726_v37, %v4752_v21  ;;  %v1355_v47 = vshll.u32 %v205_v31, 16  ;;  %v211_v60 = vld [vmem:[%s4324_s29 + $0x9c] sm:$0x1] }
  0x4e   : > { %5949 = vst [vmem:[#allocation27_spill] sm:$0xff] %v4856_v18  ;;  %v4876_v9 = vcombine.low %v4445_v19, %v4473_v38  ;;  %v4880_v61 = vcombine.low %v4761_v32, %v4777_v40  ;;  %v1352_v8 = vor.u32 %v1351_v54, %v1348_v1  ;;  %v4887_v37 = vcombine.low %v4476_v39, %v4515_v10  ;;  %v4892_v31 = vld [vmem:[%s4324_s29 + $0x110] sm:$0xf] }
  0x4f   : > { %v853_v51 = vsel %vm4599_vm3, %v848_v27, %v852_v50  ;;  %v4871_v50 = vld [vmem:[%s4324_s29 + $0x118] sm:$0xf]  ;;  %v213_v27 = vld [vmem:[%s4324_s29 + $0xa4] sm:$0x1]  ;;  %v4889_v21 = vcombine.low %v797_v12, %v811_v48  ;;  %v1357_v34 = vrot.slane %v1355_v47, 5  ;;  %v4900_v32 = vcombine.low %v4518_v15, %v4556_v24 }
  0x50   : > { %v4852_v7 = vcombine.low %v839_v3, %v853_v51  ;;  %v3115_v43 = vshrl.u32 %v4871_v50, 16  ;;  %v3118_v13 = vshll.u32 %v4871_v50, 16  ;;  %v2729_v40 = vshrl.u32 %v4892_v31, 16 }
  0x51   : > { %v1353_v1 = vrot.slane %v1352_v8, 4  ;;  %v2127_v54 = vshll.u32 %v209_v22, 16  ;;  %v4905_v12 = vcombine.low %v825_v62, %v839_v3  ;;  %v2732_v48 = vshll.u32 %v4892_v31, 16 }
  0x52   : > { %3884 = vmatmul.mubr.msk.bf16.gmra.mxu0 %vm332_vm0, %v4852_v7  ;;  %v2141_v47 = vshll.u32 %v211_v60, 16  ;;  %v2155_v2 = vshll.u32 %v213_v27, 16  ;;  %v4911_v25 = vcombine.low %v4563_v42, %v4892_v31  ;;  %v4913_v36 = vrot.slane %v3115_v43, 4  ;;  %v217_v27 = vld [vmem:[%s4324_s29 + $0xb4] sm:$0x1] }
  0x53   : > { %3911 = vmatprep.mubr.msk.bf16.mxu0 %vm332_vm0, %v4836_v11  ;;  %3904 = vmatmul.mubr.msk.bf16.gmra.mxu1 %vm332_vm0, %v3458_v33  ;;  %v2129_v22 = vrot.slane %v2127_v54, 5  ;;  %v2169_v8 = vshll.u32 %v215_v57, 16  ;;  %v4919_v62 = vsel %vm4599_vm3, %v1353_v1, %v1357_v34  ;;  %v4921_v3 = vrot.slane %v3118_v13, 5  ;;  %v219_v34 = vld [vmem:[%s4324_s29 + $0xbc] sm:$0x1]  ;;  %v4949_v1 = vld [vmem:[%s5847_s1 + $0x60] sm:$0xff]  }
  0x54   : > { %3931 = vmatprep.mubr.msk.bf16.mxu1 %vm332_vm0, %v4856_v18  ;;  %v2143_v60 = vrot.slane %v2141_v47, 5  ;;  %v2157_v33 = vrot.slane %v2155_v2, 5  ;;  %v4924_v56 = vrot.slane %v2729_v40, 4  ;;  %v5950_v54 = vshrl.u32 %v4374_v45, 16 }
  0x55   : > { %v2130_v43 = vsel %vm4599_vm3, %v4371_v41, %v2129_v22  ;;  %v2171_v57 = vrot.slane %v2169_v8, 5  ;;  %v4931_v18 = vrot.slane %v2732_v48, 5  ;;  %v5951_v41 = vshll.u32 %v4374_v45, 16  ;;  %v221_v22 = vld [vmem:[%s4324_s29 + $0xc4] sm:$0x1] }
  0x56   : > { %v2176_v26 = vrot.slane %v5950_v54, 4  ;;  %v4936_v13 = vsel %vm4599_vm3, %v4387_v52, %v2143_v60  ;;  %v4941_v2 = vsel %vm4599_vm3, %v4433_v5, %v2157_v33  ;;  %v4952_v48 = vcombine.low %v853_v51, %v4919_v62 }
  0x57   : > { %v2179_v40 = vrot.slane %v5951_v41, 5  ;;  %v4955_v52 = vcombine.low %v2130_v43, %v4936_v13  ;;  %v4960_v5 = vsel %vm4599_vm3, %v4435_v14, %v2171_v57  ;;  %v2183_v47 = vshll.u32 %v217_v27, 16  ;;  %v223_v43 = vld [vmem:[%s4324_s29 + $0xcc] sm:$0x1]  ;;  %v4977_v14 = vld [vmem:[%s5847_s1 + $0x70] sm:$0xff]  }
  0x58   : > { %5952 = vst [vmem:[#allocation28_spill] sm:$0xff] %v4960_v5  ;;  %v4967_v8 = vcombine.low %v4941_v2, %v4960_v5  ;;  %v5953_v51 = vshrl.u32 %v4377_v46, 16  ;;  %5954 = vst [vmem:[#allocation29_spill] sm:$0xff] %v4977_v14  ;;  %v5955_v57 = vshll.u32 %v4377_v46, 16  ;;  %v2197_v41 = vshll.u32 %v219_v34, 16  ;;  %v4996_v34 = vld [vmem:[%s5847_s1 + $0x88] sm:$0xff]  }
  0x59   : > { %v2180_v60 = vor.u32 %v2179_v40, %v2176_v26  ;;  %v2185_v27 = vrot.slane %v2183_v47, 5  ;;  %v5956_v26 = vshrl.u32 %v4410_v63, 16  ;;  %v5957_v45 = vshll.u32 %v4410_v63, 16  ;;  %v229_v5 = vld [vmem:[%s4324_s29 + $0xe4] sm:$0x1] }
  0x5a   : > { %v2190_v33 = vrot.slane %v5953_v51, 4  ;;  %3912 = vmatmul.mubr.msk.bf16.vlgmr.msra.gmra.mxu0 %vm332_vm0, %v4595_v35  ;;  %v2193_v54 = vrot.slane %v5955_v57, 5  ;;  %v2211_v11 = vshll.u32 %v221_v22, 16  ;;  %v5958_v47 = vshrl.u32 %v4416_v4, 16  ;;  %v225_v22 = vld [vmem:[%s4324_s29 + $0xd4] sm:$0x1] }
  0x5b   : > { %v2204_v40 = vrot.slane %v5956_v26, 4  ;;  %3948 = vmatpush3.bf16.msra.mxu0 %v4719_v20  ;;  %3915 = vmatprep.mubr.msk.bf16.mxu0 %vm332_vm0, %v4850_v30  ;;  %v2181_v51 = vrot.slane %v2180_v60, 4  ;;  %v2207_v35 = vrot.slane %v5957_v45, 5  ;;  %v2199_v60 = vrot.slane %v2197_v41, 5  ;;  %v227_v20 = vld [vmem:[%s4324_s29 + $0xdc] sm:$0x1] }
  0x5c   : > { %v2218_v46 = vrot.slane %v5958_v47, 4  ;;  %3932 = vmatmul.mubr.msk.bf16.vlgmr.msra.gmra.mxu1 %vm332_vm0, %v4841_v53  ;;  %3949 = vmatprep.subr.bf16.mxu0 %v4949_v1  ;;  %v2194_v57 = vor.u32 %v2193_v54, %v2190_v33  ;;  %v5959_v63 = vshll.u32 %v4416_v4, 16  ;;  %v2225_v26 = vshll.u32 %v223_v43, 16 }
  0x5d   : > { %3968 = vmatpush3.bf16.msra.mxu1 %v4744_v44  ;;  %3935 = vmatprep.mubr.msk.bf16.mxu1 %vm332_vm0, %v4860_v59  ;;  %v5006_v47 = vsel %vm4599_vm3, %v2181_v51, %v2185_v27  ;;  %v2208_v53 = vor.u32 %v2207_v35, %v2204_v40  ;;  %v2213_v30 = vrot.slane %v2211_v11, 5  ;;  %v5961_v33 = vshrl.u32 %v4442_v17, 16 }
  0x5e   : > { %v2221_v45 = vrot.slane %v5959_v63, 5  ;;  %5960 = vst [vmem:[#allocation30_spill] sm:$0xff] %v5006_v47  ;;  %3969 = vmatprep.subr.bf16.mxu1 %v4977_v14  ;;  %v2195_v4 = vrot.slane %v2194_v57, 4  ;;  %v2227_v63 = vrot.slane %v2225_v26, 5  ;;  %v5962_v35 = vshll.u32 %v4442_v17, 16 }
  0x5f   : > { %v2232_v54 = vrot.slane %v5961_v33, 4  ;;  %3950 = vmatpush3.bf16.msra.mxu0 %v4949_v1  ;;  %v2209_v27 = vrot.slane %v2208_v53, 4  ;;  %v2239_v40 = vshll.u32 %v225_v22, 16  ;;  %v5963_v51 = vshrl.u32 %v4445_v19, 16 }
  0x60   : > { %v2222_v41 = vor.u32 %v2221_v45, %v2218_v46  ;;  %v2235_v11 = vrot.slane %v5962_v35, 5  ;;  %3987 = vmatprep.subr.bf16.mxu0 %v4996_v34  ;;  %v5022_v57 = vsel %vm4599_vm3, %v2195_v4, %v2199_v60  ;;  %v5964_v46 = vshll.u32 %v4445_v19, 16  ;;  %v231_v60 = vld [vmem:[%s4324_s29 + $0xec] sm:$0x1] }
  0x61   : > { %v2246_v33 = vrot.slane %v5963_v51, 4  ;;  %v2253_v26 = vshll.u32 %v227_v20, 16  ;;  %3970 = vmatpush3.bf16.msra.mxu1 %v4977_v14  ;;  %v5030_v17 = vcombine.low %v5006_v47, %v5022_v57  ;;  %v5034_v53 = vsel %vm4599_vm3, %v2209_v27, %v2213_v30 }
  0x62   : > { %v2223_v43 = vrot.slane %v2222_v41, 4  ;;  %v2249_v45 = vrot.slane %v5964_v46, 5  ;;  %v2236_v22 = vor.u32 %v2235_v11, %v2232_v54  ;;  %v2241_v35 = vrot.slane %v2239_v40, 5  ;;  %3916 = vmatmul.mubr.msk.bf16.gmra.mxu0 %vm332_vm0, %v4864_v58  ;;  %4007 = vmatprep.subr.bf16.mxu1 %v4297_v0 }
  0x63   : > { %v2255_v4 = vrot.slane %v2253_v26, 5  ;;  %v5965_v41 = vshrl.u32 %v4473_v38, 16  ;;  %3919 = vmatprep.mubr.msk.bf16.mxu0 %vm332_vm0, %v4876_v9  ;;  %v5966_v0 = vshll.u32 %v4473_v38, 16  ;;  %v2267_v11 = vshll.u32 %v229_v5, 16  ;;  %v233_v26 = vld [vmem:[%s4324_s29 + $0xf4] sm:$0x1] }
  0x64   : > { %v5042_v19 = vsel %vm4599_vm3, %v2223_v43, %v2227_v63  ;;  %v2250_v20 = vor.u32 %v2249_v45, %v2246_v33  ;;  %v2237_v54 = vrot.slane %v2236_v22, 4  ;;  %3936 = vmatmul.mubr.msk.bf16.gmra.mxu1 %vm332_vm0, %v4868_v23  ;;  %v5967_v63 = vshrl.u32 %v4476_v39, 16 }
  0x65   : > { %v2260_v51 = vrot.slane %v5965_v41, 4  ;;  %v5050_v30 = vcombine.low %v5034_v53, %v5042_v19  ;;  %v2263_v27 = vrot.slane %v5966_v0, 5  ;;  %v5968_v33 = vshll.u32 %v4476_v39, 16  ;;  %3939 = vmatprep.mubr.msk.bf16.mxu1 %vm332_vm0, %v4880_v61  ;;  %v235_v41 = vld [vmem:[%s4324_s29 + $0xfc] sm:$0x1] }
  0x66   : > { %v2251_v43 = vrot.slane %v2250_v20, 4  ;;  %v2274_v40 = vrot.slane %v5967_v63, 4  ;;  %v2281_v45 = vshll.u32 %v231_v60, 16  ;;  %v5065_v38 = vsel %vm4599_vm3, %v2237_v54, %v2241_v35 }
  0x67   : > { %v2277_v46 = vrot.slane %v5968_v33, 5  ;;  %5969 = vst [vmem:[#allocation31_spill] sm:$0xff] %v5065_v38  ;;  %v2264_v5 = vor.u32 %v2263_v27, %v2260_v51  ;;  %v2269_v22 = vrot.slane %v2267_v11, 5  ;;  %v5970_v20 = vshrl.u32 %v4515_v10, 16 }
  0x68   : > { %v5072_v39 = vsel %vm4599_vm3, %v2251_v43, %v2255_v4  ;;  %v2283_v33 = vrot.slane %v2281_v45, 5  ;;  %v5971_v54 = vshll.u32 %v4515_v10, 16  ;;  %v2295_v11 = vshll.u32 %v233_v26, 16 }
  0x69   : > { %v2288_v0 = vrot.slane %v5970_v20, 4  ;;  %v2278_v63 = vor.u32 %v2277_v46, %v2274_v40  ;;  %v5078_v35 = vcombine.low %v5065_v38, %v5072_v39  ;;  %v2265_v51 = vrot.slane %v2264_v5, 4  ;;  %v237_v40 = vld [vmem:[%s4324_s29 + $0x104] sm:$0x1]  ;;  %v239_v38 = vld [vmem:[%s4324_s29 + $0x10c] sm:$0x1] }
  0x6a   : > { %v2291_v27 = vrot.slane %v5971_v54, 5  ;;  %v5972_v4 = vshrl.u32 %v4518_v15, 16  ;;  %v5973_v14 = vshll.u32 %v4518_v15, 16  ;;  %v2309_v60 = vshll.u32 %v235_v41, 16  ;;  %3920 = vmatmul.mubr.msk.bf16.gmra.mxu0 %vm332_vm0, %v4887_v37  ;;  %v241_v41 = vld [vmem:[%s4324_s29 + $0x114] sm:$0x1] }
  0x6b   : > { %v2279_v20 = vrot.slane %v2278_v63, 4  ;;  %v5089_v46 = vsel %vm4599_vm3, %v2265_v51, %v2269_v22  ;;  %v2297_v5 = vrot.slane %v2295_v11, 5  ;;  %v5974_v10 = vshrl.u32 %v4556_v24, 16  ;;  %3923 = vmatprep.mubr.msk.bf16.mxu0 %vm332_vm0, %v4900_v32 }
  0x6c   : > { %v2302_v43 = vrot.slane %v5972_v4, 4  ;;  %v2305_v47 = vrot.slane %v5973_v14, 5  ;;  %v2292_v45 = vor.u32 %v2291_v27, %v2288_v0  ;;  %v2311_v14 = vrot.slane %v2309_v60, 5  ;;  %3940 = vmatmul.mubr.msk.bf16.gmra.mxu1 %vm332_vm0, %v4889_v21 }
  0x6d   : > { %v2316_v54 = vrot.slane %v5974_v10, 4  ;;  %v5098_v26 = vsel %vm4599_vm3, %v2279_v20, %v2283_v33  ;;  %v5975_v22 = vshll.u32 %v4556_v24, 16  ;;  %v2323_v27 = vshll.u32 %v237_v40, 16  ;;  %3943 = vmatprep.mubr.msk.bf16.mxu1 %vm332_vm0, %v4905_v12  ;;  %v243_v40 = vld [vmem:[%s4324_s29 + $0x11c] sm:$0x1] }
  0x6e   : > { %v2306_v15 = vor.u32 %v2305_v47, %v2302_v43  ;;  %v5107_v0 = vcombine.low %v5089_v46, %v5098_v26  ;;  %v2293_v51 = vrot.slane %v2292_v45, 4  ;;  %v5976_v11 = vshrl.u32 %v4563_v42, 16 }
  0x6f   : > { %v2319_v63 = vrot.slane %v5975_v22, 5  ;;  %v5977_v24 = vshll.u32 %v4563_v42, 16  ;;  %v2337_v4 = vshll.u32 %v239_v38, 16  ;;  %v2325_v45 = vrot.slane %v2323_v27, 5 }
  0x70   : > { %v2330_v33 = vrot.slane %v5976_v11, 4  ;;  %v2307_v47 = vrot.slane %v2306_v15, 4  ;;  %v5119_v43 = vsel %vm4599_vm3, %v2293_v51, %v2297_v5  ;;  %v2735_v10 = vor.u32 %v4931_v18, %v4924_v56 }
  0x71   : > { %v2320_v60 = vor.u32 %v2319_v63, %v2316_v54  ;;  %v2333_v20 = vrot.slane %v5977_v24, 5  ;;  %v2738_v22 = vshll.u32 %v241_v41, 16  ;;  %v2339_v5 = vrot.slane %v2337_v4, 5  ;;  %v5980_v4 = vld [vmem:[#allocation3_spill] sm:$0xff] }
  0x72   : > { %v5126_v54 = vsel %vm4599_vm3, %v2307_v47, %v2311_v14  ;;  %v2736_v51 = vrot.slane %v2735_v10, 4  ;;  %v5978_v56 = vor.u32 %v4921_v3, %v4913_v36  ;;  %v3124_v11 = vshll.u32 %v243_v40, 16  ;;  %3924 = vmatmul.mubr.msk.bf16.gmra.mxu0 %vm332_vm0, %v4911_v25  ;;  %v5979_v36 = vld [vmem:[#allocation4_spill] sm:$0xff] }
  0x73   : > { %v2321_v38 = vrot.slane %v2320_v60, 4  ;;  %v2334_v15 = vor.u32 %v2333_v20, %v2330_v33  ;;  %v5132_v63 = vcombine.low %v5119_v43, %v5126_v54  ;;  %v2740_v27 = vrot.slane %v2738_v22, 5  ;;  %3951 = vmatprep.mubr.msk.bf16.mxu0 %vm332_vm0, %v5979_v36  ;;  %v5982_v22 = vld [vmem:[#allocation6_spill] sm:$0xff]  ;;  %v5988_v36 = vld [vmem:[#allocation9_spill] sm:$0xff] }
  0x74   : > { %v3122_v18 = vrot.slane %v5978_v56, 4  ;;  %v3126_v60 = vrot.slane %v3124_v11, 5  ;;  %3944 = vmatmul.mubr.msk.bf16.gmra.mxu1 %vm332_vm0, %v4952_v48  ;;  %v4250_v56 = vld [vmem:[%s5847_s1 + $0x8] sm:$0xff]   ;;  %v5222_v42 = vcombine.low %v4892_v31, %v4871_v50  ;;  %v4252_v31 = vld [vmem:[%s5847_s1] sm:$0xff]  }
  0x75   : > { %v5139_v14 = vsel %vm4599_vm3, %v2321_v38, %v2325_v45  ;;  %v2335_v41 = vrot.slane %v2334_v15, 4  ;;  %v5143_v33 = vsel %vm4599_vm3, %v2736_v51, %v2740_v27  ;;  %3971 = vmatprep.mubr.msk.bf16.mxu1 %vm332_vm0, %v5980_v4  ;;  %v5171_v45 = vld [vmem:[%s5847_s1 + $0x80] sm:$0xff]   ;;  %v5983_v38 = vld [vmem:[#allocation8_spill] sm:$0xff]  ;;  %v5984_v15 = vld [vmem:[#allocation5_spill] sm:$0xff] }
  0x76   : > { %v3127_v20 = vsel %vm4599_vm3, %v3122_v18, %v3126_v60  ;;  %v5985_v51 = vld [vmem:[#allocation7_spill] sm:$0xff]  ;;  %v4249_v27 = vld [vmem:[%s5847_s1 + $0x10] sm:$0xff]  }
  0x77   : > { %v5149_v47 = vsel %vm4599_vm3, %v2335_v41, %v2339_v5  ;;  %v5166_v40 = vcombine.low %v5143_v33, %v3127_v20  ;;  %v4248_v5 = vld [vmem:[%s5847_s1 + $0x18] sm:$0xff]   ;;  %v5986_v41 = vld [vmem:[#allocation10_spill] sm:$0xff]  ;;  %v4251_v11 = vld [vmem:[%s5847_s1 + $0x28] sm:$0xff]  }
  0x78   : > { %v5155_v3 = vcombine.low %v5139_v14, %v5149_v47  ;;  %v5987_v60 = vld [vmem:[#allocation12_spill] sm:$0xff]  ;;  %v5989_v20 = vld [vmem:[#allocation11_spill] sm:$0xff] }
  0x79   : > { %5981 = vst [vmem:[#allocation4_spill] sm:$0xff] %v5166_v40  ;;  %v5996_v18 = vld [vmem:[#allocation23_spill] sm:$0xff] }
  0x7a   : > { %3952 = vmatmul.mubr.msk.bf16.vlgmr.msra.gmra.mxu0 %vm332_vm0, %v5982_v22  ;;  %v4254_v22 = vld [vmem:[%s5847_s1 + $0x38] sm:$0xff]  }
  0x7b   : > { %3988 = vmatpush3.bf16.msra.mxu0 %v4996_v34  ;;  %3955 = vmatprep.mubr.msk.bf16.mxu0 %vm332_vm0, %v5983_v38  ;;  %v5990_v38 = vld [vmem:[#allocation14_spill] sm:$0xff] }
  0x7c   : > { %3972 = vmatmul.mubr.msk.bf16.vlgmr.msra.gmra.mxu1 %vm332_vm0, %v5984_v15  ;;  %3989 = vmatprep.subr.bf16.mxu0 %v5171_v45 }
  0x7d   : > { %4008 = vmatpush3.bf16.msra.mxu1 %v4248_v5  ;;  %3975 = vmatprep.mubr.msk.bf16.mxu1 %vm332_vm0, %v5985_v51  ;;  %v5991_v5 = vld [vmem:[#allocation17_spill] sm:$0xff] }
  0x7e   : > { %4009 = vmatprep.subr.bf16.mxu1 %v4249_v27 }
  0x7f   : > { %3990 = vmatpush3.bf16.msra.mxu0 %v5171_v45 }
  0x80   : > { %4027 = vmatprep.subr.bf16.mxu0 %v4250_v56 }
  0x81   : > { %4010 = vmatpush3.bf16.msra.mxu1 %v4249_v27  ;;  %v206_v27 = vld [vmem:[%s4324_s29 + $0x88] sm:$0xf] }
  0x82   : > { %3956 = vmatmul.mubr.msk.bf16.gmra.mxu0 %vm332_vm0, %v5986_v41  ;;  %4047 = vmatprep.subr.bf16.mxu1 %v4251_v11  ;;  %v5992_v41 = vld [vmem:[#allocation13_spill] sm:$0xff]  ;;  %v3505_v24 = vcombine.low %v4815_v49, %v206_v27  ;;  %v1780_v49 = vshrl.u32 %v206_v27, 16  ;;  %v1783_v50 = vshll.u32 %v206_v27, 16 }
  0x83   : > { %3959 = vmatprep.mubr.msk.bf16.mxu0 %vm332_vm0, %v5987_v60  ;;  %v5993_v60 = vld [vmem:[#allocation15_spill] sm:$0xff] }
  0x84   : > { %3976 = vmatmul.mubr.msk.bf16.gmra.mxu1 %vm332_vm0, %v5988_v36  ;;  %v1785_v27 = vrot.slane %v1783_v50, 5 }
  0x85   : > { %3979 = vmatprep.mubr.msk.bf16.mxu1 %vm332_vm0, %v5989_v20 }
  0x8a   : > { %3960 = vmatmul.mubr.msk.bf16.gmra.mxu0 %vm332_vm0, %v5990_v38  ;;  %v5994_v38 = vld [vmem:[#allocation19_spill] sm:$0xff] }
  0x8b   : > { %3963 = vmatprep.mubr.msk.bf16.mxu0 %vm332_vm0, %v5991_v5  ;;  %v5995_v5 = vld [vmem:[#allocation18_spill] sm:$0xff] }
  0x8c   : > { %3980 = vmatmul.mubr.msk.bf16.gmra.mxu1 %vm332_vm0, %v5992_v41 }
  0x8d   : > { %3983 = vmatprep.mubr.msk.bf16.mxu1 %vm332_vm0, %v5993_v60 }
  0x92   : > { %3964 = vmatmul.mubr.msk.bf16.gmra.mxu0 %vm332_vm0, %v3505_v24  ;;  %v4253_v24 = vld [vmem:[%s5847_s1 + $0x20] sm:$0xff]  }
  0x93   : > { %3991 = vmatprep.mubr.msk.bf16.mxu0 %vm332_vm0, %v5994_v38 }
  0x94   : > { %3984 = vmatmul.mubr.msk.bf16.gmra.mxu1 %vm332_vm0, %v5222_v42 }
  0x95   : > { %4011 = vmatprep.mubr.msk.bf16.mxu1 %vm332_vm0, %v5995_v5  ;;  %v207_v5 = vld [vmem:[%s4324_s29 + $0x8c] sm:$0x1] }
  0x96   : > { %v1789_v50 = vshll.u32 %v207_v5, 16  ;;  %v6002_v5 = vld [vmem:[#allocation27_spill] sm:$0xff] }
  0x9a   : > { %3992 = vmatmul.mubr.msk.bf16.vlgmr.msra.gmra.mxu0 %vm332_vm0, %v4699_v16 }
  0x9b   : > { %4028 = vmatpush3.bf16.msra.mxu0 %v4250_v56  ;;  %3995 = vmatprep.mubr.msk.bf16.mxu0 %vm332_vm0, %v4736_v6  ;;  %v1782_v56 = vrot.slane %v1780_v49, 4 }
  0x9c   : > { %4012 = vmatmul.mubr.msk.bf16.vlgmr.msra.gmra.mxu1 %vm332_vm0, %v5994_v38  ;;  %4029 = vmatprep.subr.bf16.mxu0 %v4252_v31 }
  0x9d   : > { %4048 = vmatpush3.bf16.msra.mxu1 %v4251_v11  ;;  %4015 = vmatprep.mubr.msk.bf16.mxu1 %vm332_vm0, %v4699_v16  ;;  %v4255_v11 = vld [vmem:[%s5847_s1 + $0x48] sm:$0xff]   ;;  %v1786_v49 = vor.u32 %v1785_v27, %v1782_v56  ;;  %v5998_v27 = vld [vmem:[#allocation2_spill] sm:$0xff] }
  0x9e   : > { %4049 = vmatprep.subr.bf16.mxu1 %v4253_v24 }
  0x9f   : > { %4030 = vmatpush3.bf16.msra.mxu0 %v4252_v31  ;;  %v1787_v31 = vrot.slane %v1786_v49, 4 }
  0xa0   : > { %4067 = vmatprep.subr.bf16.mxu0 %v4254_v22 }
  0xa1   : > { %4050 = vmatpush3.bf16.msra.mxu1 %v4253_v24  ;;  %v1791_v24 = vrot.slane %v1789_v50, 5  ;;  %v6003_v50 = vld [vmem:[#allocation16_spill] sm:$0xff] }
  0xa2   : > { %3996 = vmatmul.mubr.msk.bf16.gmra.mxu0 %vm332_vm0, %v5996_v18  ;;  %4087 = vmatprep.subr.bf16.mxu1 %v4255_v11 }
  0xa3   : > { %3999 = vmatprep.mubr.msk.bf16.mxu0 %vm332_vm0, %v4800_v29  ;;  %v1792_v10 = vsel %vm4599_vm3, %v1787_v31, %v1791_v24 }
  0xa4   : > { %4016 = vmatmul.mubr.msk.bf16.gmra.mxu1 %vm332_vm0, %v4736_v6  ;;  %v5273_v56 = vcombine.low %v4919_v62, %v1792_v10  ;;  %v5999_v62 = vld [vmem:[#allocation20_spill] sm:$0xff]  ;;  %v6000_v10 = vld [vmem:[#allocation22_spill] sm:$0xff] }
  0xa5   : > { %4019 = vmatprep.mubr.msk.bf16.mxu1 %vm332_vm0, %v5996_v18 }
  0xa6   : > { %5997 = vst [vmem:[#allocation3_spill] sm:$0xff] %v5273_v56 }
  0xaa   : > { %4000 = vmatmul.mubr.msk.bf16.gmra.mxu0 %vm332_vm0, %v4820_v28 }
  0xab   : > { %4003 = vmatprep.mubr.msk.bf16.mxu0 %vm332_vm0, %v4852_v7 }
  0xac   : > { %4020 = vmatmul.mubr.msk.bf16.gmra.mxu1 %vm332_vm0, %v4800_v29 }
  0xad   : > { %4023 = vmatprep.mubr.msk.bf16.mxu1 %vm332_vm0, %v4820_v28 }
  0xb2   : > { %4004 = vmatmul.mubr.msk.bf16.gmra.mxu0 %vm332_vm0, %v5273_v56 }
  0xb3   : > { %4031 = vmatprep.mubr.msk.bf16.mxu0 %vm332_vm0, %v5998_v27  ;;  %v6004_v27 = vld [vmem:[#allocation26_spill] sm:$0xff] }
  0xb4   : > { %4024 = vmatmul.mubr.msk.bf16.gmra.mxu1 %vm332_vm0, %v4852_v7 }
  0xb5   : > { %4051 = vmatprep.mubr.msk.bf16.mxu1 %vm332_vm0, %v4955_v52  ;;  %v4257_v52 = vld [vmem:[%s5847_s1 + $0x58] sm:$0xff]  }
  0xba   : > { %4032 = vmatmul.mubr.msk.bf16.vlgmr.msra.gmra.mxu0 %vm332_vm0, %v5980_v4 }
  0xbb   : > { %4068 = vmatpush3.bf16.msra.mxu0 %v4254_v22  ;;  %4035 = vmatprep.mubr.msk.bf16.mxu0 %vm332_vm0, %v5984_v15  ;;  %v6001_v22 = vld [vmem:[#allocation24_spill] sm:$0xff] }
  0xbc   : > { %4052 = vmatmul.mubr.msk.bf16.vlgmr.msra.gmra.mxu1 %vm332_vm0, %v4967_v8  ;;  %4069 = vmatprep.subr.bf16.mxu0 %v4256_v55 }
  0xbd   : > { %4088 = vmatpush3.bf16.msra.mxu1 %v4255_v11  ;;  %4055 = vmatprep.mubr.msk.bf16.mxu1 %vm332_vm0, %v5030_v17 }
  0xbe   : > { %4089 = vmatprep.subr.bf16.mxu1 %v5999_v62 }
  0xbf   : > { %4070 = vmatpush3.bf16.msra.mxu0 %v4256_v55 }
  0xc0   : > { %4107 = vmatprep.subr.bf16.mxu0 %v4257_v52 }
  0xc1   : > { %4090 = vmatpush3.bf16.msra.mxu1 %v5999_v62  ;;  %v6005_v62 = vld [vmem:[#allocation25_spill] sm:$0xff] }
  0xc2   : > { %4036 = vmatmul.mubr.msk.bf16.gmra.mxu0 %vm332_vm0, %v5985_v51  ;;  %4127 = vmatprep.subr.bf16.mxu1 %v6000_v10 }
  0xc3   : > { %4039 = vmatprep.mubr.msk.bf16.mxu0 %vm332_vm0, %v5988_v36 }
  0xc4   : > { %4056 = vmatmul.mubr.msk.bf16.gmra.mxu1 %vm332_vm0, %v5050_v30 }
  0xc5   : > { %4059 = vmatprep.mubr.msk.bf16.mxu1 %vm332_vm0, %v5078_v35 }
  0xca   : > { %4040 = vmatmul.mubr.msk.bf16.gmra.mxu0 %vm332_vm0, %v5989_v20 }
  0xcb   : > { %4043 = vmatprep.mubr.msk.bf16.mxu0 %vm332_vm0, %v5992_v41 }
  0xcc   : > { %4060 = vmatmul.mubr.msk.bf16.gmra.mxu1 %vm332_vm0, %v5107_v0 }
  0xcd   : > { %4063 = vmatprep.mubr.msk.bf16.mxu1 %vm332_vm0, %v5132_v63 }
  0xd2   : > { %4044 = vmatmul.mubr.msk.bf16.gmra.mxu0 %vm332_vm0, %v5993_v60 }
  0xd3   : > { %4071 = vmatprep.mubr.msk.bf16.mxu0 %vm332_vm0, %v6001_v22  ;;  %v6006_v22 = vld [vmem:[#allocation21_spill] sm:$0xff] }
  0xd4   : > { %4064 = vmatmul.mubr.msk.bf16.gmra.mxu1 %vm332_vm0, %v5155_v3 }
  0xd5   : > { %4091 = vmatprep.mubr.msk.bf16.mxu1 %vm332_vm0, %v6002_v5 }
  0xd8   : > { %v3833_v11 = vpop.f32.mrf.mxu0 }
  0xda   : > { %v391_v49 = vpop.f32.mrf.mxu0  ;;  %4072 = vmatmul.mubr.msk.bf16.vlgmr.msra.gmra.mxu0 %vm332_vm0, %v6003_v50 }
  0xdb   : > { %v3853_v31 = vpop.f32.mrf.mxu1  ;;  %4108 = vmatpush3.bf16.msra.mxu0 %v4257_v52  ;;  %4075 = vmatprep.mubr.msk.bf16.mxu0 %vm332_vm0, %v6004_v27 }
  0xdc   : > { %v3834_v24 = vpop.f32.mrf.mxu0  ;;  %v5328_v55 = vadd.f32 %v3853_v31, %v3833_v11  ;;  %4092 = vmatmul.mubr.msk.bf16.vlgmr.msra.gmra.mxu1 %vm332_vm0, %v6005_v62  ;;  %4109 = vmatprep.subr.bf16.mxu0 %v6006_v22 }
  0xdd   : > { %v564_v40 = vpop.f32.mrf.mxu1  ;;  %4128 = vmatpush3.bf16.msra.mxu1 %v6000_v10  ;;  %4095 = vmatprep.mubr.msk.bf16.mxu1 %vm332_vm0, %v4860_v59 }
  0xde   : > { %v5336_v5 = vadd.f32 %v564_v40, %v391_v49  ;;  %v394_v52 = vpop.f32.mrf.mxu0  ;;  %4129 = vmatprep.subr.bf16.mxu1 %v4949_v1 }
  0xdf   : > { %v3854_v50 = vpop.f32.mrf.mxu1  ;;  %4110 = vmatpush3.bf16.msra.mxu0 %v6006_v22 }
  0xe0   : > { %v5340_v11 = vadd.f32 %v3854_v50, %v3834_v24  ;;  %4147 = vmatprep.subr.bf16.mxu0 %v4744_v44  ;;  %v3837_v10 = vpop.f32.mrf.mxu0 }
  0xe1   : > { %v567_v31 = vpop.f32.mrf.mxu1  ;;  %4130 = vmatpush3.bf16.msra.mxu1 %v4949_v1 }
  0xe2   : > { %v5344_v27 = vadd.f32 %v567_v31, %v394_v52  ;;  %4076 = vmatmul.mubr.msk.bf16.gmra.mxu0 %vm332_vm0, %v4864_v58  ;;  %4167 = vmatprep.subr.bf16.mxu1 %v4996_v34  ;;  %v407_v40 = vpop.f32.mrf.mxu0 }
  0xe3   : > { %4079 = vmatprep.mubr.msk.bf16.mxu0 %vm332_vm0, %v4876_v9  ;;  %v3857_v59 = vpop.f32.mrf.mxu1 }
  0xe4   : > { %4096 = vmatmul.mubr.msk.bf16.gmra.mxu1 %vm332_vm0, %v4868_v23  ;;  %v5353_v49 = vadd.f32 %v3857_v59, %v3837_v10  ;;  %v3838_v24 = vpop.f32.mrf.mxu0 }
  0xe5   : > { %4099 = vmatprep.mubr.msk.bf16.mxu1 %vm332_vm0, %v4880_v61  ;;  %v580_v1 = vpop.f32.mrf.mxu1 }
  0xe6   : > { %v5357_v62 = vadd.f32 %v580_v1, %v407_v40  ;;  %v410_v22 = vpop.f32.mrf.mxu0 }
  0xe7   : > { %v3858_v58 = vpop.f32.mrf.mxu1 }
  0xe8   : > { %v5359_v52 = vadd.f32 %v3858_v58, %v3838_v24  ;;  %v3841_v9 = vpop.f32.mrf.mxu0 }
  0xe9   : > { %v583_v50 = vpop.f32.mrf.mxu1 }
  0xea   : > { %4080 = vmatmul.mubr.msk.bf16.gmra.mxu0 %vm332_vm0, %v4887_v37  ;;  %v5363_v23 = vadd.f32 %v583_v50, %v410_v22  ;;  %v423_v61 = vpop.f32.mrf.mxu0  ;;  %v6007_v50 = vcombine.low %v4936_v13, %v4941_v2 }
  0xeb   : > { %4083 = vmatprep.mubr.msk.bf16.mxu0 %vm332_vm0, %v4900_v32  ;;  %v3861_v31 = vpop.f32.mrf.mxu1 }
  0xec   : > { %4100 = vmatmul.mubr.msk.bf16.gmra.mxu1 %vm332_vm0, %v4889_v21  ;;  %v5369_v10 = vadd.f32 %v3861_v31, %v3841_v9  ;;  %v3842_v40 = vpop.f32.mrf.mxu0 }
  0xed   : > { %4103 = vmatprep.mubr.msk.bf16.mxu1 %vm332_vm0, %v4905_v12  ;;  %v596_v59 = vpop.f32.mrf.mxu1 }
  0xee   : > { %v5373_v1 = vadd.f32 %v596_v59, %v423_v61  ;;  %v426_v24 = vpop.f32.mrf.mxu0 }
  0xef   : > { %v3862_v37 = vpop.f32.mrf.mxu1 }
  0xf0   : > { %v5375_v58 = vadd.f32 %v3862_v37, %v3842_v40  ;;  %v3845_v32 = vpop.f32.mrf.mxu0 }
  0xf1   : > { %v599_v22 = vpop.f32.mrf.mxu1 }
  0xf2   : > { %4084 = vmatmul.mubr.msk.bf16.gmra.mxu0 %vm332_vm0, %v4911_v25  ;;  %v5379_v21 = vadd.f32 %v599_v22, %v426_v24  ;;  %v439_v9 = vpop.f32.mrf.mxu0  ;;  %v6008_v22 = vld [vmem:[#allocation28_spill] sm:$0xff] }
  0xf3   : > { %4111 = vmatprep.mubr.msk.bf16.mxu0 %vm332_vm0, %v6007_v50  ;;  %v3865_v12 = vpop.f32.mrf.mxu1  ;;  %v6009_v50 = vld [vmem:[#allocation30_spill] sm:$0xff] }
  0xf4   : > { %4104 = vmatmul.mubr.msk.bf16.gmra.mxu1 %vm332_vm0, %v4952_v48  ;;  %v5387_v31 = vadd.f32 %v3865_v12, %v3845_v32  ;;  %v3846_v59 = vpop.f32.mrf.mxu0  ;;  %v6010_v56 = vcombine.low %v6008_v22, %v6009_v50  ;;  %v6015_v50 = vcombine.low %v5072_v39, %v5089_v46 }
  0xf5   : > { %4131 = vmatprep.mubr.msk.bf16.mxu1 %vm332_vm0, %v5980_v4  ;;  %v612_v61 = vpop.f32.mrf.mxu1  ;;  %v6011_v4 = vcombine.low %v5022_v57, %v5034_v53 }
  0xf6   : > { %v5391_v25 = vadd.f32 %v612_v61, %v439_v9  ;;  %v442_v37 = vpop.f32.mrf.mxu0  ;;  %v6012_v61 = vld [vmem:[#allocation29_spill] sm:$0xff] }
  0xf7   : > { %v3866_v40 = vpop.f32.mrf.mxu1 }
  0xf8   : > { %v5393_v24 = vadd.f32 %v3866_v40, %v3846_v59  ;;  %v3873_v2 = vpop.f32.mrf.mxu0 }
  0xf9   : > { %v615_v13 = vpop.f32.mrf.mxu1  ;;  %v1013_v32 = vadd.f32 %v3873_v2, %v5328_v55 }
  0xfa   : > { %4112 = vmatmul.mubr.msk.bf16.vlgmr.msra.gmra.mxu0 %vm332_vm0, %v6010_v56  ;;  %v5399_v48 = vadd.f32 %v615_v13, %v442_v37  ;;  %v948_v9 = vpop.f32.mrf.mxu0  ;;  %v6013_v13 = vld [vmem:[#allocation31_spill] sm:$0xff] }
  0xfb   : > { %4148 = vmatpush3.bf16.msra.mxu0 %v4744_v44  ;;  %4115 = vmatprep.mubr.msk.bf16.mxu0 %vm332_vm0, %v6011_v4  ;;  %v3893_v12 = vpop.f32.mrf.mxu1  ;;  %v1011_v56 = vadd.f32 %v948_v9, %v5336_v5  ;;  %v6014_v2 = vcombine.low %v5042_v19, %v6013_v13 }
  0xfc   : > { %4132 = vmatmul.mubr.msk.bf16.vlgmr.msra.gmra.mxu1 %vm332_vm0, %v5984_v15  ;;  %4149 = vmatprep.subr.bf16.mxu0 %v6012_v61  ;;  %v5410_v59 = vadd.f32 %v3893_v12, %v1013_v32  ;;  %v3874_v57 = vpop.f32.mrf.mxu0 }
  0xfd   : > { %4168 = vmatpush3.bf16.msra.mxu1 %v4996_v34  ;;  %4135 = vmatprep.mubr.msk.bf16.mxu1 %vm332_vm0, %v5985_v51  ;;  %v1107_v44 = vpop.f32.mrf.mxu1  ;;  %v1014_v15 = vadd.f32 %v3874_v57, %v5340_v11 }
  0xfe   : > { %4169 = vmatprep.subr.bf16.mxu1 %v5171_v45  ;;  %v5417_v53 = vadd.f32 %v1107_v44, %v1011_v56  ;;  %v951_v40 = vpop.f32.mrf.mxu0 }
  0xff   : > { %4150 = vmatpush3.bf16.msra.mxu0 %v6012_v61  ;;  %v3894_v55 = vpop.f32.mrf.mxu1  ;;  %v1012_v5 = vadd.f32 %v951_v40, %v5344_v27 }
 0x100   : > { %v5421_v37 = vadd.f32 %v3894_v55, %v1014_v15  ;;  %v3877_v51 = vpop.f32.mrf.mxu0 }
 0x101   : > { %4170 = vmatpush3.bf16.msra.mxu1 %v5171_v45  ;;  %v1110_v34 = vpop.f32.mrf.mxu1  ;;  %v1017_v11 = vadd.f32 %v3877_v51, %v5353_v49 }
 0x102   : > { %4116 = vmatmul.mubr.msk.bf16.gmra.mxu0 %vm332_vm0, %v6014_v2  ;;  %v5429_v22 = vadd.f32 %v1110_v34, %v1012_v5  ;;  %v964_v45 = vpop.f32.mrf.mxu0 }
 0x103   : > { %4119 = vmatprep.mubr.msk.bf16.mxu0 %vm332_vm0, %v6015_v50  ;;  %v3897_v32 = vpop.f32.mrf.mxu1  ;;  %v1015_v19 = vadd.f32 %v964_v45, %v5357_v62  ;;  %v6016_v62 = vcombine.low %v5098_v26, %v5119_v43 }
 0x104   : > { %4136 = vmatmul.mubr.msk.bf16.gmra.mxu1 %vm332_vm0, %v5988_v36  ;;  %v5438_v27 = vadd.f32 %v3897_v32, %v1017_v11  ;;  %v3878_v12 = vpop.f32.mrf.mxu0 }
 0x105   : > { %4139 = vmatprep.mubr.msk.bf16.mxu1 %vm332_vm0, %v5989_v20  ;;  %v1123_v4 = vpop.f32.mrf.mxu1  ;;  %v1018_v39 = vadd.f32 %v3878_v12, %v5359_v52  ;;  %v6017_v52 = vcombine.low %v5126_v54, %v5139_v14 }
 0x106   : > { %v5443_v49 = vadd.f32 %v1123_v4, %v1015_v19  ;;  %v967_v9 = vpop.f32.mrf.mxu0 }
 0x107   : > { %v3898_v46 = vpop.f32.mrf.mxu1  ;;  %v1016_v36 = vadd.f32 %v967_v9, %v5363_v23 }
 0x108   : > { %v5446_v61 = vadd.f32 %v3898_v46, %v1018_v39  ;;  %v3881_v44 = vpop.f32.mrf.mxu0 }
 0x109   : > { %v1126_v56 = vpop.f32.mrf.mxu1  ;;  %v1021_v57 = vadd.f32 %v3881_v44, %v5369_v10 }
 0x10a   : > { %4120 = vmatmul.mubr.msk.bf16.gmra.mxu0 %vm332_vm0, %v6016_v62  ;;  %v5453_v20 = vadd.f32 %v1126_v56, %v1016_v36  ;;  %v980_v23 = vpop.f32.mrf.mxu0 }
 0x10b   : > { %4123 = vmatprep.mubr.msk.bf16.mxu0 %vm332_vm0, %v6017_v52  ;;  %v3901_v15 = vpop.f32.mrf.mxu1  ;;  %v1019_v26 = vadd.f32 %v980_v23, %v5373_v1  ;;  %v6018_v1 = vcombine.low %v5149_v47, %v5143_v33 }
 0x10c   : > { %4140 = vmatmul.mubr.msk.bf16.gmra.mxu1 %vm332_vm0, %v5992_v41  ;;  %v5462_v55 = vadd.f32 %v3901_v15, %v1021_v57  ;;  %v3882_v40 = vpop.f32.mrf.mxu0 }
 0x10d   : > { %4143 = vmatprep.mubr.msk.bf16.mxu1 %vm332_vm0, %v5993_v60  ;;  %v1139_v43 = vpop.f32.mrf.mxu1  ;;  %v1022_v54 = vadd.f32 %v3882_v40, %v5375_v58 }
 0x10e   : > { %v5467_v10 = vadd.f32 %v1139_v43, %v1019_v26  ;;  %v983_v5 = vpop.f32.mrf.mxu0 }
 0x10f   : > { %v3902_v14 = vpop.f32.mrf.mxu1  ;;  %v1020_v41 = vadd.f32 %v983_v5, %v5379_v21 }
 0x110   : > { %v5470_v34 = vadd.f32 %v3902_v14, %v1022_v54 }
 0x111   : > { %v1142_v51 = vpop.f32.mrf.mxu1 }
 0x112   : > { %v3885_v13 = vpop.f32.mrf.mxu0  ;;  %4124 = vmatmul.mubr.msk.bf16.gmra.mxu0 %vm332_vm0, %v6018_v1  ;;  %v5477_v60 = vadd.f32 %v1142_v51, %v1020_v41 }
 0x113   : > { %v1025_v2 = vadd.f32 %v3885_v13, %v5387_v31  ;;  %4151 = vmatprep.mubr.msk.bf16.mxu0 %vm332_vm0, %v5994_v38  ;;  %v3905_v58 = vpop.f32.mrf.mxu1 }
 0x114   : > { %4144 = vmatmul.mubr.msk.bf16.gmra.mxu1 %vm332_vm0, %v5222_v42  ;;  %v996_v11 = vpop.f32.mrf.mxu0 }
 0x115   : > { %v5484_v21 = vadd.f32 %v3905_v58, %v1025_v2  ;;  %v1023_v50 = vadd.f32 %v996_v11, %v5391_v25  ;;  %4171 = vmatprep.mubr.msk.bf16.mxu1 %vm332_vm0, %v4967_v8  ;;  %v1155_v33 = vpop.f32.mrf.mxu1 }
 0x116   : > { %v3886_v47 = vpop.f32.mrf.mxu0 }
 0x117   : > { %v5489_v32 = vadd.f32 %v1155_v33, %v1023_v50  ;;  %v1026_v31 = vadd.f32 %v3886_v47, %v5393_v24  ;;  %v3906_v45 = vpop.f32.mrf.mxu1  ;;  %v6019_v50 = vld [vmem:[#allocation3_spill] sm:$0xff]  ;;  %v6020_v47 = vld [vmem:[#allocation4_spill] sm:$0xff] }
 0x118   : > { %v999_v38 = vpop.f32.mrf.mxu0 }
 0x119   : > { %v5492_v19 = vadd.f32 %v3906_v45, %v1026_v31  ;;  %v1024_v42 = vadd.f32 %v999_v38, %v5399_v48  ;;  %v1158_v4 = vpop.f32.mrf.mxu1 }
 0x11a   : > { %v3913_v12 = vpop.f32.mrf.mxu0  ;;  %4152 = vmatmul.mubr.msk.bf16.vlgmr.msra.gmra.mxu0 %vm332_vm0, %v4699_v16 }
 0x11b   : > { %v5497_v25 = vadd.f32 %v1158_v4, %v1024_v42  ;;  %v1331_v8 = vadd.f32 %v3913_v12, %v5410_v59  ;;  %4155 = vmatprep.mubr.msk.bf16.mxu0 %vm332_vm0, %v4736_v6 }
 0x11c   : > { %v3933_v39 = vpop.f32.mrf.mxu1  ;;  %4172 = vmatmul.mubr.msk.bf16.vlgmr.msra.gmra.mxu1 %vm332_vm0, %v5030_v17  ;;  %v1266_v24 = vpop.f32.mrf.mxu0 }
 0x11d   : > { %v5504_v46 = vadd.f32 %v3933_v39, %v1331_v8  ;;  %v1329_v48 = vadd.f32 %v1266_v24, %v5417_v53  ;;  %4175 = vmatprep.mubr.msk.bf16.mxu1 %vm332_vm0, %v5050_v30 }
 0x11e   : > { %v1438_v16 = vpop.f32.mrf.mxu1  ;;  %v3914_v9 = vpop.f32.mrf.mxu0 }
 0x11f   : > { %v5509_v36 = vadd.f32 %v1438_v16, %v1329_v48  ;;  %v1332_v59 = vadd.f32 %v3914_v9, %v5421_v37 }
 0x120   : > { %v3934_v56 = vpop.f32.mrf.mxu1  ;;  %v1269_v6 = vpop.f32.mrf.mxu0 }
 0x121   : > { %v5512_v44 = vadd.f32 %v3934_v56, %v1332_v59  ;;  %v1330_v17 = vadd.f32 %v1269_v6, %v5429_v22 }
 0x122   : > { %v1441_v62 = vpop.f32.mrf.mxu1  ;;  %v3917_v57 = vpop.f32.mrf.mxu0  ;;  %4156 = vmatmul.mubr.msk.bf16.gmra.mxu0 %vm332_vm0, %v5996_v18 }
 0x123   : > { %v5517_v53 = vadd.f32 %v1441_v62, %v1330_v17  ;;  %v1335_v30 = vadd.f32 %v3917_v57, %v5438_v27  ;;  %4159 = vmatprep.mubr.msk.bf16.mxu0 %vm332_vm0, %v4800_v29 }
 0x124   : > { %v3937_v52 = vpop.f32.mrf.mxu1  ;;  %4176 = vmatmul.mubr.msk.bf16.gmra.mxu1 %vm332_vm0, %v5078_v35  ;;  %v1282_v37 = vpop.f32.mrf.mxu0 }
 0x125   : > { %v5524_v15 = vadd.f32 %v3937_v52, %v1335_v30  ;;  %v1333_v22 = vadd.f32 %v1282_v37, %v5443_v49  ;;  %4179 = vmatprep.mubr.msk.bf16.mxu1 %vm332_vm0, %v5107_v0 }
 0x126   : > { %v1454_v18 = vpop.f32.mrf.mxu1  ;;  %v3918_v23 = vpop.f32.mrf.mxu0 }
 0x127   : > { %v5529_v26 = vadd.f32 %v1454_v18, %v1333_v22  ;;  %v1336_v27 = vadd.f32 %v3918_v23, %v5446_v61 }
 0x128   : > { %v3938_v43 = vpop.f32.mrf.mxu1  ;;  %v1285_v29 = vpop.f32.mrf.mxu0 }
 0x129   : > { %v5532_v40 = vadd.f32 %v3938_v43, %v1336_v27  ;;  %v1334_v35 = vadd.f32 %v1285_v29, %v5453_v20 }
 0x12a   : > { %v1457_v54 = vpop.f32.mrf.mxu1  ;;  %v3921_v14 = vpop.f32.mrf.mxu0  ;;  %4160 = vmatmul.mubr.msk.bf16.gmra.mxu0 %vm332_vm0, %v4820_v28 }
 0x12b   : > { %v5537_v49 = vadd.f32 %v1457_v54, %v1334_v35  ;;  %v1339_v0 = vadd.f32 %v3921_v14, %v5462_v55  ;;  %4163 = vmatprep.mubr.msk.bf16.mxu0 %vm332_vm0, %v4852_v7 }
 0x12c   : > { %v3941_v5 = vpop.f32.mrf.mxu1  ;;  %4180 = vmatmul.mubr.msk.bf16.gmra.mxu1 %vm332_vm0, %v5132_v63  ;;  %v1298_v61 = vpop.f32.mrf.mxu0 }
 0x12d   : > { %v5544_v41 = vadd.f32 %v3941_v5, %v1339_v0  ;;  %v1337_v20 = vadd.f32 %v1298_v61, %v5467_v10  ;;  %4183 = vmatprep.mubr.msk.bf16.mxu1 %vm332_vm0, %v5155_v3 }
 0x12e   : > { %v1470_v28 = vpop.f32.mrf.mxu1  ;;  %v3922_v51 = vpop.f32.mrf.mxu0 }
 0x12f   : > { %v5549_v13 = vadd.f32 %v1470_v28, %v1337_v20  ;;  %v1340_v55 = vadd.f32 %v3922_v51, %v5470_v34 }
 0x130   : > { %v3942_v1 = vpop.f32.mrf.mxu1  ;;  %v1301_v7 = vpop.f32.mrf.mxu0 }
 0x131   : > { %v5552_v2 = vadd.f32 %v3942_v1, %v1340_v55  ;;  %v1338_v63 = vadd.f32 %v1301_v7, %v5477_v60 }
 0x132   : > { %v1473_v58 = vpop.f32.mrf.mxu1  ;;  %v3925_v11 = vpop.f32.mrf.mxu0  ;;  %4164 = vmatmul.mubr.msk.bf16.gmra.mxu0 %vm332_vm0, %v6019_v50 }
 0x133   : > { %v1510_v10 = vadd.f32 %v1473_v58, %v1338_v63  ;;  %v1343_v3 = vadd.f32 %v3925_v11, %v5484_v21 }
 0x134   : > { %v3945_v33 = vpop.f32.mrf.mxu1  ;;  %4184 = vmatmul.mubr.msk.bf16.gmra.mxu1 %vm332_vm0, %v6020_v47  ;;  %v1314_v31 = vpop.f32.mrf.mxu0 }
 0x135   : > { %v1515_v34 = vadd.f32 %v3945_v33, %v1343_v3  ;;  %v1341_v45 = vadd.f32 %v1314_v31, %v5489_v32 }
 0x136   : > { %v1486_v38 = vpop.f32.mrf.mxu1  ;;  %v3926_v42 = vpop.f32.mrf.mxu0 }
 0x137   : > { %v1513_v4 = vadd.f32 %v1486_v38, %v1341_v45  ;;  %v1344_v60 = vadd.f32 %v3926_v42, %v5492_v19 }
 0x138   : > { %v3946_v12 = vpop.f32.mrf.mxu1  ;;  %v1317_v8 = vpop.f32.mrf.mxu0 }
 0x139   : > { %v1516_v39 = vadd.f32 %v3946_v12, %v1344_v60  ;;  %v1342_v24 = vadd.f32 %v1317_v8, %v5497_v25 }
 0x13a   : > { %v1489_v48 = vpop.f32.mrf.mxu1  ;;  %v3953_v21 = vpop.f32.mrf.mxu0 }
 0x13b   : > { %v1514_v16 = vadd.f32 %v1489_v48, %v1342_v24  ;;  %v1634_v9 = vadd.f32 %v3953_v21, %v5504_v46 }
 0x13c   : > { %v3973_v59 = vpop.f32.mrf.mxu1  ;;  %v1569_v56 = vpop.f32.mrf.mxu0 }
 0x13d   : > { %v1765_v6 = vadd.f32 %v3973_v59, %v1634_v9  ;;  %v1632_v32 = vadd.f32 %v1569_v56, %v5509_v36 }
 0x13e   : > { %v1700_v17 = vpop.f32.mrf.mxu1  ;;  %v3954_v62 = vpop.f32.mrf.mxu0 }
 0x13f   : > { %v1763_v57 = vadd.f32 %v1700_v17, %v1632_v32  ;;  %v1635_v19 = vadd.f32 %v3954_v62, %v5512_v44 }
 0x140   : > { %v3974_v30 = vpop.f32.mrf.mxu1  ;;  %v1572_v52 = vpop.f32.mrf.mxu0 }
 0x141   : > { %v1766_v37 = vadd.f32 %v3974_v30, %v1635_v19  ;;  %v1633_v25 = vadd.f32 %v1572_v52, %v5517_v53 }
 0x142   : > { %v1703_v22 = vpop.f32.mrf.mxu1  ;;  %v3957_v18 = vpop.f32.mrf.mxu0 }
 0x143   : > { %v1764_v23 = vadd.f32 %v1703_v22, %v1633_v25  ;;  %v1638_v46 = vadd.f32 %v3957_v18, %v5524_v15 }
 0x144   : > { %v3977_v27 = vpop.f32.mrf.mxu1  ;;  %v1585_v43 = vpop.f32.mrf.mxu0 }
 0x145   : > { %v1769_v29 = vadd.f32 %v3977_v27, %v1638_v46  ;;  %v1636_v36 = vadd.f32 %v1585_v43, %v5529_v26 }
 0x146   : > { %v1716_v35 = vpop.f32.mrf.mxu1  ;;  %v3958_v54 = vpop.f32.mrf.mxu0 }
 0x147   : > { %v1767_v14 = vadd.f32 %v1716_v35, %v1636_v36  ;;  %v1639_v44 = vadd.f32 %v3958_v54, %v5532_v40 }
 0x148   : > { %v3978_v0 = vpop.f32.mrf.mxu1  ;;  %v1588_v5 = vpop.f32.mrf.mxu0 }
 0x149   : > { %v1770_v61 = vadd.f32 %v3978_v0, %v1639_v44  ;;  %v1637_v53 = vadd.f32 %v1588_v5, %v5537_v49 }
 0x14a   : > { %v1719_v20 = vpop.f32.mrf.mxu1  ;;  %v3961_v28 = vpop.f32.mrf.mxu0 }
 0x14b   : > { %v1768_v51 = vadd.f32 %v1719_v20, %v1637_v53  ;;  %v1642_v15 = vadd.f32 %v3961_v28, %v5544_v41 }
 0x14c   : > { %v3981_v55 = vpop.f32.mrf.mxu1  ;;  %v1601_v1 = vpop.f32.mrf.mxu0 }
 0x14d   : > { %v1773_v7 = vadd.f32 %v3981_v55, %v1642_v15  ;;  %v1640_v26 = vadd.f32 %v1601_v1, %v5549_v13 }
 0x14e   : > { %v1732_v63 = vpop.f32.mrf.mxu1  ;;  %v3962_v58 = vpop.f32.mrf.mxu0 }
 0x14f   : > { %v1771_v11 = vadd.f32 %v1732_v63, %v1640_v26  ;;  %v1643_v40 = vadd.f32 %v3962_v58, %v5552_v2 }
 0x150   : > { %v3982_v50 = vpop.f32.mrf.mxu1  ;;  %v1604_v3 = vpop.f32.mrf.mxu0 }
 0x151   : > { %v1774_v33 = vadd.f32 %v3982_v50, %v1643_v40  ;;  %v1641_v47 = vadd.f32 %v1604_v3, %v1510_v10 }
 0x152   : > { %v1735_v49 = vpop.f32.mrf.mxu1  ;;  %v3965_v31 = vpop.f32.mrf.mxu0 }
 0x153   : > { %v1772_v45 = vadd.f32 %v1735_v49, %v1641_v47  ;;  %v1646_v38 = vadd.f32 %v3965_v31, %v1515_v34 }
 0x154   : > { %v3985_v42 = vpop.f32.mrf.mxu1  ;;  %v1617_v41 = vpop.f32.mrf.mxu0 }
 0x155   : > { %v1777_v60 = vadd.f32 %v3985_v42, %v1646_v38  ;;  %v1644_v12 = vadd.f32 %v1617_v41, %v1513_v4 }
 0x156   : > { %v1748_v8 = vpop.f32.mrf.mxu1  ;;  %v3966_v24 = vpop.f32.mrf.mxu0 }
 0x157   : > { %v1775_v13 = vadd.f32 %v1748_v8, %v1644_v12  ;;  %v1647_v48 = vadd.f32 %v3966_v24, %v1516_v39 }
 0x158   : > { %v3986_v21 = vpop.f32.mrf.mxu1  ;;  %v1620_v9 = vpop.f32.mrf.mxu0 }
 0x159   : > { %v1778_v59 = vadd.f32 %v3986_v21, %v1647_v48  ;;  %v1645_v2 = vadd.f32 %v1620_v9, %v1514_v16 }
 0x15a   : > { %v1751_v56 = vpop.f32.mrf.mxu1  ;;  %v3993_v32 = vpop.f32.mrf.mxu0 }
 0x15b   : > { %v1776_v17 = vadd.f32 %v1751_v56, %v1645_v2  ;;  %v5574_v10 = vadd.f32 %v3993_v32, %v1765_v6 }
 0x15c   : > { %v4013_v62 = vpop.f32.mrf.mxu1  ;;  %v1844_v19 = vpop.f32.mrf.mxu0 }
 0x15d   : > { %v5576_v34 = vadd.f32 %v1844_v19, %v1763_v57 }
 0x15e   : > { %v1957_v30 = vpop.f32.mrf.mxu1  ;;  %v3994_v52 = vpop.f32.mrf.mxu0 }
 0x15f   : > { %v5578_v4 = vadd.f32 %v3994_v52, %v1766_v37 }
 0x160   : > { %v4014_v25 = vpop.f32.mrf.mxu1  ;;  %v1847_v22 = vpop.f32.mrf.mxu0 }
 0x161   : > { %v5580_v39 = vadd.f32 %v1847_v22, %v1764_v23 }
 0x162   : > { %v1960_v18 = vpop.f32.mrf.mxu1  ;;  %v3997_v46 = vpop.f32.mrf.mxu0 }
 0x163   : > { %6021 = vst [vmem:[#allocation6_spill] sm:$0xff] %v5580_v39  ;;  %v5582_v16 = vadd.f32 %v3997_v46, %v1769_v29 }
 0x164   : > { %v4017_v27 = vpop.f32.mrf.mxu1  ;;  %v1860_v43 = vpop.f32.mrf.mxu0 }
 0x165   : > { %6022 = vst [vmem:[#allocation8_spill] sm:$0xff] %v5582_v16  ;;  %v5584_v6 = vadd.f32 %v1860_v43, %v1767_v14 }
 0x166   : > { %v1973_v36 = vpop.f32.mrf.mxu1  ;;  %v3998_v35 = vpop.f32.mrf.mxu0 }
 0x167   : > { %6023 = vst [vmem:[#allocation5_spill] sm:$0xff] %v5584_v6  ;;  %v5586_v57 = vadd.f32 %v3998_v35, %v1770_v61 }
 0x168   : > { %v4018_v54 = vpop.f32.mrf.mxu1  ;;  %v1863_v44 = vpop.f32.mrf.mxu0 }
 0x169   : > { %6024 = vst [vmem:[#allocation7_spill] sm:$0xff] %v5586_v57  ;;  %v5588_v37 = vadd.f32 %v1863_v44, %v1768_v51 }
 0x16a   : > { %v1976_v0 = vpop.f32.mrf.mxu1  ;;  %v4001_v5 = vpop.f32.mrf.mxu0 }
 0x16b   : > { %6025 = vst [vmem:[#allocation10_spill] sm:$0xff] %v5588_v37  ;;  %v5590_v23 = vadd.f32 %v4001_v5, %v1773_v7 }
 0x16c   : > { %v4021_v53 = vpop.f32.mrf.mxu1  ;;  %v1876_v20 = vpop.f32.mrf.mxu0 }
 0x16d   : > { %6026 = vst [vmem:[#allocation12_spill] sm:$0xff] %v5590_v23  ;;  %v5592_v29 = vadd.f32 %v1876_v20, %v1771_v11 }
 0x16e   : > { %v1989_v28 = vpop.f32.mrf.mxu1  ;;  %v4002_v15 = vpop.f32.mrf.mxu0 }
 0x16f   : > { %6027 = vst [vmem:[#allocation9_spill] sm:$0xff] %v5592_v29  ;;  %v5594_v14 = vadd.f32 %v4002_v15, %v1774_v33 }
 0x170   : > { %v4022_v55 = vpop.f32.mrf.mxu1  ;;  %v1879_v1 = vpop.f32.mrf.mxu0 }
 0x171   : > { %6028 = vst [vmem:[#allocation11_spill] sm:$0xff] %v5594_v14  ;;  %v5596_v61 = vadd.f32 %v1879_v1, %v1772_v45 }
 0x172   : > { %v1992_v26 = vpop.f32.mrf.mxu1  ;;  %v4005_v63 = vpop.f32.mrf.mxu0 }
 0x173   : > { %6029 = vst [vmem:[#allocation14_spill] sm:$0xff] %v5596_v61  ;;  %v5598_v51 = vadd.f32 %v4005_v63, %v1777_v60 }
 0x174   : > { %v4025_v58 = vpop.f32.mrf.mxu1  ;;  %v1892_v40 = vpop.f32.mrf.mxu0 }
 0x175   : > { %6030 = vst [vmem:[#allocation17_spill] sm:$0xff] %v5598_v51  ;;  %v5600_v7 = vadd.f32 %v1892_v40, %v1775_v13 }
 0x176   : > { %v2005_v50 = vpop.f32.mrf.mxu1  ;;  %v4006_v3 = vpop.f32.mrf.mxu0 }
 0x177   : > { %6031 = vst [vmem:[#allocation13_spill] sm:$0xff] %v5600_v7  ;;  %v5602_v11 = vadd.f32 %v4006_v3, %v1778_v59 }
 0x178   : > { %v4026_v47 = vpop.f32.mrf.mxu1  ;;  %v1895_v49 = vpop.f32.mrf.mxu0 }
 0x179   : > { %6032 = vst [vmem:[#allocation15_spill] sm:$0xff] %v5602_v11  ;;  %v5604_v33 = vadd.f32 %v1895_v49, %v1776_v17 }
 0x17a   : > { %v2008_v31 = vpop.f32.mrf.mxu1  ;;  %v4033_v38 = vpop.f32.mrf.mxu0 }
 0x17b   : > { %6033 = vst [vmem:[#allocation19_spill] sm:$0xff] %v5604_v33  ;;  %v2063_v45 = vadd.f32 %v4033_v38, %v4013_v62 }
 0x17c   : > { %v4053_v42 = vpop.f32.mrf.mxu1  ;;  %v2054_v41 = vpop.f32.mrf.mxu0 }
 0x17d   : > { %v5606_v12 = vadd.f32 %v4053_v42, %v2063_v45  ;;  %v2055_v60 = vadd.f32 %v2054_v41, %v1957_v30 }
 0x17e   : > { %v2423_v8 = vpop.f32.mrf.mxu1  ;;  %v4034_v24 = vpop.f32.mrf.mxu0 }
 0x17f   : > { %v5608_v13 = vadd.f32 %v2423_v8, %v2055_v60  ;;  %v2066_v48 = vadd.f32 %v4034_v24, %v4014_v25 }
 0x180   : > { %v4054_v21 = vpop.f32.mrf.mxu1  ;;  %v2057_v9 = vpop.f32.mrf.mxu0 }
 0x181   : > { %v5610_v59 = vadd.f32 %v4054_v21, %v2066_v48  ;;  %v2058_v2 = vadd.f32 %v2057_v9, %v1960_v18 }
 0x182   : > { %v2426_v56 = vpop.f32.mrf.mxu1  ;;  %v4037_v32 = vpop.f32.mrf.mxu0 }
 0x183   : > { %v5612_v17 = vadd.f32 %v2426_v56, %v2058_v2  ;;  %v2079_v62 = vadd.f32 %v4037_v32, %v4017_v27 }
 0x184   : > { %v4057_v19 = vpop.f32.mrf.mxu1  ;;  %v2070_v52 = vpop.f32.mrf.mxu0 }
 0x185   : > { %v5614_v22 = vadd.f32 %v4057_v19, %v2079_v62  ;;  %v2071_v30 = vadd.f32 %v2070_v52, %v1973_v36 }
 0x186   : > { %v2439_v46 = vpop.f32.mrf.mxu1  ;;  %v4038_v43 = vpop.f32.mrf.mxu0 }
 0x187   : > { %v5616_v35 = vadd.f32 %v2439_v46, %v2071_v30  ;;  %v2082_v25 = vadd.f32 %v4038_v43, %v4018_v54 }
 0x188   : > { %v4058_v44 = vpop.f32.mrf.mxu1  ;;  %v2073_v5 = vpop.f32.mrf.mxu0 }
 0x189   : > { %v5618_v20 = vadd.f32 %v4058_v44, %v2082_v25  ;;  %v2074_v18 = vadd.f32 %v2073_v5, %v1976_v0 }
 0x18a   : > { %v2442_v15 = vpop.f32.mrf.mxu1  ;;  %v4041_v1 = vpop.f32.mrf.mxu0 }
 0x18b   : > { %v5620_v63 = vadd.f32 %v2442_v15, %v2074_v18  ;;  %v2095_v27 = vadd.f32 %v4041_v1, %v4021_v53 }
 0x18c   : > { %v4061_v40 = vpop.f32.mrf.mxu1  ;;  %v2086_v3 = vpop.f32.mrf.mxu0 }
 0x18d   : > { %v5622_v49 = vadd.f32 %v4061_v40, %v2095_v27  ;;  %v2087_v36 = vadd.f32 %v2086_v3, %v1989_v28 }
 0x18e   : > { %v2455_v38 = vpop.f32.mrf.mxu1  ;;  %v4042_v45 = vpop.f32.mrf.mxu0 }
 0x18f   : > { %v5624_v42 = vadd.f32 %v2455_v38, %v2087_v36  ;;  %v2098_v54 = vadd.f32 %v4042_v45, %v4022_v55 }
 0x190   : > { %v4062_v41 = vpop.f32.mrf.mxu1  ;;  %v2089_v60 = vpop.f32.mrf.mxu0 }
 0x191   : > { %v5626_v8 = vadd.f32 %v4062_v41, %v2098_v54  ;;  %v2090_v0 = vadd.f32 %v2089_v60, %v1992_v26 }
 0x192   : > { %v2458_v24 = vpop.f32.mrf.mxu1  ;;  %v4045_v48 = vpop.f32.mrf.mxu0 }
 0x193   : > { %v5628_v21 = vadd.f32 %v2458_v24, %v2090_v0  ;;  %v2111_v53 = vadd.f32 %v4045_v48, %v4025_v58 }
 0x194   : > { %v4065_v9 = vpop.f32.mrf.mxu1  ;;  %v2102_v2 = vpop.f32.mrf.mxu0 }
 0x195   : > { %v5630_v56 = vadd.f32 %v4065_v9, %v2111_v53  ;;  %v2103_v28 = vadd.f32 %v2102_v2, %v2005_v50 }
 0x196   : > { %v2471_v32 = vpop.f32.mrf.mxu1  ;;  %v4046_v62 = vpop.f32.mrf.mxu0 }
 0x197   : > { %v5632_v19 = vadd.f32 %v2471_v32, %v2103_v28  ;;  %v2114_v55 = vadd.f32 %v4046_v62, %v4026_v47 }
 0x198   : > { %v4066_v52 = vpop.f32.mrf.mxu1  ;;  %v2105_v30 = vpop.f32.mrf.mxu0 }
 0x199   : > { %6034 = vst [vmem:[#allocation18_spill] sm:$0xff] %v5632_v19  ;;  %v5634_v46 = vadd.f32 %v4066_v52, %v2114_v55  ;;  %v2106_v26 = vadd.f32 %v2105_v30, %v2008_v31 }
 0x19a   : > { %v2474_v43 = vpop.f32.mrf.mxu1  ;;  %v4073_v25 = vpop.f32.mrf.mxu0 }
 0x19b   : > { %6035 = vst [vmem:[#allocation23_spill] sm:$0xff] %v5634_v46  ;;  %v5636_v44 = vadd.f32 %v2474_v43, %v2106_v26  ;;  %v2601_v39 = vadd.f32 %v4073_v25, %v5606_v12 }
 0x19c   : > { %v4093_v58 = vpop.f32.mrf.mxu1  ;;  %v2536_v5 = vpop.f32.mrf.mxu0 }
 0x19d   : > { %6036 = vst [vmem:[#allocation2_spill] sm:$0xff] %v5636_v44 }
 0x19e   : > { %v2649_v18 = vpop.f32.mrf.mxu1  ;;  %v4074_v15 = vpop.f32.mrf.mxu0 }
 0x1a0   : > { %v5638_v1 = vpop.f32.mrf.mxu1  ;;  %v2539_v50 = vpop.f32.mrf.mxu0 }
 0x1a2   : > { %v5640_v27 = vpop.f32.mrf.mxu1  ;;  %v4077_v40 = vpop.f32.mrf.mxu0 }
 0x1a4   : > { %v5642_v47 = vpop.f32.mrf.mxu1  ;;  %v2552_v3 = vpop.f32.mrf.mxu0 }
 0x1a6   : > { %v5644_v36 = vpop.f32.mrf.mxu1  ;;  %v5646_v31 = vpop.f32.mrf.mxu0 }
 0x1a8   : > { %v5648_v38 = vpop.f32.mrf.mxu1  ;;  %v5650_v45 = vpop.f32.mrf.mxu0 }
 0x1aa   : > { %v5652_v54 = vpop.f32.mrf.mxu1  ;;  %v5654_v41 = vpop.f32.mrf.mxu0 }
 0x1ac   : > { %v5656_v60 = vpop.f32.mrf.mxu1  ;;  %v5658_v0 = vpop.f32.mrf.mxu0 }
 0x1ae   : > { %v5660_v24 = vpop.f32.mrf.mxu1  ;;  %v5662_v48 = vpop.f32.mrf.mxu0 }
 0x1b0   : > { %v5664_v53 = vpop.f32.mrf.mxu1  ;;  %v5666_v9 = vpop.f32.mrf.mxu0 }
 0x1b1   : > { %6037 = vst [vmem:[#allocation20_spill] sm:$0xff] %v5664_v53 }
 0x1b2   : > { %v5668_v2 = vpop.f32.mrf.mxu1  ;;  %v5670_v28 = vpop.f32.mrf.mxu0 }
 0x1b3   : > { %6038 = vst [vmem:[#allocation22_spill] sm:$0xff] %v5668_v2 }
 0x1b4   : > { %v5672_v32 = vpop.f32.mrf.mxu1  ;;  %v5674_v62 = vpop.f32.mrf.mxu0 }
 0x1b5   : > { %6039 = vst [vmem:[#allocation24_spill] sm:$0xff] %v5672_v32  ;;  %6040 = vst [vmem:[#allocation27_spill] sm:$0xff] %v5674_v62 }
 0x1b6   : > { %v5676_v55 = vpop.f32.mrf.mxu1  ;;  %v5678_v52 = vpop.f32.mrf.mxu0 }
 0x1b7   : > { %6041 = vst [vmem:[#allocation16_spill] sm:$0xff] %v5676_v55  ;;  %6042 = vst [vmem:[#allocation26_spill] sm:$0xff] %v5678_v52 }
 0x1b8   : > { %v5680_v30 = vpop.f32.mrf.mxu1  ;;  %v5682_v26 = vpop.f32.mrf.mxu0 }
 0x1b9   : > { %6043 = vst [vmem:[#allocation25_spill] sm:$0xff] %v5680_v30  ;;  %6044 = vst [vmem:[#allocation21_spill] sm:$0xff] %v5682_v26 }
 0x1ba   : > { %v5684_v43 = vpop.f32.mrf.mxu1  ;;  %v4113_v33 = vpop.f32.mrf.mxu0 }
 0x1bb   : > { %6045 = vst [vmem:[#allocation28_spill] sm:$0xff] %v5684_v43 }
 0x1bc   : > { %v4133_v11 = vpop.f32.mrf.mxu1  ;;  %v2809_v7 = vpop.f32.mrf.mxu0 }
 0x1be   : > { %v2922_v51 = vpop.f32.mrf.mxu1  ;;  %v4114_v61 = vpop.f32.mrf.mxu0 }
 0x1c0   : > { %v4134_v14 = vpop.f32.mrf.mxu1  ;;  %v2812_v29 = vpop.f32.mrf.mxu0 }
 0x1c2   : > { %v2925_v23 = vpop.f32.mrf.mxu1  ;;  %v4117_v37 = vpop.f32.mrf.mxu0 }
 0x1c4   : > { %v5686_v57 = vpop.f32.mrf.mxu1  ;;  %v2825_v55 = vpop.f32.mrf.mxu0 }
 0x1c6   : > { %v5688_v44 = vpop.f32.mrf.mxu1  ;;  %v5690_v6 = vpop.f32.mrf.mxu0 }
 0x1c8   : > { %v5692_v30 = vpop.f32.mrf.mxu1  ;;  %v5694_v26 = vpop.f32.mrf.mxu0 }
 0x1c9   : > { %6046 = vst [vmem:[#allocation30_spill] sm:$0xff] %v5692_v30  ;;  %v2599_v30 = vadd.f32 %v2536_v5, %v5608_v13  ;;  %v2605_v5 = vadd.f32 %v4077_v40, %v5614_v22 }
 0x1ca   : > { %v5696_v43 = vpop.f32.mrf.mxu1  ;;  %v5698_v52 = vpop.f32.mrf.mxu0 }
 0x1cb   : > { %6047 = vst [vmem:[#allocation29_spill] sm:$0xff] %v5696_v43  ;;  %6048 = vst [vmem:[#allocation31_spill] sm:$0xff] %v5698_v52  ;;  %v2714_v52 = vadd.f32 %v4093_v58, %v2601_v39  ;;  %v2712_v12 = vadd.f32 %v2649_v18, %v2599_v30  ;;  %v2718_v22 = vadd.f32 %v5642_v47, %v2605_v5 }
 0x1cc   : > { %v5700_v46 = vpop.f32.mrf.mxu1  ;;  %v5702_v16 = vpop.f32.mrf.mxu0 }
 0x1cd   : > { %6049 = vst [vmem:[#allocation3_spill] sm:$0xff] %v5700_v46  ;;  %6050 = vst [vmem:[#allocation4_spill] sm:$0xff] %v5702_v16  ;;  %v2602_v46 = vadd.f32 %v4074_v15, %v5610_v59  ;;  %v2600_v16 = vadd.f32 %v2539_v50, %v5612_v17  ;;  %v2874_v25 = vadd.f32 %v4113_v33, %v2714_v52 }
 0x1ce   : > { %v5704_v62 = vpop.f32.mrf.mxu1  ;;  %v5706_v19 = vpop.f32.mrf.mxu0  ;;  %v2603_v59 = vadd.f32 %v2552_v3, %v5616_v35  ;;  %v2606_v33 = vadd.f32 %v5646_v31, %v5618_v20  ;;  %v2604_v35 = vadd.f32 %v5650_v45, %v5620_v63  ;;  %v2609_v20 = vadd.f32 %v5654_v41, %v5622_v49 }
 0x1cf   : > { %6051 = vst [vmem:[#allocation32_spill] sm:$0xff] %v5704_v62  ;;  %6052 = vst [vmem:[#allocation33_spill] sm:$0xff] %v5706_v19  ;;  %v2715_v13 = vadd.f32 %v5638_v1, %v2602_v46  ;;  %v2713_v39 = vadd.f32 %v5640_v27, %v2600_v16  ;;  %v2987_v15 = vadd.f32 %v4133_v11, %v2874_v25 }
 0x1d0   : > { %v5709_v32 = vpop.f32.mrf.mxu1  ;;  %v5711_v2 = vpop.f32.mrf.mxu0  ;;  %v2716_v16 = vadd.f32 %v5644_v36, %v2603_v59  ;;  %v2613_v49 = vadd.f32 %v5670_v28, %v5630_v56  ;;  %v2722_v25 = vadd.f32 %v5656_v60, %v2609_v20  ;;  %v6058_v60 = vld [vmem:[#allocation24_spill] sm:$0xff] }
 0x1d1   : > { %6053 = vst [vmem:[#allocation34_spill] sm:$0xff] %v5709_v32  ;;  %6054 = vst [vmem:[#allocation35_spill] sm:$0xff] %v5711_v2  ;;  %v2875_v18 = vadd.f32 %v4114_v61, %v2715_v13  ;;  %v2873_v50 = vadd.f32 %v2812_v29, %v2713_v39  ;;  %v2878_v61 = vadd.f32 %v4117_v37, %v2718_v22  ;;  %v6057_v39 = vld [vmem:[#allocation22_spill] sm:$0xff] }
 0x1d2   : > { %v5714_v53 = vpop.f32.mrf.mxu1  ;;  %v5716_v43 = vpop.f32.mrf.mxu0  ;;  %v2719_v29 = vadd.f32 %v5648_v38, %v2606_v33  ;;  %v2717_v37 = vadd.f32 %v5652_v54, %v2604_v35  ;;  %v2608_v38 = vadd.f32 %v5666_v9, %v5628_v21  ;;  %v6063_v35 = vld [vmem:[#allocation30_spill] sm:$0xff] }
 0x1d3   : > { %6055 = vst [vmem:[#allocation36_spill] sm:$0xff] %v5714_v53  ;;  %v2872_v53 = vadd.f32 %v2809_v7, %v2712_v12  ;;  %v2988_v11 = vadd.f32 %v4134_v14, %v2875_v18  ;;  %v2986_v47 = vadd.f32 %v2925_v23, %v2873_v50  ;;  %v2610_v14 = vadd.f32 %v5662_v48, %v5626_v8 }
 0x1d4   : > { %v5720_v62 = vpop.f32.mrf.mxu1  ;;  %v5722_v19 = vpop.f32.mrf.mxu0  ;;  %v2991_v41 = vadd.f32 %v5686_v57, %v2878_v61  ;;  %v2879_v8 = vadd.f32 %v5690_v6, %v2719_v29  ;;  %v2877_v48 = vadd.f32 %v5694_v26, %v2717_v37  ;;  %v2721_v59 = vadd.f32 %v6057_v39, %v2608_v38  ;;  %v5772_v26 = vld [vmem:[%s5848_s2] ss:$0 sm:$0xff]  ;;  %v6065_v61 = vld [vmem:[#allocation4_spill] sm:$0xff] }
 0x1d5   : > { %v2985_v7 = vadd.f32 %v2922_v51, %v2872_v53  ;;  %v2607_v51 = vadd.f32 %v5658_v0, %v5624_v42  ;;  %v2876_v53 = vadd.f32 %v2825_v55, %v2716_v16 }
 0x1d6   : > { %v5724_v32 = vpop.f32.mrf.mxu1  ;;  %v5726_v2 = vpop.f32.mrf.mxu0 }
 0x1d7   : > { %v2720_v54 = vadd.f32 %v5660_v24, %v2607_v51  ;;  %v2989_v56 = vadd.f32 %v5688_v44, %v2876_v53  ;;  %v2726_v24 = vadd.f32 %v6058_v60, %v2613_v49  ;;  %v6067_v53 = vld [vmem:[#allocation23_spill] sm:$0xff] }
 0x1d8   : > { %v5732_v17 = vpop.f32.mrf.mxu1  ;;  %v5734_v58 = vpop.f32.mrf.mxu0 }
 0x1da   : > { %v5738_v52 = vpop.f32.mrf.mxu1  ;;  %v4153_v46 = vpop.f32.mrf.mxu0 }
 0x1db   : > { %v3100_v1 = vadd.f32 %v4153_v46, %v2987_v15  ;;  %v6059_v15 = vld [vmem:[#allocation31_spill] sm:$0xff] }
 0x1dc   : > { %v4173_v27 = vpop.f32.mrf.mxu1  ;;  %v3035_v40 = vpop.f32.mrf.mxu0  ;;  %v2882_v6 = vadd.f32 %v6059_v15, %v2722_v25 }
 0x1dd   : > { %v3232_v3 = vadd.f32 %v4173_v27, %v3100_v1  ;;  %v3098_v30 = vadd.f32 %v3035_v40, %v2985_v7  ;;  %v6061_v7 = vld [vmem:[#allocation18_spill] sm:$0xff]  ;;  %v6062_v1 = vld [vmem:[#allocation27_spill] sm:$0xff]  ;;  %v2992_v27 = vadd.f32 %v6063_v35, %v2879_v8  ;;  %v6064_v40 = vld [vmem:[#allocation29_spill] sm:$0xff] }
 0x1de   : > { %v3167_v31 = vpop.f32.mrf.mxu1  ;;  %v4154_v36 = vpop.f32.mrf.mxu0  ;;  %v2611_v16 = vadd.f32 %v6062_v1, %v6061_v7  ;;  %v6073_v8 = vld [vmem:[#allocation21_spill] sm:$0xff]  ;;  %v6079_v1 = vld [vmem:[#allocation10_spill] sm:$0xff] }
 0x1df   : > { %v3248_v63 = vmax.f32 %v5574_v10, %v3232_v3  ;;  %v3230_v45 = vadd.f32 %v3167_v31, %v3098_v30  ;;  %v3101_v12 = vadd.f32 %v4154_v36, %v2988_v11  ;;  %v2990_v11 = vadd.f32 %v6064_v40, %v2877_v48 }
 0x1e0   : > { %v4174_v42 = vpop.f32.mrf.mxu1  ;;  %v3038_v23 = vpop.f32.mrf.mxu0  ;;  %v2880_v3 = vadd.f32 %v6065_v61, %v2720_v54 }
 0x1e1   : > { %v3246_v0 = vmax.f32 %v5576_v34, %v3230_v45  ;;  %v3233_v10 = vadd.f32 %v4174_v42, %v3101_v12  ;;  %v3099_v55 = vadd.f32 %v3038_v23, %v2986_v47  ;;  %v6056_v34 = vld [vmem:[#allocation20_spill] sm:$0xff]  ;;  %v6069_v12 = vld [vmem:[#allocation3_spill] sm:$0xff] }
 0x1e2   : > { %v3170_v21 = vpop.f32.mrf.mxu1  ;;  %v4157_v9 = vpop.f32.mrf.mxu0  ;;  %v2723_v5 = vadd.f32 %v6056_v34, %v2610_v14  ;;  %v6066_v47 = vld [vmem:[#allocation8_spill] sm:$0xff]  ;;  %v2995_v37 = vadd.f32 %v6069_v12, %v2882_v6  ;;  %v6070_v14 = vld [vmem:[#allocation33_spill] sm:$0xff] }
 0x1e3   : > { %v3249_v28 = vmax.f32 %v5578_v4, %v3233_v10  ;;  %v3231_v57 = vadd.f32 %v3170_v21, %v3099_v55  ;;  %v3104_v13 = vadd.f32 %v4157_v9, %v2991_v41  ;;  %v6060_v4 = vld [vmem:[#allocation6_spill] sm:$0xff]  ;;  %v6071_v55 = vld [vmem:[#allocation5_spill] sm:$0xff]  ;;  %v6074_v21 = vld [vmem:[#allocation32_spill] sm:$0xff] }
 0x1e4   : > { %v4177_v18 = vpop.f32.mrf.mxu1  ;;  %v3051_v44 = vpop.f32.mrf.mxu0  ;;  %v2883_v38 = vadd.f32 %v6070_v14, %v2723_v5  ;;  %v2993_v9 = vadd.f32 %v6074_v21, %v2880_v3  ;;  %v6076_v6 = vld [vmem:[#allocation16_spill] sm:$0xff] }
 0x1e5   : > { %v3263_v33 = vmax.f32 %v3248_v63, %v3249_v28  ;;  %v3247_v50 = vmax.f32 %v6060_v4, %v3231_v57  ;;  %v3236_v46 = vadd.f32 %v4177_v18, %v3104_v13  ;;  %v3102_v22 = vadd.f32 %v3051_v44, %v2989_v56  ;;  %v6068_v63 = vld [vmem:[#allocation26_spill] sm:$0xff]  ;;  %v6075_v56 = vld [vmem:[#allocation35_spill] sm:$0xff]  ;;  %v6081_v3 = vld [vmem:[#allocation28_spill] sm:$0xff] }
 0x1e6   : > { %v3183_v30 = vpop.f32.mrf.mxu1  ;;  %v4158_v29 = vpop.f32.mrf.mxu0  ;;  %v2614_v45 = vadd.f32 %v6068_v63, %v6067_v53  ;;  %v2881_v28 = vadd.f32 %v6075_v56, %v2721_v59  ;;  %v2724_v18 = vadd.f32 %v6076_v6, %v2611_v16  ;;  %v6077_v44 = vld [vmem:[#allocation34_spill] sm:$0xff]  ;;  %v2886_v59 = vadd.f32 %v5716_v43, %v2726_v24  ;;  %v6078_v4 = vld [vmem:[#allocation7_spill] sm:$0xff] }
 0x1e7   : > { %v3278_v20 = vadd.f32 %v5772_v26, %v3263_v33  ;;  %v3262_v51 = vmax.f32 %v3246_v0, %v3247_v50  ;;  %v3252_v31 = vmax.f32 %v6066_v47, %v3236_v46  ;;  %v3234_v36 = vadd.f32 %v3183_v30, %v3102_v22  ;;  %v6072_v0 = vld [vmem:[#allocation2_spill] sm:$0xff]  ;;  %v6082_v30 = vld [vmem:[#allocation36_spill] sm:$0xff] }
 0x1e8   : > { %v3105_v49 = vadd.f32 %v4158_v29, %v2992_v27  ;;  %v4178_v42 = vpop.f32.mrf.mxu1  ;;  %v3054_v23 = vpop.f32.mrf.mxu0  ;;  %v2612_v48 = vadd.f32 %v6073_v8, %v6072_v0  ;;  %v2996_v33 = vadd.f32 %v6077_v44, %v2883_v38  ;;  %v2994_v29 = vadd.f32 %v6082_v30, %v2881_v28  ;;  %v6083_v47 = vld [vmem:[#allocation12_spill] sm:$0xff]  ;;  %v6087_v44 = vld [vmem:[#allocation17_spill] sm:$0xff] }
 0x1e9   : > { %v3286_v41 = vmax.f32 %v3278_v20, 0.0  ;;  %v3277_v10 = vadd.f32 %v5772_v26, %v3262_v51  ;;  %v3250_v25 = vmax.f32 %v6071_v55, %v3234_v36  ;;  %v3103_v54 = vadd.f32 %v3054_v23, %v2990_v11  ;;  %v6080_v11 = vld [vmem:[#allocation25_spill] sm:$0xff] }
 0x1ea   : > { %v3237_v57 = vadd.f32 %v4178_v42, %v3105_v49  ;;  %v3186_v13 = vpop.f32.mrf.mxu1  ;;  %v4161_v34 = vpop.f32.mrf.mxu0  ;;  %v2727_v61 = vadd.f32 %v6080_v11, %v2614_v45  ;;  %v2725_v16 = vadd.f32 %v6081_v3, %v2612_v48  ;;  %v2999_v12 = vadd.f32 %v5720_v62, %v2886_v59  ;;  %v6084_v42 = vld [vmem:[#allocation9_spill] sm:$0xff]  ;;  %v6089_v3 = vld [vmem:[#allocation15_spill] sm:$0xff] }
 0x1eb   : > { %v3640_v5 = vpack.c.bf16 %v3286_v41, %v3286_v41  ;;  %v3285_v39 = vmax.f32 %v3277_v10, 0.0  ;;  %v3235_v60 = vadd.f32 %v3186_v13, %v3103_v54  ;;  %v3108_v15 = vadd.f32 %v4161_v34, %v2995_v37 }
 0x1ec   : > { %v3253_v50 = vmax.f32 %v6078_v4, %v3237_v57  ;;  %v4181_v46 = vpop.f32.mrf.mxu1  ;;  %v3067_v22 = vpop.f32.mrf.mxu0  ;;  %v2884_v37 = vadd.f32 %v5722_v19, %v2724_v18  ;;  %v2887_v45 = vadd.f32 %v5726_v2, %v2727_v61  ;;  %v2885_v55 = vadd.f32 %v5734_v58, %v2725_v16  ;;  %v6085_v19 = vld [vmem:[#allocation11_spill] sm:$0xff]  ;;  %v6086_v58 = vld [vmem:[#allocation14_spill] sm:$0xff] }
 0x1ed   : > { %3327 = vst.msk [vmem:[%s5796_s28 + $0x4] sm:$0xf] %vm3325_vm4, %v3640_v5  ;;  %v3639_v7 = vpack.c.bf16 %v3285_v39, %v3285_v39  ;;  %v3251_v35 = vmax.f32 %v6079_v1, %v3235_v60  ;;  %v3240_v27 = vadd.f32 %v4181_v46, %v3108_v15  ;;  %v3106_v40 = vadd.f32 %v3067_v22, %v2993_v9 }
 0x1ee   : > { %v3265_v20 = vmax.f32 %v3252_v31, %v3253_v50  ;;  %v3199_v51 = vpop.f32.mrf.mxu1  ;;  %v4162_v43 = vpop.f32.mrf.mxu0  ;;  %v2997_v21 = vadd.f32 %v5724_v32, %v2884_v37  ;;  %v3000_v9 = vadd.f32 %v5732_v17, %v2887_v45  ;;  %v2998_v60 = vadd.f32 %v5738_v52, %v2885_v55 }
 0x1ef   : > { %3326 = vst.msk [vmem:[%s5796_s28] sm:$0xf] %vm3325_vm4, %v3639_v7  ;;  %v3264_v24 = vmax.f32 %v3250_v25, %v3251_v35  ;;  %v3256_v36 = vmax.f32 %v6083_v47, %v3240_v27  ;;  %v3238_v53 = vadd.f32 %v3199_v51, %v3106_v40  ;;  %v3109_v63 = vadd.f32 %v4162_v43, %v2996_v33  ;;  %v6088_v35 = vld [vmem:[#allocation13_spill] sm:$0xff]  ;;  %v6090_v51 = vld [vmem:[#allocation19_spill] sm:$0xff] }
 0x1f0   : > { %v3280_v14 = vadd.f32 %v5772_v26, %v3265_v20  ;;  %v4182_v38 = vpop.f32.mrf.mxu1  ;;  %v3070_v49 = vpop.f32.mrf.mxu0 }
 0x1f1   : > { %v3279_v31 = vadd.f32 %v5772_v26, %v3264_v24  ;;  %v3254_v23 = vmax.f32 %v6084_v42, %v3238_v53  ;;  %v3241_v41 = vadd.f32 %v4182_v38, %v3109_v63  ;;  %v3107_v10 = vadd.f32 %v3070_v49, %v2994_v29 }
 0x1f2   : > { %v3288_v25 = vmax.f32 %v3280_v14, 0.0  ;;  %v3202_v54 = vpop.f32.mrf.mxu1  ;;  %v4165_v62 = vpop.f32.mrf.mxu0 }
 0x1f3   : > { %v3287_v0 = vmax.f32 %v3279_v31, 0.0  ;;  %v3257_v8 = vmax.f32 %v6085_v19, %v3241_v41  ;;  %v3239_v2 = vadd.f32 %v3202_v54, %v3107_v10  ;;  %v3112_v48 = vadd.f32 %v4165_v62, %v2999_v12 }
 0x1f4   : > { %v3642_v56 = vpack.c.bf16 %v3288_v25, %v3288_v25  ;;  %v4185_v28 = vpop.f32.mrf.mxu1  ;;  %v3083_v57 = vpop.f32.mrf.mxu0 }
 0x1f5   : > { %v3641_v13 = vpack.c.bf16 %v3287_v0, %v3287_v0  ;;  %v3267_v34 = vmax.f32 %v3256_v36, %v3257_v8  ;;  %v3255_v5 = vmax.f32 %v6086_v58, %v3239_v2  ;;  %v3244_v39 = vadd.f32 %v4185_v28, %v3112_v48 }
 0x1f6   : > { %3329 = vst.msk [vmem:[%s5796_s28 + $0xc] sm:$0xf] %vm3325_vm4, %v3642_v56  ;;  %v3110_v15 = vadd.f32 %v3083_v57, %v2997_v21  ;;  %v3215_v6 = vpop.f32.mrf.mxu1  ;;  %v4166_v18 = vpop.f32.mrf.mxu0 }
 0x1f7   : > { %3328 = vst.msk [vmem:[%s5796_s28 + $0x8] sm:$0xf] %vm3325_vm4, %v3641_v13  ;;  %v3282_v32 = vadd.f32 %v5772_v26, %v3267_v34  ;;  %v3266_v17 = vmax.f32 %v3254_v23, %v3255_v5  ;;  %v3260_v33 = vmax.f32 %v6087_v44, %v3244_v39  ;;  %v3113_v59 = vadd.f32 %v4166_v18, %v3000_v9 }
 0x1f8   : > { %v3242_v4 = vadd.f32 %v3215_v6, %v3110_v15  ;;  %v4186_v50 = vpop.f32.mrf.mxu1  ;;  %v3086_v46 = vpop.f32.mrf.mxu0 }
 0x1f9   : > { %v3290_v22 = vmax.f32 %v3282_v32, 0.0  ;;  %v3281_v52 = vadd.f32 %v5772_v26, %v3266_v17  ;;  %v3245_v7 = vadd.f32 %v4186_v50, %v3113_v59  ;;  %v3111_v1 = vadd.f32 %v3086_v46, %v2998_v60 }
 0x1fa   : > { %v3258_v27 = vmax.f32 %v6088_v35, %v3242_v4  ;;  %v3218_v40 = vpop.f32.mrf.mxu1 }
 0x1fb   : > { %v3644_v11 = vpack.c.bf16 %v3290_v22, %v3290_v22  ;;  %v3289_v61 = vmax.f32 %v3281_v52, 0.0  ;;  %v3261_v16 = vmax.f32 %v6089_v3, %v3245_v7  ;;  %v3243_v30 = vadd.f32 %v3218_v40, %v3111_v1 }
 0x1fd   : > { %3331 = vst.msk [vmem:[%s5796_s28 + $0x14] sm:$0xf] %vm3325_vm4, %v3644_v11  ;;  %v3643_v29 = vpack.c.bf16 %v3289_v61, %v3289_v61  ;;  %v3269_v20 = vmax.f32 %v3260_v33, %v3261_v16  ;;  %v3259_v43 = vmax.f32 %v6090_v51, %v3243_v30 }
 0x1ff   : > { %3330 = vst.msk [vmem:[%s5796_s28 + $0x10] sm:$0xf] %vm3325_vm4, %v3643_v29  ;;  %v3284_v24 = vadd.f32 %v5772_v26, %v3269_v20  ;;  %v3268_v47 = vmax.f32 %v3258_v27, %v3259_v43 }
 0x201   : > { %v3292_v36 = vmax.f32 %v3284_v24, 0.0  ;;  %v3283_v53 = vadd.f32 %v5772_v26, %v3268_v47 }
 0x203   : > { %v3646_v63 = vpack.c.bf16 %v3292_v36, %v3292_v36  ;;  %v3291_v12 = vmax.f32 %v3283_v53, 0.0 }
 0x205   : > { %3333 = vst.msk [vmem:[%s5796_s28 + $0x1c] sm:$0xf] %vm3325_vm4, %v3646_v63  ;;  %v3645_v37 = vpack.c.bf16 %v3291_v12, %v3291_v12 }
 0x207   : > { %3332 = vst.msk [vmem:[%s5796_s28 + $0x18] sm:$0xf] %vm3325_vm4, %v3645_v37 }
 0x208 PF: > { %s13_s12 = sadd.s32 1, %s4264_s12  }
 0x209   : > { %p10_p4 = scmp.ge.s32.totalorder %s13_s12, 4  }
 0x20b   :  { %12 = sbr.rel (!%p10_p4) target bundleno = 1 (0x1), region = 62 }

// kernel: simple_cnn_forward.5
= control target key start
LH: loop header
LB: loop body
LE: loop exit
PB: predicated region body
PF: predicated region fallthrough
CT: control target
= control target key end

     0   :  { %s4250_s18 = smov 0   ;;  %s5094_s0 = inlined_call_operand.vmem [shape: bf16[16,4096], index: 0, kind: input, shape index: {}]   ;;  %s5095_s1 = inlined_call_operand.vmem [shape: bf16[4096,128], index: 1, kind: input, shape index: {}]   ;;  %s5096_s2 = inlined_call_operand.vmem [shape: f32[1,128], index: 2, kind: input, shape index: {}]   ;;  %s5097_s3 = inlined_call_operand.vmem [shape: bf16[128,128], index: 3, kind: input, shape index: {}]   ;;  %s5098_s4 = inlined_call_operand.vmem [shape: f32[1,128], index: 4, kind: input, shape index: {}]   ;;  %s5099_s5 = inlined_call_operand.vmem [shape: f32[16,128], index: 5, kind: output, shape index: {}]  }
   0x1 LB: > { %s3214_s19 = sadd.s32 4294967295, %s4216_s18   ;;  %p3218_p0 = scmp.ge.s32.totalorder %s4216_s18, 1  ;;  %s4216_s18 = sphi %s4250_s18, %s15_s18  }
   0x2   : > { %p187_p1 = scmp.lt.s32.totalorder %s4216_s18, 3 }
   0x4   : > { %p188_p2 = pnand %p3218_p0, %p187_p1 }
   0x5   : > { %p214_p3 = scmp.lt.s32.totalorder (!%p188_p2), %s3214_s19, 1 }
   0x6   : > { %191 = sbr.rel (%p188_p2) target bundleno = 673 (0x2a1), region = 40 }
   0xb   : > { %v3914_v0 = vld [vmem:[%s5095_s1 + $0x78] sm:$0xff]   ;;  %v3918_v4 = vld [vmem:[%s5095_s1 + $0x70] sm:$0xff]   ;;  %v3922_v8 = vld [vmem:[%s5095_s1 + $0x68] sm:$0xff]   ;;  %s5101_s19 = smov (!%p214_p3, %s3214_s19), 1  ;;  %vm4219_vm0 = vmmov 0  }
   0xc   : > { %v3915_v1 = vld [vmem:[%s5095_s1 + $0xf8] sm:$0xff]   ;;  %3523 = vmatprep.subr.bf16.mxu0 %v3914_v0  ;;  %v3919_v5 = vld [vmem:[%s5095_s1 + $0xf0] sm:$0xff]   ;;  %v3923_v9 = vld [vmem:[%s5095_s1 + $0xe8] sm:$0xff]   ;;  %s3522_s28 = sshll.u32 %s5101_s19, 7  ;;  %s3221_s22 = sshll.u32 %s5101_s19, 3 }
   0xd   : > { %v3916_v2 = vld [vmem:[%s5095_s1 + $0x38] sm:$0xff]   ;;  %3545 = vmatprep.subr.bf16.mxu1 %v3915_v1  ;;  %v3920_v6 = vld [vmem:[%s5095_s1 + $0x30] sm:$0xff]   ;;  %v3924_v10 = vld [vmem:[%s5095_s1 + $0x28] sm:$0xff]   ;;  %s4358_s12 = scalar_lea.vmem %s5094_s0, %s3522_s28  ;;  %s222_s27 = scalar_lea.vmem %s5099_s5, %s3221_s22 }
   0xe   : > { %v3917_v3 = vld [vmem:[%s5095_s1 + $0xb8] sm:$0xff]   ;;  %3524 = vmatpush3.bf16.msra.mxu0 %v3916_v2  ;;  %v3921_v7 = vld [vmem:[%s5095_s1 + $0xb0] sm:$0xff]   ;;  %v3925_v11 = vld [vmem:[%s5095_s1 + $0xa8] sm:$0xff]  }
   0xf   : > { %3546 = vmatpush3.bf16.msra.mxu1 %v3917_v3  ;;  %3525 = vmatprep.subr.bf16.mxu0 %v3918_v4  ;;  %v3926_v12 = vld [vmem:[%s5095_s1 + $0x60] sm:$0xff]   ;;  %v3930_v16 = vld [vmem:[%s5095_s1 + $0x58] sm:$0xff]   ;;  %v3934_v20 = vld [vmem:[%s5095_s1 + $0x50] sm:$0xff]  }
  0x10   : > { %3547 = vmatprep.subr.bf16.mxu1 %v3919_v5  ;;  %v3927_v13 = vld [vmem:[%s5095_s1 + $0xe0] sm:$0xff]   ;;  %v3931_v17 = vld [vmem:[%s5095_s1 + $0xd8] sm:$0xff]   ;;  %v3935_v21 = vld [vmem:[%s5095_s1 + $0xd0] sm:$0xff]  }
  0x11   : > { %v3928_v14 = vld [vmem:[%s5095_s1 + $0x20] sm:$0xff]   ;;  %v3932_v18 = vld [vmem:[%s5095_s1 + $0x18] sm:$0xff]   ;;  %v3936_v22 = vld [vmem:[%s5095_s1 + $0x10] sm:$0xff]  }
  0x12   : > { %3526 = vmatpush3.bf16.msra.mxu0 %v3920_v6  ;;  %v3929_v15 = vld [vmem:[%s5095_s1 + $0xa0] sm:$0xff]   ;;  %v3933_v19 = vld [vmem:[%s5095_s1 + $0x98] sm:$0xff]   ;;  %v3937_v23 = vld [vmem:[%s5095_s1 + $0x90] sm:$0xff]  }
  0x13   : > { %3548 = vmatpush3.bf16.msra.mxu1 %v3921_v7  ;;  %3527 = vmatprep.subr.bf16.mxu0 %v3922_v8  ;;  %v3938_v24 = vld [vmem:[%s5095_s1 + $0x48] sm:$0xff]   ;;  %v3942_v28 = vld [vmem:[%s5095_s1 + $0x40] sm:$0xff]   ;;  %v3950_v38 = vld [vmem:[%s5095_s1 + $0x178] sm:$0xff]  }
  0x14   : > { %3549 = vmatprep.subr.bf16.mxu1 %v3923_v9  ;;  %v3939_v25 = vld [vmem:[%s5095_s1 + $0xc8] sm:$0xff]   ;;  %v3943_v29 = vld [vmem:[%s5095_s1 + $0xc0] sm:$0xff]   ;;  %v3951_v39 = vld [vmem:[%s5095_s1 + $0x1f8] sm:$0xff]  }
  0x15   : > { %v3940_v26 = vld [vmem:[%s5095_s1 + $0x8] sm:$0xff]   ;;  %v3944_v30 = vld [vmem:[%s5095_s1] sm:$0xff]   ;;  %v3952_v40 = vld [vmem:[%s5095_s1 + $0x138] sm:$0xff]  }
  0x16   : > { %3528 = vmatpush3.bf16.msra.mxu0 %v3924_v10  ;;  %v3941_v27 = vld [vmem:[%s5095_s1 + $0x88] sm:$0xff]   ;;  %v3945_v31 = vld [vmem:[%s5095_s1 + $0x80] sm:$0xff]   ;;  %v3953_v41 = vld [vmem:[%s5095_s1 + $0x1b8] sm:$0xff]  }
  0x17   : > { %3550 = vmatpush3.bf16.msra.mxu1 %v3925_v11  ;;  %3529 = vmatprep.subr.bf16.mxu0 %v3926_v12  ;;  %v224_v32 = vld [vmem:[%s4358_s12] sm:$0xff]  ;;  %v225_v33 = vld [vmem:[%s4358_s12 + $0x8] sm:$0xff]  ;;  %v3954_v42 = vld [vmem:[%s5095_s1 + $0x170] sm:$0xff]  }
  0x18   : > { %3551 = vmatprep.subr.bf16.mxu1 %v3927_v13  ;;  %v3223_v34 = vcombine.low %v224_v32, %v224_v32  ;;  %v3224_v35 = vcombine.high %v224_v32, %v224_v32  ;;  %v3225_v36 = vcombine.low %v225_v33, %v225_v33  ;;  %v3226_v37 = vcombine.high %v225_v33, %v225_v33  ;;  %v3955_v43 = vld [vmem:[%s5095_s1 + $0x1f0] sm:$0xff]   ;;  %v3958_v46 = vld [vmem:[%s5095_s1 + $0x168] sm:$0xff]   ;;  %v3962_v50 = vld [vmem:[%s5095_s1 + $0x160] sm:$0xff]  }
  0x19   : > { %v3956_v44 = vld [vmem:[%s5095_s1 + $0x130] sm:$0xff]   ;;  %v3959_v47 = vld [vmem:[%s5095_s1 + $0x1e8] sm:$0xff]   ;;  %v3963_v51 = vld [vmem:[%s5095_s1 + $0x1e0] sm:$0xff]  }
  0x1a   : > { %3530 = vmatpush3.bf16.msra.mxu0 %v3928_v14  ;;  %2439 = vmatprep.mubr.bf16.mxu0 %v3224_v35  ;;  %v3957_v45 = vld [vmem:[%s5095_s1 + $0x1b0] sm:$0xff]   ;;  %v3960_v48 = vld [vmem:[%s5095_s1 + $0x128] sm:$0xff]   ;;  %v3964_v52 = vld [vmem:[%s5095_s1 + $0x120] sm:$0xff]  }
  0x1b   : > { %3552 = vmatpush3.bf16.msra.mxu1 %v3929_v15  ;;  %3531 = vmatprep.subr.bf16.mxu0 %v3930_v16  ;;  %v3961_v49 = vld [vmem:[%s5095_s1 + $0x1a8] sm:$0xff]   ;;  %v3965_v53 = vld [vmem:[%s5095_s1 + $0x1a0] sm:$0xff]   ;;  %v3966_v54 = vld [vmem:[%s5095_s1 + $0x158] sm:$0xff]  }
  0x1c   : > { %3553 = vmatprep.subr.bf16.mxu1 %v3931_v17  ;;  %2479 = vmatprep.mubr.bf16.mxu1 %v3226_v37  ;;  %v3967_v55 = vld [vmem:[%s5095_s1 + $0x1d8] sm:$0xff]   ;;  %v3970_v58 = vld [vmem:[%s5095_s1 + $0x150] sm:$0xff]   ;;  %v3974_v62 = vld [vmem:[%s5095_s1 + $0x148] sm:$0xff]  }
  0x1d   : > { %v3968_v56 = vld [vmem:[%s5095_s1 + $0x118] sm:$0xff]   ;;  %v3971_v59 = vld [vmem:[%s5095_s1 + $0x1d0] sm:$0xff]   ;;  %v3975_v63 = vld [vmem:[%s5095_s1 + $0x1c8] sm:$0xff]  }
  0x1e   : > { %3532 = vmatpush3.bf16.msra.mxu0 %v3932_v18  ;;  %v3969_v57 = vld [vmem:[%s5095_s1 + $0x198] sm:$0xff]   ;;  %v3972_v60 = vld [vmem:[%s5095_s1 + $0x110] sm:$0xff]   ;;  %v3976_v0 = vld [vmem:[%s5095_s1 + $0x108] sm:$0xff]  }
  0x1f   : > { %3554 = vmatpush3.bf16.msra.mxu1 %v3933_v19  ;;  %3533 = vmatprep.subr.bf16.mxu0 %v3934_v20  ;;  %v3973_v61 = vld [vmem:[%s5095_s1 + $0x190] sm:$0xff]   ;;  %v3977_v1 = vld [vmem:[%s5095_s1 + $0x188] sm:$0xff]   ;;  %v3978_v2 = vld [vmem:[%s5095_s1 + $0x140] sm:$0xff]  }
  0x20   : > { %3555 = vmatprep.subr.bf16.mxu1 %v3935_v21  ;;  %v3979_v3 = vld [vmem:[%s5095_s1 + $0x1c0] sm:$0xff]   ;;  %v226_v6 = vld [vmem:[%s4358_s12 + $0x10] sm:$0xff]  ;;  %v227_v9 = vld [vmem:[%s4358_s12 + $0x18] sm:$0xff] }
  0x21   : > { %v3980_v4 = vld [vmem:[%s5095_s1 + $0x100] sm:$0xff]   ;;  %v3227_v7 = vcombine.low %v226_v6, %v226_v6  ;;  %v3228_v8 = vcombine.high %v226_v6, %v226_v6  ;;  %v3229_v10 = vcombine.low %v227_v9, %v227_v9  ;;  %v3230_v11 = vcombine.high %v227_v9, %v227_v9  ;;  %v3986_v12 = vld [vmem:[%s5095_s1 + $0x278] sm:$0xff]   ;;  %v3990_v16 = vld [vmem:[%s5095_s1 + $0x270] sm:$0xff]  }
  0x22   : > { %3534 = vmatpush3.bf16.msra.mxu0 %v3936_v22  ;;  %v3981_v5 = vld [vmem:[%s5095_s1 + $0x180] sm:$0xff]   ;;  %v3987_v13 = vld [vmem:[%s5095_s1 + $0x2f8] sm:$0xff]   ;;  %v3991_v17 = vld [vmem:[%s5095_s1 + $0x2f0] sm:$0xff]  }
  0x23   : > { %3556 = vmatpush3.bf16.msra.mxu1 %v3937_v23  ;;  %3535 = vmatprep.subr.bf16.mxu0 %v3938_v24  ;;  %v3988_v14 = vld [vmem:[%s5095_s1 + $0x238] sm:$0xff]   ;;  %v3992_v18 = vld [vmem:[%s5095_s1 + $0x230] sm:$0xff]   ;;  %v3994_v20 = vld [vmem:[%s5095_s1 + $0x268] sm:$0xff]  }
  0x24   : > { %3557 = vmatprep.subr.bf16.mxu1 %v3939_v25  ;;  %v3989_v15 = vld [vmem:[%s5095_s1 + $0x2b8] sm:$0xff]   ;;  %v3993_v19 = vld [vmem:[%s5095_s1 + $0x2b0] sm:$0xff]   ;;  %v3995_v21 = vld [vmem:[%s5095_s1 + $0x2e8] sm:$0xff]  }
  0x25   : > { %v3996_v22 = vld [vmem:[%s5095_s1 + $0x228] sm:$0xff]   ;;  %v3998_v24 = vld [vmem:[%s5095_s1 + $0x260] sm:$0xff]   ;;  %v4006_v32 = vld [vmem:[%s5095_s1 + $0x250] sm:$0xff]  }
  0x26   : > { %3536 = vmatpush3.bf16.msra.mxu0 %v3940_v26  ;;  %v3997_v23 = vld [vmem:[%s5095_s1 + $0x2a8] sm:$0xff]   ;;  %v3999_v25 = vld [vmem:[%s5095_s1 + $0x2e0] sm:$0xff]   ;;  %v4007_v33 = vld [vmem:[%s5095_s1 + $0x2d0] sm:$0xff]  }
  0x27   : > { %3558 = vmatpush3.bf16.msra.mxu1 %v3941_v27  ;;  %3537 = vmatprep.subr.bf16.mxu0 %v3942_v28  ;;  %v4000_v26 = vld [vmem:[%s5095_s1 + $0x220] sm:$0xff]   ;;  %v4002_v28 = vld [vmem:[%s5095_s1 + $0x258] sm:$0xff]   ;;  %v4009_v35 = vld [vmem:[%s5095_s1 + $0x290] sm:$0xff]  }
  0x28   : > { %3559 = vmatprep.subr.bf16.mxu1 %v3943_v29  ;;  %v4001_v27 = vld [vmem:[%s5095_s1 + $0x2a0] sm:$0xff]   ;;  %v4003_v29 = vld [vmem:[%s5095_s1 + $0x2d8] sm:$0xff]   ;;  %v4011_v37 = vld [vmem:[%s5095_s1 + $0x2c8] sm:$0xff]  }
  0x29   : > { %v4042_v6 = vld [vmem:[%s5095_s1 + $0x350] sm:$0xff]  }
  0x2a   : > { %3538 = vmatpush3.bf16.msra.mxu0 %v3944_v30  ;;  %v4004_v30 = vld [vmem:[%s5095_s1 + $0x218] sm:$0xff]   ;;  %v4045_v9 = vld [vmem:[%s5095_s1 + $0x390] sm:$0xff]  }
  0x2b   : > { %3560 = vmatpush3.bf16.msra.mxu1 %v3945_v31  ;;  %3567 = vmatprep.subr.bf16.mxu0 %v3950_v38  ;;  %v4005_v31 = vld [vmem:[%s5095_s1 + $0x298] sm:$0xff]   ;;  %v4012_v38 = vld [vmem:[%s5095_s1 + $0x208] sm:$0xff]  }
  0x2c   : > { %3589 = vmatprep.subr.bf16.mxu1 %v3951_v39  ;;  %v4013_v39 = vld [vmem:[%s5095_s1 + $0x288] sm:$0xff]  }
  0x2d   : > { %2440 = vmatmul.mubr.bf16.vlgmr.msra.gmra.mxu0 %v3223_v34  ;;  %v4008_v34 = vld [vmem:[%s5095_s1 + $0x210] sm:$0xff]  }
  0x2e   : > { %2480 = vmatmul.mubr.bf16.vlgmr.msra.gmra.mxu1 %v3225_v36  ;;  %3568 = vmatpush3.bf16.msra.mxu0 %v3952_v40  ;;  %v4010_v36 = vld [vmem:[%s5095_s1 + $0x248] sm:$0xff]   ;;  %v4014_v40 = vld [vmem:[%s5095_s1 + $0x240] sm:$0xff]  }
  0x2f   : > { %3590 = vmatpush3.bf16.msra.mxu1 %v3953_v41  ;;  %3569 = vmatprep.subr.bf16.mxu0 %v3954_v42  ;;  %v4015_v41 = vld [vmem:[%s5095_s1 + $0x2c0] sm:$0xff]  }
  0x30   : > { %3591 = vmatprep.subr.bf16.mxu1 %v3955_v43  ;;  %2519 = vmatprep.mubr.bf16.mxu0 %v3228_v8  ;;  %v4016_v42 = vld [vmem:[%s5095_s1 + $0x200] sm:$0xff]   ;;  %v4044_v8 = vld [vmem:[%s5095_s1 + $0x310] sm:$0xff]  }
  0x31   : > { %2559 = vmatprep.mubr.bf16.mxu1 %v3230_v11  ;;  %v4017_v43 = vld [vmem:[%s5095_s1 + $0x280] sm:$0xff]   ;;  %v4047_v11 = vld [vmem:[%s5095_s1 + $0x3c8] sm:$0xff]  }
  0x32   : > { %3570 = vmatpush3.bf16.msra.mxu0 %v3956_v44  ;;  %v228_v44 = vld [vmem:[%s4358_s12 + $0x20] sm:$0xff] }
  0x33   : > { %3592 = vmatpush3.bf16.msra.mxu1 %v3957_v45  ;;  %3571 = vmatprep.subr.bf16.mxu0 %v3958_v46  ;;  %v229_v45 = vld [vmem:[%s4358_s12 + $0x28] sm:$0xff]  ;;  %v3231_v46 = vcombine.low %v228_v44, %v228_v44 }
  0x34   : > { %3593 = vmatprep.subr.bf16.mxu1 %v3959_v47  ;;  %v3232_v47 = vcombine.high %v228_v44, %v228_v44  ;;  %v4078_v44 = vld [vmem:[%s5095_s1 + $0x450] sm:$0xff]  }
  0x36   : > { %3572 = vmatpush3.bf16.msra.mxu0 %v3960_v48  ;;  %v3233_v48 = vcombine.low %v229_v45, %v229_v45 }
  0x37   : > { %3594 = vmatpush3.bf16.msra.mxu1 %v3961_v49  ;;  %3573 = vmatprep.subr.bf16.mxu0 %v3962_v50  ;;  %v3234_v49 = vcombine.high %v229_v45, %v229_v45  ;;  %v4022_v50 = vld [vmem:[%s5095_s1 + $0x378] sm:$0xff]   ;;  %v4079_v45 = vld [vmem:[%s5095_s1 + $0x4d0] sm:$0xff]  }
  0x38   : > { %3595 = vmatprep.subr.bf16.mxu1 %v3963_v51  ;;  %v4023_v51 = vld [vmem:[%s5095_s1 + $0x3f8] sm:$0xff]  }
  0x3a   : > { %3574 = vmatpush3.bf16.msra.mxu0 %v3964_v52  ;;  %v4024_v52 = vld [vmem:[%s5095_s1 + $0x338] sm:$0xff]  }
  0x3b   : > { %3596 = vmatpush3.bf16.msra.mxu1 %v3965_v53  ;;  %3575 = vmatprep.subr.bf16.mxu0 %v3966_v54  ;;  %v4025_v53 = vld [vmem:[%s5095_s1 + $0x3b8] sm:$0xff]   ;;  %v4026_v54 = vld [vmem:[%s5095_s1 + $0x370] sm:$0xff]  }
  0x3c   : > { %3597 = vmatprep.subr.bf16.mxu1 %v3967_v55  ;;  %v4027_v55 = vld [vmem:[%s5095_s1 + $0x3f0] sm:$0xff]  }
  0x3e   : > { %3576 = vmatpush3.bf16.msra.mxu0 %v3968_v56  ;;  %v4028_v56 = vld [vmem:[%s5095_s1 + $0x330] sm:$0xff]  }
  0x3f   : > { %3598 = vmatpush3.bf16.msra.mxu1 %v3969_v57  ;;  %3577 = vmatprep.subr.bf16.mxu0 %v3970_v58  ;;  %v4029_v57 = vld [vmem:[%s5095_s1 + $0x3b0] sm:$0xff]   ;;  %v4030_v58 = vld [vmem:[%s5095_s1 + $0x368] sm:$0xff]  }
  0x40   : > { %3599 = vmatprep.subr.bf16.mxu1 %v3971_v59  ;;  %v4031_v59 = vld [vmem:[%s5095_s1 + $0x3e8] sm:$0xff]  }
  0x42   : > { %3578 = vmatpush3.bf16.msra.mxu0 %v3972_v60  ;;  %v4032_v60 = vld [vmem:[%s5095_s1 + $0x328] sm:$0xff]  }
  0x43   : > { %3600 = vmatpush3.bf16.msra.mxu1 %v3973_v61  ;;  %3579 = vmatprep.subr.bf16.mxu0 %v3974_v62  ;;  %v4033_v61 = vld [vmem:[%s5095_s1 + $0x3a8] sm:$0xff]   ;;  %v4034_v62 = vld [vmem:[%s5095_s1 + $0x360] sm:$0xff]  }
  0x44   : > { %3601 = vmatprep.subr.bf16.mxu1 %v3975_v63  ;;  %v4035_v63 = vld [vmem:[%s5095_s1 + $0x3e0] sm:$0xff]  }
  0x46   : > { %3580 = vmatpush3.bf16.msra.mxu0 %v3976_v0  ;;  %v4036_v0 = vld [vmem:[%s5095_s1 + $0x320] sm:$0xff]  }
  0x47   : > { %3602 = vmatpush3.bf16.msra.mxu1 %v3977_v1  ;;  %3581 = vmatprep.subr.bf16.mxu0 %v3978_v2  ;;  %v4037_v1 = vld [vmem:[%s5095_s1 + $0x3a0] sm:$0xff]   ;;  %v4038_v2 = vld [vmem:[%s5095_s1 + $0x358] sm:$0xff]  }
  0x48   : > { %3603 = vmatprep.subr.bf16.mxu1 %v3979_v3  ;;  %v4039_v3 = vld [vmem:[%s5095_s1 + $0x3d8] sm:$0xff]  }
  0x4a   : > { %3582 = vmatpush3.bf16.msra.mxu0 %v3980_v4  ;;  %v4040_v4 = vld [vmem:[%s5095_s1 + $0x318] sm:$0xff]  }
  0x4b   : > { %3604 = vmatpush3.bf16.msra.mxu1 %v3981_v5  ;;  %3611 = vmatprep.subr.bf16.mxu0 %v3986_v12  ;;  %v4041_v5 = vld [vmem:[%s5095_s1 + $0x398] sm:$0xff]   ;;  %v4048_v12 = vld [vmem:[%s5095_s1 + $0x308] sm:$0xff]  }
  0x4c   : > { %3633 = vmatprep.subr.bf16.mxu1 %v3987_v13  ;;  %v4049_v13 = vld [vmem:[%s5095_s1 + $0x388] sm:$0xff]  }
  0x4d   : > { %2520 = vmatmul.mubr.bf16.vlgmr.msra.gmra.mxu0 %v3227_v7  ;;  %v4043_v7 = vld [vmem:[%s5095_s1 + $0x3d0] sm:$0xff]  }
  0x4e   : > { %2560 = vmatmul.mubr.bf16.vlgmr.msra.gmra.mxu1 %v3229_v10  ;;  %3612 = vmatpush3.bf16.msra.mxu0 %v3988_v14  ;;  %v4046_v10 = vld [vmem:[%s5095_s1 + $0x348] sm:$0xff]   ;;  %v4050_v14 = vld [vmem:[%s5095_s1 + $0x340] sm:$0xff]  }
  0x4f   : > { %3634 = vmatpush3.bf16.msra.mxu1 %v3989_v15  ;;  %3613 = vmatprep.subr.bf16.mxu0 %v3990_v16  ;;  %v4051_v15 = vld [vmem:[%s5095_s1 + $0x3c0] sm:$0xff]  }
  0x50   : > { %3635 = vmatprep.subr.bf16.mxu1 %v3991_v17  ;;  %2599 = vmatprep.mubr.bf16.mxu0 %v3232_v47  ;;  %v4052_v16 = vld [vmem:[%s5095_s1 + $0x300] sm:$0xff]   ;;  %v4081_v47 = vld [vmem:[%s5095_s1 + $0x490] sm:$0xff]  }
  0x51   : > { %2639 = vmatprep.mubr.bf16.mxu1 %v3234_v49  ;;  %v4053_v17 = vld [vmem:[%s5095_s1 + $0x380] sm:$0xff]   ;;  %v4083_v49 = vld [vmem:[%s5095_s1 + $0x4c8] sm:$0xff]  }
  0x52   : > { %3614 = vmatpush3.bf16.msra.mxu0 %v3992_v18  ;;  %v230_v18 = vld [vmem:[%s4358_s12 + $0x30] sm:$0xff] }
  0x53   : > { %3636 = vmatpush3.bf16.msra.mxu1 %v3993_v19  ;;  %3615 = vmatprep.subr.bf16.mxu0 %v3994_v20  ;;  %v231_v19 = vld [vmem:[%s4358_s12 + $0x38] sm:$0xff]  ;;  %v3235_v20 = vcombine.low %v230_v18, %v230_v18 }
  0x54   : > { %3637 = vmatprep.subr.bf16.mxu1 %v3995_v21  ;;  %v3236_v21 = vcombine.high %v230_v18, %v230_v18  ;;  %v4114_v18 = vld [vmem:[%s5095_s1 + $0x550] sm:$0xff]  }
  0x56   : > { %3616 = vmatpush3.bf16.msra.mxu0 %v3996_v22  ;;  %v3237_v22 = vcombine.low %v231_v19, %v231_v19 }
  0x57   : > { %3638 = vmatpush3.bf16.msra.mxu1 %v3997_v23  ;;  %3617 = vmatprep.subr.bf16.mxu0 %v3998_v24  ;;  %v4058_v23 = vld [vmem:[%s5095_s1 + $0x478] sm:$0xff]   ;;  %v3238_v24 = vcombine.high %v231_v19, %v231_v19  ;;  %v4115_v19 = vld [vmem:[%s5095_s1 + $0x5d0] sm:$0xff]  }
  0x58   : > { %3639 = vmatprep.subr.bf16.mxu1 %v3999_v25  ;;  %v4059_v25 = vld [vmem:[%s5095_s1 + $0x4f8] sm:$0xff]  }
  0x5a   : > { %3618 = vmatpush3.bf16.msra.mxu0 %v4000_v26  ;;  %v4060_v26 = vld [vmem:[%s5095_s1 + $0x438] sm:$0xff]  }
  0x5b   : > { %3640 = vmatpush3.bf16.msra.mxu1 %v4001_v27  ;;  %3619 = vmatprep.subr.bf16.mxu0 %v4002_v28  ;;  %v4061_v27 = vld [vmem:[%s5095_s1 + $0x4b8] sm:$0xff]   ;;  %v4062_v28 = vld [vmem:[%s5095_s1 + $0x470] sm:$0xff]  }
  0x5c   : > { %3641 = vmatprep.subr.bf16.mxu1 %v4003_v29  ;;  %v4063_v29 = vld [vmem:[%s5095_s1 + $0x4f0] sm:$0xff]  }
  0x5e   : > { %3620 = vmatpush3.bf16.msra.mxu0 %v4004_v30  ;;  %v4064_v30 = vld [vmem:[%s5095_s1 + $0x430] sm:$0xff]  }
  0x5f   : > { %3642 = vmatpush3.bf16.msra.mxu1 %v4005_v31  ;;  %3621 = vmatprep.subr.bf16.mxu0 %v4006_v32  ;;  %v4065_v31 = vld [vmem:[%s5095_s1 + $0x4b0] sm:$0xff]   ;;  %v4066_v32 = vld [vmem:[%s5095_s1 + $0x468] sm:$0xff]  }
  0x60   : > { %3643 = vmatprep.subr.bf16.mxu1 %v4007_v33  ;;  %v4067_v33 = vld [vmem:[%s5095_s1 + $0x4e8] sm:$0xff]  }
  0x62   : > { %3622 = vmatpush3.bf16.msra.mxu0 %v4008_v34  ;;  %v4068_v34 = vld [vmem:[%s5095_s1 + $0x428] sm:$0xff]  }
  0x63   : > { %3644 = vmatpush3.bf16.msra.mxu1 %v4009_v35  ;;  %3623 = vmatprep.subr.bf16.mxu0 %v4010_v36  ;;  %v4069_v35 = vld [vmem:[%s5095_s1 + $0x4a8] sm:$0xff]   ;;  %v4070_v36 = vld [vmem:[%s5095_s1 + $0x460] sm:$0xff]  }
  0x64   : > { %3645 = vmatprep.subr.bf16.mxu1 %v4011_v37  ;;  %v4071_v37 = vld [vmem:[%s5095_s1 + $0x4e0] sm:$0xff]  }
  0x66   : > { %3624 = vmatpush3.bf16.msra.mxu0 %v4012_v38  ;;  %v4072_v38 = vld [vmem:[%s5095_s1 + $0x420] sm:$0xff]  }
  0x67   : > { %3646 = vmatpush3.bf16.msra.mxu1 %v4013_v39  ;;  %3625 = vmatprep.subr.bf16.mxu0 %v4014_v40  ;;  %v4073_v39 = vld [vmem:[%s5095_s1 + $0x4a0] sm:$0xff]   ;;  %v4074_v40 = vld [vmem:[%s5095_s1 + $0x458] sm:$0xff]  }
  0x68   : > { %3647 = vmatprep.subr.bf16.mxu1 %v4015_v41  ;;  %v4075_v41 = vld [vmem:[%s5095_s1 + $0x4d8] sm:$0xff]  }
  0x6a   : > { %3626 = vmatpush3.bf16.msra.mxu0 %v4016_v42  ;;  %v4076_v42 = vld [vmem:[%s5095_s1 + $0x418] sm:$0xff]  }
  0x6b   : > { %3648 = vmatpush3.bf16.msra.mxu1 %v4017_v43  ;;  %3655 = vmatprep.subr.bf16.mxu0 %v4022_v50  ;;  %v4077_v43 = vld [vmem:[%s5095_s1 + $0x498] sm:$0xff]   ;;  %v4084_v50 = vld [vmem:[%s5095_s1 + $0x408] sm:$0xff]  }
  0x6c   : > { %3677 = vmatprep.subr.bf16.mxu1 %v4023_v51  ;;  %v4085_v51 = vld [vmem:[%s5095_s1 + $0x488] sm:$0xff]  }
  0x6d   : > { %2600 = vmatmul.mubr.bf16.vlgmr.msra.gmra.mxu0 %v3231_v46  ;;  %v4080_v46 = vld [vmem:[%s5095_s1 + $0x410] sm:$0xff]  }
  0x6e   : > { %2640 = vmatmul.mubr.bf16.vlgmr.msra.gmra.mxu1 %v3233_v48  ;;  %3656 = vmatpush3.bf16.msra.mxu0 %v4024_v52  ;;  %v4082_v48 = vld [vmem:[%s5095_s1 + $0x448] sm:$0xff]   ;;  %v4086_v52 = vld [vmem:[%s5095_s1 + $0x440] sm:$0xff]  }
  0x6f   : > { %3678 = vmatpush3.bf16.msra.mxu1 %v4025_v53  ;;  %3657 = vmatprep.subr.bf16.mxu0 %v4026_v54  ;;  %v4087_v53 = vld [vmem:[%s5095_s1 + $0x4c0] sm:$0xff]  }
  0x70   : > { %3679 = vmatprep.subr.bf16.mxu1 %v4027_v55  ;;  %2679 = vmatprep.mubr.bf16.mxu0 %v3236_v21  ;;  %v4088_v54 = vld [vmem:[%s5095_s1 + $0x400] sm:$0xff]   ;;  %v4117_v21 = vld [vmem:[%s5095_s1 + $0x590] sm:$0xff]  }
  0x71   : > { %2719 = vmatprep.mubr.bf16.mxu1 %v3238_v24  ;;  %v4089_v55 = vld [vmem:[%s5095_s1 + $0x480] sm:$0xff]   ;;  %v4120_v24 = vld [vmem:[%s5095_s1 + $0x508] sm:$0xff]  }
  0x72   : > { %3658 = vmatpush3.bf16.msra.mxu0 %v4028_v56  ;;  %v232_v56 = vld [vmem:[%s4358_s12 + $0x40] sm:$0xff] }
  0x73   : > { %3680 = vmatpush3.bf16.msra.mxu1 %v4029_v57  ;;  %3659 = vmatprep.subr.bf16.mxu0 %v4030_v58  ;;  %v3239_v57 = vcombine.low %v232_v56, %v232_v56  ;;  %v3240_v58 = vcombine.high %v232_v56, %v232_v56  ;;  %v4150_v56 = vld [vmem:[%s5095_s1 + $0x650] sm:$0xff]  }
  0x74   : > { %3681 = vmatprep.subr.bf16.mxu1 %v4031_v59  ;;  %v233_v59 = vld [vmem:[%s4358_s12 + $0x48] sm:$0xff] }
  0x76   : > { %3660 = vmatpush3.bf16.msra.mxu0 %v4032_v60  ;;  %v3241_v60 = vcombine.low %v233_v59, %v233_v59 }
  0x77   : > { %3682 = vmatpush3.bf16.msra.mxu1 %v4033_v61  ;;  %3661 = vmatprep.subr.bf16.mxu0 %v4034_v62  ;;  %v3242_v61 = vcombine.high %v233_v59, %v233_v59  ;;  %v4094_v62 = vld [vmem:[%s5095_s1 + $0x578] sm:$0xff]   ;;  %v4153_v59 = vld [vmem:[%s5095_s1 + $0x690] sm:$0xff]  }
  0x78   : > { %3683 = vmatprep.subr.bf16.mxu1 %v4035_v63  ;;  %v4095_v63 = vld [vmem:[%s5095_s1 + $0x5f8] sm:$0xff]  }
  0x7a   : > { %3662 = vmatpush3.bf16.msra.mxu0 %v4036_v0  ;;  %v4096_v0 = vld [vmem:[%s5095_s1 + $0x538] sm:$0xff]  }
  0x7b   : > { %3684 = vmatpush3.bf16.msra.mxu1 %v4037_v1  ;;  %3663 = vmatprep.subr.bf16.mxu0 %v4038_v2  ;;  %v4097_v1 = vld [vmem:[%s5095_s1 + $0x5b8] sm:$0xff]   ;;  %v4098_v2 = vld [vmem:[%s5095_s1 + $0x570] sm:$0xff]  }
  0x7c   : > { %3685 = vmatprep.subr.bf16.mxu1 %v4039_v3  ;;  %v4099_v3 = vld [vmem:[%s5095_s1 + $0x5f0] sm:$0xff]  }
  0x7e   : > { %3664 = vmatpush3.bf16.msra.mxu0 %v4040_v4  ;;  %v4100_v4 = vld [vmem:[%s5095_s1 + $0x530] sm:$0xff]  }
  0x7f   : > { %3686 = vmatpush3.bf16.msra.mxu1 %v4041_v5  ;;  %3665 = vmatprep.subr.bf16.mxu0 %v4042_v6  ;;  %v4101_v5 = vld [vmem:[%s5095_s1 + $0x5b0] sm:$0xff]   ;;  %v4102_v6 = vld [vmem:[%s5095_s1 + $0x568] sm:$0xff]  }
  0x80   : > { %3687 = vmatprep.subr.bf16.mxu1 %v4043_v7  ;;  %v4103_v7 = vld [vmem:[%s5095_s1 + $0x5e8] sm:$0xff]  }
  0x82   : > { %3666 = vmatpush3.bf16.msra.mxu0 %v4044_v8  ;;  %v4104_v8 = vld [vmem:[%s5095_s1 + $0x528] sm:$0xff]  }
  0x83   : > { %3688 = vmatpush3.bf16.msra.mxu1 %v4045_v9  ;;  %3667 = vmatprep.subr.bf16.mxu0 %v4046_v10  ;;  %v4105_v9 = vld [vmem:[%s5095_s1 + $0x5a8] sm:$0xff]   ;;  %v4106_v10 = vld [vmem:[%s5095_s1 + $0x560] sm:$0xff]  }
  0x84   : > { %3689 = vmatprep.subr.bf16.mxu1 %v4047_v11  ;;  %v4107_v11 = vld [vmem:[%s5095_s1 + $0x5e0] sm:$0xff]  }
  0x86   : > { %3668 = vmatpush3.bf16.msra.mxu0 %v4048_v12  ;;  %v4108_v12 = vld [vmem:[%s5095_s1 + $0x520] sm:$0xff]  }
  0x87   : > { %3690 = vmatpush3.bf16.msra.mxu1 %v4049_v13  ;;  %3669 = vmatprep.subr.bf16.mxu0 %v4050_v14  ;;  %v4109_v13 = vld [vmem:[%s5095_s1 + $0x5a0] sm:$0xff]   ;;  %v4110_v14 = vld [vmem:[%s5095_s1 + $0x558] sm:$0xff]  }
  0x88   : > { %3691 = vmatprep.subr.bf16.mxu1 %v4051_v15  ;;  %v4111_v15 = vld [vmem:[%s5095_s1 + $0x5d8] sm:$0xff]  }
  0x8a   : > { %3670 = vmatpush3.bf16.msra.mxu0 %v4052_v16  ;;  %v4112_v16 = vld [vmem:[%s5095_s1 + $0x518] sm:$0xff]  }
  0x8b   : > { %3692 = vmatpush3.bf16.msra.mxu1 %v4053_v17  ;;  %3699 = vmatprep.subr.bf16.mxu0 %v4058_v23  ;;  %v4113_v17 = vld [vmem:[%s5095_s1 + $0x598] sm:$0xff]   ;;  %v4119_v23 = vld [vmem:[%s5095_s1 + $0x5c8] sm:$0xff]  }
  0x8c   : > { %3721 = vmatprep.subr.bf16.mxu1 %v4059_v25  ;;  %v4121_v25 = vld [vmem:[%s5095_s1 + $0x588] sm:$0xff]  }
  0x8d   : > { %2680 = vmatmul.mubr.bf16.vlgmr.msra.gmra.mxu0 %v3235_v20  ;;  %v4116_v20 = vld [vmem:[%s5095_s1 + $0x510] sm:$0xff]  }
  0x8e   : > { %2720 = vmatmul.mubr.bf16.vlgmr.msra.gmra.mxu1 %v3237_v22  ;;  %3700 = vmatpush3.bf16.msra.mxu0 %v4060_v26  ;;  %v4118_v22 = vld [vmem:[%s5095_s1 + $0x548] sm:$0xff]   ;;  %v4122_v26 = vld [vmem:[%s5095_s1 + $0x540] sm:$0xff]  }
  0x8f   : > { %3722 = vmatpush3.bf16.msra.mxu1 %v4061_v27  ;;  %3701 = vmatprep.subr.bf16.mxu0 %v4062_v28  ;;  %v4123_v27 = vld [vmem:[%s5095_s1 + $0x5c0] sm:$0xff]  }
  0x90   : > { %3723 = vmatprep.subr.bf16.mxu1 %v4063_v29  ;;  %2759 = vmatprep.mubr.bf16.mxu0 %v3240_v58  ;;  %v4124_v28 = vld [vmem:[%s5095_s1 + $0x500] sm:$0xff]   ;;  %v4152_v58 = vld [vmem:[%s5095_s1 + $0x610] sm:$0xff]  }
  0x91   : > { %2799 = vmatprep.mubr.bf16.mxu1 %v3242_v61  ;;  %v4125_v29 = vld [vmem:[%s5095_s1 + $0x580] sm:$0xff]   ;;  %v4155_v61 = vld [vmem:[%s5095_s1 + $0x6c8] sm:$0xff]  }
  0x92   : > { %3702 = vmatpush3.bf16.msra.mxu0 %v4064_v30  ;;  %v234_v30 = vld [vmem:[%s4358_s12 + $0x50] sm:$0xff] }
  0x93   : > { %3724 = vmatpush3.bf16.msra.mxu1 %v4065_v31  ;;  %3703 = vmatprep.subr.bf16.mxu0 %v4066_v32  ;;  %v235_v31 = vld [vmem:[%s4358_s12 + $0x58] sm:$0xff]  ;;  %v3243_v32 = vcombine.low %v234_v30, %v234_v30 }
  0x94   : > { %3725 = vmatprep.subr.bf16.mxu1 %v4067_v33  ;;  %v3244_v33 = vcombine.high %v234_v30, %v234_v30  ;;  %v4173_v30 = vld [vmem:[%s5095_s1 + $0x7b0] sm:$0xff]  }
  0x96   : > { %3704 = vmatpush3.bf16.msra.mxu0 %v4068_v34  ;;  %v3245_v34 = vcombine.low %v235_v31, %v235_v31 }
  0x97   : > { %3726 = vmatpush3.bf16.msra.mxu1 %v4069_v35  ;;  %3705 = vmatprep.subr.bf16.mxu0 %v4070_v36  ;;  %v3246_v35 = vcombine.high %v235_v31, %v235_v31  ;;  %v4130_v36 = vld [vmem:[%s5095_s1 + $0x678] sm:$0xff]   ;;  %v4174_v31 = vld [vmem:[%s5095_s1 + $0x768] sm:$0xff]  }
  0x98   : > { %3727 = vmatprep.subr.bf16.mxu1 %v4071_v37  ;;  %v4131_v37 = vld [vmem:[%s5095_s1 + $0x6f8] sm:$0xff]  }
  0x9a   : > { %3706 = vmatpush3.bf16.msra.mxu0 %v4072_v38  ;;  %v4132_v38 = vld [vmem:[%s5095_s1 + $0x638] sm:$0xff]  }
  0x9b   : > { %3728 = vmatpush3.bf16.msra.mxu1 %v4073_v39  ;;  %3707 = vmatprep.subr.bf16.mxu0 %v4074_v40  ;;  %v4133_v39 = vld [vmem:[%s5095_s1 + $0x6b8] sm:$0xff]   ;;  %v4134_v40 = vld [vmem:[%s5095_s1 + $0x670] sm:$0xff]  }
  0x9c   : > { %3729 = vmatprep.subr.bf16.mxu1 %v4075_v41  ;;  %v4135_v41 = vld [vmem:[%s5095_s1 + $0x6f0] sm:$0xff]  }
  0x9e   : > { %3708 = vmatpush3.bf16.msra.mxu0 %v4076_v42  ;;  %v4136_v42 = vld [vmem:[%s5095_s1 + $0x630] sm:$0xff]  }
  0x9f   : > { %3730 = vmatpush3.bf16.msra.mxu1 %v4077_v43  ;;  %3709 = vmatprep.subr.bf16.mxu0 %v4078_v44  ;;  %v4137_v43 = vld [vmem:[%s5095_s1 + $0x6b0] sm:$0xff]   ;;  %v4138_v44 = vld [vmem:[%s5095_s1 + $0x668] sm:$0xff]  }
  0xa0   : > { %3731 = vmatprep.subr.bf16.mxu1 %v4079_v45  ;;  %v4139_v45 = vld [vmem:[%s5095_s1 + $0x6e8] sm:$0xff]  }
  0xa2   : > { %3710 = vmatpush3.bf16.msra.mxu0 %v4080_v46  ;;  %v4140_v46 = vld [vmem:[%s5095_s1 + $0x628] sm:$0xff]  }
  0xa3   : > { %3732 = vmatpush3.bf16.msra.mxu1 %v4081_v47  ;;  %3711 = vmatprep.subr.bf16.mxu0 %v4082_v48  ;;  %v4141_v47 = vld [vmem:[%s5095_s1 + $0x6a8] sm:$0xff]   ;;  %v4142_v48 = vld [vmem:[%s5095_s1 + $0x660] sm:$0xff]  }
  0xa4   : > { %3733 = vmatprep.subr.bf16.mxu1 %v4083_v49  ;;  %v4143_v49 = vld [vmem:[%s5095_s1 + $0x6e0] sm:$0xff]  }
  0xa6   : > { %3712 = vmatpush3.bf16.msra.mxu0 %v4084_v50  ;;  %v4144_v50 = vld [vmem:[%s5095_s1 + $0x620] sm:$0xff]  }
  0xa7   : > { %3734 = vmatpush3.bf16.msra.mxu1 %v4085_v51  ;;  %3713 = vmatprep.subr.bf16.mxu0 %v4086_v52  ;;  %v4145_v51 = vld [vmem:[%s5095_s1 + $0x6a0] sm:$0xff]   ;;  %v4146_v52 = vld [vmem:[%s5095_s1 + $0x658] sm:$0xff]  }
  0xa8   : > { %3735 = vmatprep.subr.bf16.mxu1 %v4087_v53  ;;  %v4147_v53 = vld [vmem:[%s5095_s1 + $0x6d8] sm:$0xff]  }
  0xaa   : > { %3714 = vmatpush3.bf16.msra.mxu0 %v4088_v54  ;;  %v4148_v54 = vld [vmem:[%s5095_s1 + $0x618] sm:$0xff]  }
  0xab   : > { %3736 = vmatpush3.bf16.msra.mxu1 %v4089_v55  ;;  %3743 = vmatprep.subr.bf16.mxu0 %v4094_v62  ;;  %v4149_v55 = vld [vmem:[%s5095_s1 + $0x698] sm:$0xff]   ;;  %v4156_v62 = vld [vmem:[%s5095_s1 + $0x608] sm:$0xff]  }
  0xac   : > { %3765 = vmatprep.subr.bf16.mxu1 %v4095_v63  ;;  %v4157_v63 = vld [vmem:[%s5095_s1 + $0x688] sm:$0xff]  }
  0xad   : > { %2760 = vmatmul.mubr.bf16.vlgmr.msra.gmra.mxu0 %v3239_v57  ;;  %v4151_v57 = vld [vmem:[%s5095_s1 + $0x6d0] sm:$0xff]  }
  0xae   : > { %2800 = vmatmul.mubr.bf16.vlgmr.msra.gmra.mxu1 %v3241_v60  ;;  %3744 = vmatpush3.bf16.msra.mxu0 %v4096_v0  ;;  %v4154_v60 = vld [vmem:[%s5095_s1 + $0x648] sm:$0xff]   ;;  %v4158_v0 = vld [vmem:[%s5095_s1 + $0x640] sm:$0xff]  }
  0xaf   : > { %3766 = vmatpush3.bf16.msra.mxu1 %v4097_v1  ;;  %3745 = vmatprep.subr.bf16.mxu0 %v4098_v2  ;;  %v4159_v1 = vld [vmem:[%s5095_s1 + $0x6c0] sm:$0xff]  }
  0xb0   : > { %3767 = vmatprep.subr.bf16.mxu1 %v4099_v3  ;;  %2839 = vmatprep.mubr.bf16.mxu0 %v3244_v33  ;;  %v4160_v2 = vld [vmem:[%s5095_s1 + $0x600] sm:$0xff]   ;;  %v4176_v33 = vld [vmem:[%s5095_s1 + $0x728] sm:$0xff]  }
  0xb1   : > { %2879 = vmatprep.mubr.bf16.mxu1 %v3246_v35  ;;  %v4161_v3 = vld [vmem:[%s5095_s1 + $0x680] sm:$0xff]  }
  0xb2   : > { %3746 = vmatpush3.bf16.msra.mxu0 %v4100_v4  ;;  %v236_v4 = vld [vmem:[%s4358_s12 + $0x60] sm:$0xff] }
  0xb3   : > { %3768 = vmatpush3.bf16.msra.mxu1 %v4101_v5  ;;  %3747 = vmatprep.subr.bf16.mxu0 %v4102_v6  ;;  %v237_v5 = vld [vmem:[%s4358_s12 + $0x68] sm:$0xff]  ;;  %v4178_v35 = vld [vmem:[%s5095_s1 + $0x760] sm:$0xff]  }
  0xb4   : > { %3769 = vmatprep.subr.bf16.mxu1 %v4103_v7 }
  0xb6   : > { %3748 = vmatpush3.bf16.msra.mxu0 %v4104_v8  ;;  %v3247_v8 = vcombine.low %v236_v4, %v236_v4 }
  0xb7   : > { %3770 = vmatpush3.bf16.msra.mxu1 %v4105_v9  ;;  %3749 = vmatprep.subr.bf16.mxu0 %v4106_v10  ;;  %v3248_v9 = vcombine.high %v236_v4, %v236_v4  ;;  %v3249_v10 = vcombine.low %v237_v5, %v237_v5 }
  0xb8   : > { %3771 = vmatprep.subr.bf16.mxu1 %v4107_v11  ;;  %v4166_v11 = vld [vmem:[%s5095_s1 + $0x778] sm:$0xff]  }
  0xba   : > { %3750 = vmatpush3.bf16.msra.mxu0 %v4108_v12  ;;  %v3250_v12 = vcombine.high %v237_v5, %v237_v5 }
  0xbb   : > { %3772 = vmatpush3.bf16.msra.mxu1 %v4109_v13  ;;  %3751 = vmatprep.subr.bf16.mxu0 %v4110_v14  ;;  %v4167_v13 = vld [vmem:[%s5095_s1 + $0x7f8] sm:$0xff]  }
  0xbc   : > { %3773 = vmatprep.subr.bf16.mxu1 %v4111_v15 }
  0xbe   : > { %3752 = vmatpush3.bf16.msra.mxu0 %v4112_v16  ;;  %v4168_v16 = vld [vmem:[%s5095_s1 + $0x738] sm:$0xff]  }
  0xbf   : > { %3774 = vmatpush3.bf16.msra.mxu1 %v4113_v17  ;;  %3753 = vmatprep.subr.bf16.mxu0 %v4114_v18 }
  0xc0   : > { %3775 = vmatprep.subr.bf16.mxu1 %v4115_v19  ;;  %v4169_v19 = vld [vmem:[%s5095_s1 + $0x7b8] sm:$0xff]  }
  0xc2   : > { %3754 = vmatpush3.bf16.msra.mxu0 %v4116_v20  ;;  %v3222_v20 = vld [vmem:[%s5096_s2] ss:$0 sm:$0xff] }
  0xc3   : > { %3776 = vmatpush3.bf16.msra.mxu1 %v4117_v21  ;;  %3755 = vmatprep.subr.bf16.mxu0 %v4118_v22 }
  0xc4   : > { %3777 = vmatprep.subr.bf16.mxu1 %v4119_v23 }
  0xc6   : > { %3756 = vmatpush3.bf16.msra.mxu0 %v4120_v24  ;;  %v4170_v24 = vld [vmem:[%s5095_s1 + $0x770] sm:$0xff]  }
  0xc7   : > { %3778 = vmatpush3.bf16.msra.mxu1 %v4121_v25  ;;  %3757 = vmatprep.subr.bf16.mxu0 %v4122_v26  ;;  %v4171_v25 = vld [vmem:[%s5095_s1 + $0x7f0] sm:$0xff]  }
  0xc8   : > { %3779 = vmatprep.subr.bf16.mxu1 %v4123_v27 }
  0xca   : > { %3758 = vmatpush3.bf16.msra.mxu0 %v4124_v28 }
  0xcb   : > { %3780 = vmatpush3.bf16.msra.mxu1 %v4125_v29  ;;  %3787 = vmatprep.subr.bf16.mxu0 %v4130_v36  ;;  %v4172_v29 = vld [vmem:[%s5095_s1 + $0x730] sm:$0xff]   ;;  %v4179_v36 = vld [vmem:[%s5095_s1 + $0x7e0] sm:$0xff]  }
  0xcc   : > { %3809 = vmatprep.subr.bf16.mxu1 %v4131_v37  ;;  %v4180_v37 = vld [vmem:[%s5095_s1 + $0x720] sm:$0xff]  }
  0xcd   : > { %2840 = vmatmul.mubr.bf16.vlgmr.msra.gmra.mxu0 %v3243_v32  ;;  %v4175_v32 = vld [vmem:[%s5095_s1 + $0x7e8] sm:$0xff]  }
  0xce   : > { %2880 = vmatmul.mubr.bf16.vlgmr.msra.gmra.mxu1 %v3245_v34  ;;  %3788 = vmatpush3.bf16.msra.mxu0 %v4132_v38  ;;  %v4177_v34 = vld [vmem:[%s5095_s1 + $0x7a8] sm:$0xff]   ;;  %v4181_v38 = vld [vmem:[%s5095_s1 + $0x7a0] sm:$0xff]  }
  0xcf   : > { %3810 = vmatpush3.bf16.msra.mxu1 %v4133_v39  ;;  %3789 = vmatprep.subr.bf16.mxu0 %v4134_v40  ;;  %v4182_v39 = vld [vmem:[%s5095_s1 + $0x758] sm:$0xff]  }
  0xd0   : > { %3811 = vmatprep.subr.bf16.mxu1 %v4135_v41  ;;  %2919 = vmatprep.mubr.bf16.mxu0 %v3248_v9  ;;  %v4183_v40 = vld [vmem:[%s5095_s1 + $0x7d8] sm:$0xff]  }
  0xd1   : > { %2959 = vmatprep.mubr.bf16.mxu1 %v3250_v12  ;;  %v4184_v41 = vld [vmem:[%s5095_s1 + $0x718] sm:$0xff]  }
  0xd2   : > { %3790 = vmatpush3.bf16.msra.mxu0 %v4136_v42  ;;  %v4185_v42 = vld [vmem:[%s5095_s1 + $0x798] sm:$0xff]  }
  0xd3   : > { %3812 = vmatpush3.bf16.msra.mxu1 %v4137_v43  ;;  %3791 = vmatprep.subr.bf16.mxu0 %v4138_v44  ;;  %v4186_v43 = vld [vmem:[%s5095_s1 + $0x750] sm:$0xff]  }
  0xd4   : > { %3813 = vmatprep.subr.bf16.mxu1 %v4139_v45  ;;  %v4187_v44 = vld [vmem:[%s5095_s1 + $0x7d0] sm:$0xff]  }
  0xd5   : > { %v4188_v45 = vld [vmem:[%s5095_s1 + $0x710] sm:$0xff]  }
  0xd6   : > { %3792 = vmatpush3.bf16.msra.mxu0 %v4140_v46  ;;  %v4189_v46 = vld [vmem:[%s5095_s1 + $0x790] sm:$0xff]  }
  0xd7   : > { %3814 = vmatpush3.bf16.msra.mxu1 %v4141_v47  ;;  %3793 = vmatprep.subr.bf16.mxu0 %v4142_v48  ;;  %v4190_v47 = vld [vmem:[%s5095_s1 + $0x748] sm:$0xff]  }
  0xd8   : > { %3815 = vmatprep.subr.bf16.mxu1 %v4143_v49  ;;  %v4191_v48 = vld [vmem:[%s5095_s1 + $0x7c8] sm:$0xff]  }
  0xd9   : > { %v4192_v49 = vld [vmem:[%s5095_s1 + $0x708] sm:$0xff]  }
  0xda   : > { %3794 = vmatpush3.bf16.msra.mxu0 %v4144_v50  ;;  %v4193_v50 = vld [vmem:[%s5095_s1 + $0x788] sm:$0xff]  }
  0xdb   : > { %3816 = vmatpush3.bf16.msra.mxu1 %v4145_v51  ;;  %3795 = vmatprep.subr.bf16.mxu0 %v4146_v52  ;;  %v4194_v51 = vld [vmem:[%s5095_s1 + $0x740] sm:$0xff]  }
  0xdc   : > { %3817 = vmatprep.subr.bf16.mxu1 %v4147_v53  ;;  %v4195_v52 = vld [vmem:[%s5095_s1 + $0x7c0] sm:$0xff]  }
  0xdd   : > { %v4196_v53 = vld [vmem:[%s5095_s1 + $0x700] sm:$0xff]  }
  0xde   : > { %3796 = vmatpush3.bf16.msra.mxu0 %v4148_v54  ;;  %v4197_v54 = vld [vmem:[%s5095_s1 + $0x780] sm:$0xff]  }
  0xdf   : > { %3818 = vmatpush3.bf16.msra.mxu1 %v4149_v55  ;;  %3797 = vmatprep.subr.bf16.mxu0 %v4150_v56  ;;  %v238_v55 = vld [vmem:[%s4358_s12 + $0x70] sm:$0xff]  ;;  %v239_v56 = vld [vmem:[%s4358_s12 + $0x78] sm:$0xff] }
  0xe0   : > { %3819 = vmatprep.subr.bf16.mxu1 %v4151_v57 }
  0xe2   : > { %3798 = vmatpush3.bf16.msra.mxu0 %v4152_v58 }
  0xe3   : > { %3820 = vmatpush3.bf16.msra.mxu1 %v4153_v59  ;;  %3799 = vmatprep.subr.bf16.mxu0 %v4154_v60  ;;  %v3251_v59 = vcombine.low %v238_v55, %v238_v55  ;;  %v3252_v60 = vcombine.high %v238_v55, %v238_v55 }
  0xe4   : > { %3821 = vmatprep.subr.bf16.mxu1 %v4155_v61  ;;  %v3253_v61 = vcombine.low %v239_v56, %v239_v56 }
  0xe6   : > { %3800 = vmatpush3.bf16.msra.mxu0 %v4156_v62  ;;  %v3254_v62 = vcombine.high %v239_v56, %v239_v56 }
  0xe7   : > { %3822 = vmatpush3.bf16.msra.mxu1 %v4157_v63  ;;  %3801 = vmatprep.subr.bf16.mxu0 %v4158_v0 }
  0xe8   : > { %3823 = vmatprep.subr.bf16.mxu1 %v4159_v1 }
  0xea   : > { %3802 = vmatpush3.bf16.msra.mxu0 %v4160_v2 }
  0xeb   : > { %3824 = vmatpush3.bf16.msra.mxu1 %v4161_v3  ;;  %3831 = vmatprep.subr.bf16.mxu0 %v4166_v11 }
  0xec   : > { %3853 = vmatprep.subr.bf16.mxu1 %v4167_v13 }
  0xed   : > { %v3539_v6 = vpop.f32.mrf.mxu0  ;;  %2920 = vmatmul.mubr.bf16.vlgmr.msra.gmra.mxu0 %v3247_v8 }
  0xee   : > { %v3561_v7 = vpop.f32.mrf.mxu1  ;;  %2960 = vmatmul.mubr.bf16.vlgmr.msra.gmra.mxu1 %v3249_v10  ;;  %3832 = vmatpush3.bf16.msra.mxu0 %v4168_v16 }
  0xef   : > { %v3540_v14 = vpop.f32.mrf.mxu0  ;;  %3854 = vmatpush3.bf16.msra.mxu1 %v4169_v19  ;;  %3833 = vmatprep.subr.bf16.mxu0 %v4170_v24  ;;  %v4204_v24 = vld [vmem:[%s5097_s3 + $0x28] sm:$0xff]  }
  0xf0   : > { %v3562_v15 = vpop.f32.mrf.mxu1  ;;  %v3541_v17 = vadd.f32 %v3540_v14, %v3539_v6  ;;  %3855 = vmatprep.subr.bf16.mxu1 %v4171_v25  ;;  %2999 = vmatprep.mubr.bf16.mxu0 %v3252_v60  ;;  %v4205_v25 = vld [vmem:[%s5097_s3 + $0x20] sm:$0xff]  }
  0xf1   : > { %v3563_v18 = vadd.f32 %v3562_v15, %v3561_v7  ;;  %v3542_v21 = vpop.f32.mrf.mxu0  ;;  %3039 = vmatprep.mubr.bf16.mxu1 %v3254_v62 }
  0xf2   : > { %v3564_v22 = vpop.f32.mrf.mxu1  ;;  %v2442_v23 = vadd.f32 %v3541_v17, %v3222_v20  ;;  %3834 = vmatpush3.bf16.msra.mxu0 %v4172_v29  ;;  %v4202_v21 = vld [vmem:[%s5097_s3 + $0x38] sm:$0xff]  }
  0xf3   : > { %v3543_v26 = vpop.f32.mrf.mxu0  ;;  %3856 = vmatpush3.bf16.msra.mxu1 %v4173_v30  ;;  %3835 = vmatprep.subr.bf16.mxu0 %v4174_v31  ;;  %v4218_v22 = vmov 0.0  }
  0xf4   : > { %v3565_v27 = vpop.f32.mrf.mxu1  ;;  %v4977_v28 = vadd.f32 %v3563_v18, %v2442_v23  ;;  %3857 = vmatprep.subr.bf16.mxu1 %v4175_v32  ;;  %v4203_v23 = vld [vmem:[%s5097_s3 + $0x30] sm:$0xff]   ;;  %v4206_v26 = vld [vmem:[%s5097_s3 + $0x18] sm:$0xff]  }
  0xf6   : > { %3836 = vmatpush3.bf16.msra.mxu0 %v4176_v33 }
  0xf7   : > { %3858 = vmatpush3.bf16.msra.mxu1 %v4177_v34  ;;  %3837 = vmatprep.subr.bf16.mxu0 %v4178_v35  ;;  %v4207_v34 = vld [vmem:[%s5097_s3 + $0x10] sm:$0xff]  }
  0xf8   : > { %3859 = vmatprep.subr.bf16.mxu1 %v4179_v36 }
  0xfa   : > { %3838 = vmatpush3.bf16.msra.mxu0 %v4180_v37 }
  0xfb   : > { %3860 = vmatpush3.bf16.msra.mxu1 %v4181_v38  ;;  %3839 = vmatprep.subr.bf16.mxu0 %v4182_v39 }
  0xfc   : > { %3861 = vmatprep.subr.bf16.mxu1 %v4183_v40  ;;  %v4208_v40 = vld [vmem:[%s5097_s3 + $0x8] sm:$0xff]  }
  0xfe   : > { %3840 = vmatpush3.bf16.msra.mxu0 %v4184_v41  ;;  %v4209_v41 = vld [vmem:[%s5097_s3] sm:$0xff]  }
  0xff   : > { %3862 = vmatpush3.bf16.msra.mxu1 %v4185_v42  ;;  %3841 = vmatprep.subr.bf16.mxu0 %v4186_v43 }
 0x100   : > { %3863 = vmatprep.subr.bf16.mxu1 %v4187_v44 }
 0x102   : > { %3842 = vmatpush3.bf16.msra.mxu0 %v4188_v45 }
 0x103   : > { %3864 = vmatpush3.bf16.msra.mxu1 %v4189_v46  ;;  %3843 = vmatprep.subr.bf16.mxu0 %v4190_v47 }
 0x104   : > { %3865 = vmatprep.subr.bf16.mxu1 %v4191_v48 }
 0x106   : > { %3844 = vmatpush3.bf16.msra.mxu0 %v4192_v49 }
 0x107   : > { %3866 = vmatpush3.bf16.msra.mxu1 %v4193_v50  ;;  %3845 = vmatprep.subr.bf16.mxu0 %v4194_v51 }
 0x108   : > { %3867 = vmatprep.subr.bf16.mxu1 %v4195_v52 }
 0x10a   : > { %3846 = vmatpush3.bf16.msra.mxu0 %v4196_v53 }
 0x10b   : > { %3868 = vmatpush3.bf16.msra.mxu1 %v4197_v54  ;;  %3884 = vmatprep.subr.bf16.mxu0 %v4218_v22 }
 0x10d   : > { %v3583_v57 = vpop.f32.mrf.mxu0  ;;  %3000 = vmatmul.mubr.bf16.vlgmr.msra.gmra.mxu0 %v3251_v59 }
 0x10e   : > { %v3605_v58 = vpop.f32.mrf.mxu1  ;;  %3040 = vmatmul.mubr.bf16.vlgmr.msra.gmra.mxu1 %v3253_v61  ;;  %3885 = vmatpush3.bf16.msra.mxu0 %v4202_v21 }
 0x10f   : > { %v3584_v63 = vpop.f32.mrf.mxu0  ;;  %3886 = vmatprep.subr.bf16.mxu0 %v4218_v22  ;;  %3900 = vmatprep.mubr.msk.bf16.mxu0 %vm4219_vm0, %v4218_v22 }
 0x110   : > { %v3606_v0 = vpop.f32.mrf.mxu1  ;;  %v3585_v1 = vadd.f32 %v3584_v63, %v3583_v57 }
 0x111   : > { %v3607_v2 = vadd.f32 %v3606_v0, %v3605_v58  ;;  %v3586_v3 = vpop.f32.mrf.mxu0 }
 0x112   : > { %v3608_v4 = vpop.f32.mrf.mxu1  ;;  %v2522_v5 = vadd.f32 %v3585_v1, %v4977_v28  ;;  %3887 = vmatpush3.bf16.msra.mxu0 %v4203_v23 }
 0x113   : > { %v3587_v6 = vpop.f32.mrf.mxu0  ;;  %3888 = vmatprep.subr.bf16.mxu0 %v4218_v22 }
 0x114   : > { %v3609_v7 = vpop.f32.mrf.mxu1  ;;  %v2562_v8 = vadd.f32 %v3607_v2, %v2522_v5 }
 0x116   : > { %3889 = vmatpush3.bf16.msra.mxu0 %v4204_v24 }
 0x117   : > { %3890 = vmatprep.subr.bf16.mxu0 %v4218_v22 }
 0x11a   : > { %3891 = vmatpush3.bf16.msra.mxu0 %v4205_v25 }
 0x11b   : > { %3892 = vmatprep.subr.bf16.mxu0 %v4218_v22 }
 0x11e   : > { %3893 = vmatpush3.bf16.msra.mxu0 %v4206_v26 }
 0x11f   : > { %3894 = vmatprep.subr.bf16.mxu0 %v4218_v22 }
 0x122   : > { %3895 = vmatpush3.bf16.msra.mxu0 %v4207_v34 }
 0x123   : > { %3896 = vmatprep.subr.bf16.mxu0 %v4218_v22 }
 0x126   : > { %3897 = vmatpush3.bf16.msra.mxu0 %v4208_v40 }
 0x127   : > { %3898 = vmatprep.subr.bf16.mxu0 %v4218_v22 }
 0x12a   : > { %3899 = vmatpush3.bf16.msra.mxu0 %v4209_v41 }
 0x12d   : > { %v3627_v9 = vpop.f32.mrf.mxu0 }
 0x12e   : > { %v3649_v10 = vpop.f32.mrf.mxu1 }
 0x12f   : > { %v3628_v11 = vpop.f32.mrf.mxu0 }
 0x130   : > { %v3629_v12 = vadd.f32 %v3628_v11, %v3627_v9  ;;  %v3650_v13 = vpop.f32.mrf.mxu1 }
 0x131   : > { %v3651_v14 = vadd.f32 %v3650_v13, %v3649_v10  ;;  %v3630_v15 = vpop.f32.mrf.mxu0 }
 0x132   : > { %v2602_v16 = vadd.f32 %v3629_v12, %v2562_v8  ;;  %v3652_v17 = vpop.f32.mrf.mxu1 }
 0x133   : > { %v3631_v18 = vpop.f32.mrf.mxu0 }
 0x134   : > { %v2642_v19 = vadd.f32 %v3651_v14, %v2602_v16  ;;  %v3653_v20 = vpop.f32.mrf.mxu1 }
 0x14d   : > { %v3671_v27 = vpop.f32.mrf.mxu0 }
 0x14e   : > { %v3693_v28 = vpop.f32.mrf.mxu1 }
 0x14f   : > { %v3672_v29 = vpop.f32.mrf.mxu0 }
 0x150   : > { %v3673_v30 = vadd.f32 %v3672_v29, %v3671_v27  ;;  %v3694_v31 = vpop.f32.mrf.mxu1 }
 0x151   : > { %v3695_v32 = vadd.f32 %v3694_v31, %v3693_v28  ;;  %v3674_v33 = vpop.f32.mrf.mxu0  ;;  %v3511_v28 = vld [vmem:[%s5098_s4] ss:$0 sm:$0xff] }
 0x152   : > { %v2682_v35 = vadd.f32 %v3673_v30, %v2642_v19  ;;  %v3696_v36 = vpop.f32.mrf.mxu1 }
 0x153   : > { %v3675_v37 = vpop.f32.mrf.mxu0 }
 0x154   : > { %v2722_v38 = vadd.f32 %v3695_v32, %v2682_v35  ;;  %v3697_v39 = vpop.f32.mrf.mxu1 }
 0x16d   : > { %v3715_v42 = vpop.f32.mrf.mxu0 }
 0x16e   : > { %v3737_v43 = vpop.f32.mrf.mxu1 }
 0x16f   : > { %v3716_v44 = vpop.f32.mrf.mxu0 }
 0x170   : > { %v3738_v45 = vpop.f32.mrf.mxu1  ;;  %v3717_v46 = vadd.f32 %v3716_v44, %v3715_v42 }
 0x171   : > { %v3739_v47 = vadd.f32 %v3738_v45, %v3737_v43  ;;  %v3718_v48 = vpop.f32.mrf.mxu0 }
 0x172   : > { %v3740_v49 = vpop.f32.mrf.mxu1  ;;  %v2762_v50 = vadd.f32 %v3717_v46, %v2722_v38 }
 0x173   : > { %v3719_v51 = vpop.f32.mrf.mxu0 }
 0x174   : > { %v3741_v52 = vpop.f32.mrf.mxu1  ;;  %v2802_v53 = vadd.f32 %v3739_v47, %v2762_v50 }
 0x18d   : > { %v3759_v54 = vpop.f32.mrf.mxu0 }
 0x18e   : > { %v3781_v55 = vpop.f32.mrf.mxu1 }
 0x18f   : > { %v3760_v56 = vpop.f32.mrf.mxu0 }
 0x190   : > { %v3782_v57 = vpop.f32.mrf.mxu1  ;;  %v3761_v6 = vadd.f32 %v3760_v56, %v3759_v54 }
 0x191   : > { %v3762_v58 = vpop.f32.mrf.mxu0  ;;  %v3783_v8 = vadd.f32 %v3782_v57, %v3781_v55 }
 0x192   : > { %v3784_v59 = vpop.f32.mrf.mxu1  ;;  %v2842_v7 = vadd.f32 %v3761_v6, %v2802_v53 }
 0x193   : > { %v3763_v60 = vpop.f32.mrf.mxu0 }
 0x194   : > { %v3785_v61 = vpop.f32.mrf.mxu1  ;;  %v2882_v10 = vadd.f32 %v3783_v8, %v2842_v7 }
 0x1ad   : > { %v3803_v62 = vpop.f32.mrf.mxu0 }
 0x1ae   : > { %v3825_v63 = vpop.f32.mrf.mxu1 }
 0x1af   : > { %v3804_v0 = vpop.f32.mrf.mxu0 }
 0x1b0   : > { %v3826_v1 = vpop.f32.mrf.mxu1  ;;  %v3805_v9 = vadd.f32 %v3804_v0, %v3803_v62 }
 0x1b1   : > { %v3806_v2 = vpop.f32.mrf.mxu0  ;;  %v3827_v12 = vadd.f32 %v3826_v1, %v3825_v63 }
 0x1b2   : > { %v3828_v3 = vpop.f32.mrf.mxu1  ;;  %v2922_v11 = vadd.f32 %v3805_v9, %v2882_v10 }
 0x1b3   : > { %v3807_v4 = vpop.f32.mrf.mxu0 }
 0x1b4   : > { %v3829_v5 = vpop.f32.mrf.mxu1  ;;  %v2962_v16 = vadd.f32 %v3827_v12, %v2922_v11 }
 0x1cd   : > { %v3847_v13 = vpop.f32.mrf.mxu0 }
 0x1ce   : > { %v3869_v14 = vpop.f32.mrf.mxu1 }
 0x1cf   : > { %v3848_v15 = vpop.f32.mrf.mxu0 }
 0x1d0   : > { %v3849_v17 = vadd.f32 %v3848_v15, %v3847_v13  ;;  %v3870_v18 = vpop.f32.mrf.mxu1 }
 0x1d1   : > { %v3850_v19 = vpop.f32.mrf.mxu0  ;;  %v3871_v21 = vadd.f32 %v3870_v18, %v3869_v14 }
 0x1d2   : > { %v3002_v20 = vadd.f32 %v3849_v17, %v2962_v16  ;;  %v3872_v22 = vpop.f32.mrf.mxu1 }
 0x1d3   : > { %v3851_v23 = vpop.f32.mrf.mxu0 }
 0x1d4   : > { %v3042_v24 = vadd.f32 %v3871_v21, %v3002_v20  ;;  %v3873_v25 = vpop.f32.mrf.mxu1 }
 0x1d6   : > { %v3047_v26 = vmax.f32 %v3042_v24, 0.0 }
 0x1d8   : > { %v3048_v27 = vpack.c.bf16 %v3047_v26, %v3047_v26 }
 0x1da   : > { %3901 = vmatmul.mubr.bf16.vlgmr.msra.gmra.mxu0 %v3048_v27 }
 0x29a   : > { %v3154_v29 = vpop.f32.mrf.mxu0 }
 0x29b   : > { %v3155_v30 = vadd.f32 %v3511_v28, %v3154_v29 }
 0x29c   : > { %v3902_v31 = vpop.f32.mrf.mxu0 }
 0x29d   : > { %3160 = vst [vmem:[%s222_s27] sm:$0xff] %v3155_v30 }
 0x29e   : > { %v3157_v32 = vpop.f32.mrf.mxu0 }
 0x2a0   : > { %v3903_v33 = vpop.f32.mrf.mxu0 }
 0x2a1 PF: > { %s15_s18 = sadd.s32 1, %s4216_s18  }
 0x2a2   : > { %p12_p4 = scmp.ge.s32.totalorder %s15_s18, 4  }
 0x2a4   :  { %14 = sbr.rel (!%p12_p4) target bundleno = 1 (0x1), region = 70 }

</bundles_post_ra>
